<compile_context>
chip_gen: v7x
topology: tpu7x:2x2x1
jax: 0.10.0
libtpu: 0.0.40
codegen_flags: <defaults>
</compile_context>

<pallas_src>
from functools import partial

import jax
import jax.numpy as jnp
import numpy as np
from jax.experimental import pallas as pl
from jax.experimental.pallas import tpu as pltpu


def _round_up(x, m):
    return ((x + m - 1) // m) * m


# ------------------------------- fused kernel ------------------------------- #

def _bottleneck_kernel(x_ref, mask_ref, w1_ref, w2_ref, w3_ref,
                       b1_ref, b2_ref, b3_ref, o_ref,
                       y1pad_ref, lhs_ref, *, W, D):
    """B_blk images per grid step.

    x_ref    : (B_blk, M, Cin) bf16  NHWC-flattened rows (M = H*W); also residual
    mask_ref : (M, 2) bf16 -- [left-valid, right-valid] horizontal wrap masks
    w*_ref   : bf16 weights, BN scale pre-folded (w2 is K-concatenated (9*width, width))
    b*_ref   : (1, C) f32 BN biases
    o_ref    : (B_blk, M, Cout) bf16
    y1pad_ref: (Mp, width) bf16 scratch -- row-padded conv1 output (per image)
    lhs_ref  : (B_blk*M, 9*width) bf16 scratch -- K-concatenated conv2 LHS
    """
    B_blk, M, Cin = x_ref.shape
    width = w1_ref.shape[1]
    Cout = w3_ref.shape[1]
    BM = B_blk * M

    # Vertical zero padding: zero only the guard bands the shifted loads touch.
    zero_band = jnp.zeros((W + 1, width), jnp.bfloat16)
    y1pad_ref[pl.ds(D - (W + 1), W + 1), :] = zero_band
    y1pad_ref[pl.ds(D + M, W + 1), :] = zero_band

    # ---- conv1 (1x1) + bn1 bias + relu : one (BM, Cin) x (Cin, width) matmul -- #
    x = x_ref[...].reshape(BM, Cin)                        # bf16, also the residual
    y1 = jnp.dot(x, w1_ref[...], preferred_element_type=jnp.float32)
    y1 = jnp.maximum(y1 + b1_ref[...], 0.0).astype(jnp.bfloat16)

    # Horizontal wrap masks (precomputed in the wrapper, folded into LHS build).
    mask_l = mask_ref[:, 0:1]                              # (M, 1) bf16 {0, 1}
    mask_r = mask_ref[:, 1:2]

    # ---- build the K-concatenated conv2 LHS, one image at a time ------------ #
    # Output row o = h*W + w of tap (dy, dx) reads padded row D + (h+dy-1)*W + (w+dx-1).
    # Vertical out-of-range reads land in the zero guard bands; horizontal wraps
    # are removed by the multiplicative masks while the LHS slabs are built.
    for b in range(B_blk):
        y1pad_ref[pl.ds(D, M), :] = y1[b * M:(b + 1) * M]
        slabs = []
        for t in range(9):                                 # static unroll
            dy, dx = divmod(t, 3)
            win = y1pad_ref[pl.ds(D + (dy - 1) * W + (dx - 1), M), :]
            if dx == 0:
                win = win * mask_l
            elif dx == 2:
                win = win * mask_r
            slabs.append(win)
        lhs_ref[pl.ds(b * M, M), :] = jnp.concatenate(slabs, axis=-1)

    # ---- conv2 (3x3) + bn2 + relu : ONE (BM, 9*width) x (9*width, width) ----- #
    y2 = jnp.dot(lhs_ref[...], w2_ref[...], preferred_element_type=jnp.float32)
    y2 = jnp.maximum(y2 + b2_ref[...], 0.0).astype(jnp.bfloat16)

    # ---- conv3 (1x1) + bn3 bias + residual + relu ---------------------------- #
    y3 = jnp.dot(y2, w3_ref[...], preferred_element_type=jnp.float32)
    y3 = y3 + b3_ref[...] + x.astype(jnp.float32)
    o_ref[...] = jnp.maximum(y3, 0.0).reshape(B_blk, M, Cout).astype(o_ref.dtype)


def _choose_b_blk(N, M, width, Cin, Cout, budget_bytes=12 * 2 ** 20):
    """Largest divisor of N keeping grid >= min(N, 4) steps and a small footprint."""
    best = 1
    for b in range(1, N + 1):
        if N % b != 0:
            continue
        if N // b < min(N, 4):
            continue
        per_step = 2 * (b * M * (Cin + Cout) * 2) + b * M * 9 * width * 2
        if per_step <= budget_bytes:
            best = b
    return best


def _vmem_limit_bytes(B_blk, M, Cin, width, Cout, Mp):
    """Computed (not hardcoded) VMEM request, capped at 64 MiB for v7x safety."""
    bf = 2
    blocks = B_blk * M * (Cin + Cout) * bf                       # x + out block
    weights = (Cin * width + 9 * width * width + width * Cout) * bf
    biases = (2 * width + Cout) * 4
    mask = M * 2 * bf
    scratch = (Mp * width + B_blk * M * 9 * width) * bf
    est = 2 * (blocks + weights + biases + mask) + scratch       # double-buffered operands
    return int(min(64 * 2 ** 20, max(32 * 2 ** 20, 4 * est)))


def fused_bottleneck(x_flat, mask, w1, w2, w3, b1, b2, b3, *, H, W, B_blk):
    """x_flat: (N, H*W, Cin) bf16 NHWC-flattened input -> (N, H*W, Cout) bf16."""
    N, M, Cin = x_flat.shape
    width = w1.shape[1]
    Cout = w3.shape[1]
    if M != H * W or M % 8 != 0:
        raise ValueError("H*W must match x and be a multiple of 8 (TPU sublane tiling).")
    if N % B_blk != 0:
        raise ValueError("B_blk must divide N.")
    G = N // B_blk

    D = _round_up(W + 1, 16)                 # 16-aligned data start (bf16 sublane pack)
    Mp = D + M + _round_up(W + 1, 16)        # + 16-padded trailing guard band

    flops = 2 * N * M * (Cin * width + 9 * width * width + width * Cout)
    bytes_accessed = ((x_flat.size + N * M * Cout) * 2
                      + (w1.size + w2.size + w3.size) * 2
                      + (b1.size + b2.size + b3.size) * 4
                      + mask.size * 2)

    kernel = partial(_bottleneck_kernel, W=W, D=D)
    return pl.pallas_call(
        kernel,
        out_shape=jax.ShapeDtypeStruct((N, M, Cout), jnp.bfloat16),
        grid=(G,),
        in_specs=[
            pl.BlockSpec((B_blk, M, Cin), lambda g: (g, 0, 0)),     # x (bf16)
            pl.BlockSpec((M, 2), lambda g: (0, 0)),                 # wrap masks
            pl.BlockSpec((Cin, width), lambda g: (0, 0)),           # w1
            pl.BlockSpec((9 * width, width), lambda g: (0, 0)),     # w2 (K-concat)
            pl.BlockSpec((width, Cout), lambda g: (0, 0)),          # w3
            pl.BlockSpec((1, width), lambda g: (0, 0)),             # b1
            pl.BlockSpec((1, width), lambda g: (0, 0)),             # b2
            pl.BlockSpec((1, Cout), lambda g: (0, 0)),              # b3
        ],
        out_specs=pl.BlockSpec((B_blk, M, Cout), lambda g: (g, 0, 0)),
        scratch_shapes=[
            pltpu.VMEM((Mp, width), jnp.bfloat16),                  # row-padded conv1 out
            pltpu.VMEM((B_blk * M, 9 * width), jnp.bfloat16),       # K-concat conv2 LHS
        ],
        compiler_params=pltpu.CompilerParams(
            dimension_semantics=("parallel",),
            vmem_limit_bytes=_vmem_limit_bytes(B_blk, M, Cin, width, Cout, Mp),
        ),
        cost_estimate=pl.CostEstimate(flops=flops, transcendentals=0,
                                      bytes_accessed=bytes_accessed),
    )(x_flat, mask, w1, w2, w3, b1, b2, b3)


# ----------------------- parameters / BN branch dispatch -------------------- #

# (a, k) -> which of the 8 BN branches, mirroring the PyTorch if/elif chain.
_BN_TABLE = {(2, 8): 0, (2, 10): 1, (2, 12): 2, (2, 14): 3,
             (3, 14): 4, (3, 16): 5, (3, 18): 6, (3, 20): 7}


def _make_bn_params(key, channels, n_sets=8):
    k0, k1, k2, k3 = jax.random.split(key, 4)
    gamma = jax.random.uniform(k0, (n_sets, channels), jnp.float32, 0.5, 1.5)
    beta = 0.1 * jax.random.normal(k1, (n_sets, channels), jnp.float32)
    mean = 0.1 * jax.random.normal(k2, (n_sets, channels), jnp.float32)
    var = jax.random.uniform(k3, (n_sets, channels), jnp.float32, 0.5, 1.5)
    return gamma, beta, mean, var


def _bn_scale_bias(bn, idx, eps=1e-5):
    gamma, beta, mean, var = bn
    c = gamma.shape[1]
    if idx is None:               # (a, k) not in the dispatch table -> identity BN
        return jnp.ones((1, c), jnp.float32), jnp.zeros((1, c), jnp.float32)
    scale = gamma[idx] / jnp.sqrt(var[idx] + eps)
    bias = beta[idx] - mean[idx] * scale
    return scale.reshape(1, c), bias.reshape(1, c)


def _fold_params(params, idx):
    """Fold the selected BN branch's scale into the conv weights (output-channel
    axis) and cast to bf16 MXU operands; keep the biases in f32."""
    s1, b1 = _bn_scale_bias(params["bn1"], idx)
    s2, b2 = _bn_scale_bias(params["bn2"], idx)
    s3, b3 = _bn_scale_bias(params["bn3"], idx)
    w1f = (params["w1"] * s1).astype(jnp.bfloat16)          # (Cin, width)
    w2f = (params["w2"] * s2).astype(jnp.bfloat16)          # (9, width, width)
    w3f = (params["w3"] * s3).astype(jnp.bfloat16)          # (width, Cout)
    return w1f, w2f, w3f, b1, b2, b3


def init_bottleneck_params(key, inplanes, planes, base_width=64, groups=1):
    expansion = 4
    width = int(planes * (base_width / 64.0)) * groups
    outc = planes * expansion
    ks = jax.random.split(key, 6)
    w1 = jax.random.normal(ks[0], (inplanes, width), jnp.float32) / jnp.sqrt(inplanes)
    w2 = jax.random.normal(ks[1], (9, width, width), jnp.float32) / jnp.sqrt(9 * width)
    w3 = jax.random.normal(ks[2], (width, outc), jnp.float32) / jnp.sqrt(width)
    return {"w1": w1, "w2": w2, "w3": w3,
            "bn1": _make_bn_params(ks[3], width),    # bn10..bn17
            "bn2": _make_bn_params(ks[4], width),    # bn20..bn27
            "bn3": _make_bn_params(ks[5], outc)}     # bn30..bn37


# -------------------------------- forward pass ------------------------------ #

@partial(jax.jit, static_argnames=("a", "k"))
def bottleneck_forward(x_nhwc, params, *, a, k):
    """x_nhwc: (N, H, W, Cin) bf16/f32. Model is NHWC end-to-end (layout only;
    per-element forward semantics match the PyTorch NCHW module)."""
    idx = _BN_TABLE.get((a, k), None)
    N, H, W, Cin = x_nhwc.shape
    width = params["w1"].shape[1]
    Cout = params["w3"].shape[1]
    assert Cin == Cout, "stride=1 / downsample=None requires inplanes == planes*4"

    w1f, w2f, w3f, b1, b2, b3 = _fold_params(params, idx)
    w2f = w2f.reshape(9 * width, width)                # K-concatenated conv2 RHS

    M = H * W
    # Horizontal wrap masks, hoisted out of the kernel (computed once per call).
    col = jnp.arange(M, dtype=jnp.int32) % W
    mask = jnp.stack([col != 0, col != W - 1], axis=-1).astype(jnp.bfloat16)

    x_flat = x_nhwc.astype(jnp.bfloat16).reshape(N, M, Cin)   # bf16 DMA, free reshape

    B_blk = _choose_b_blk(N, M, width, Cin, Cout)
    out = fused_bottleneck(x_flat, mask, w1f, w2f, w3f, b1, b2, b3,
                           H=H, W=W, B_blk=B_blk)
    return out.reshape(N, H, W, Cout), a, k


# ------------------------- pure-JAX numerical reference --------------------- #

def bottleneck_reference(x_nhwc, params, a, k):
    """Reference with the same precision policy (bf16 operands & I/O, f32
    accumulation / epilogue, bf16-rounded residual) used to validate the kernel."""
    idx = _BN_TABLE.get((a, k), None)
    w1f, w2f, w3f, b1, b2, b3 = _fold_params(params, idx)
    width = w1f.shape[1]
    x = x_nhwc.astype(jnp.bfloat16)
    y = jnp.einsum("nhwc,cd->nhwd", x, w1f, preferred_element_type=jnp.float32)
    y = jax.nn.relu(y + b1).astype(jnp.bfloat16)
    w2_hwio = w2f.reshape(3, 3, width, width)
    y = jax.lax.conv_general_dilated(
        y, w2_hwio, window_strides=(1, 1), padding="SAME",
        dimension_numbers=("NHWC", "HWIO", "NHWC"),
        preferred_element_type=jnp.float32)
    y = jax.nn.relu(y + b2).astype(jnp.bfloat16)
    y = jnp.einsum("nhwc,cd->nhwd", y, w3f, preferred_element_type=jnp.float32)
    y = jax.nn.relu(y + b3 + x.astype(jnp.float32))
    return y.astype(jnp.bfloat16)


# ------------------------------------ main ---------------------------------- #

if __name__ == "__main__":
    def run_case(case_key, N, H, W, inplanes, planes, a, k):
        kx, kp = jax.random.split(case_key)
        x = jax.random.normal(kx, (N, H, W, inplanes), jnp.float32).astype(jnp.bfloat16)
        params = init_bottleneck_params(kp, inplanes, planes)

        out, a_out, k_out = bottleneck_forward(x, params, a=a, k=k)
        out = jax.block_until_ready(out)

        ref = bottleneck_reference(x, params, a, k)
        np.testing.assert_allclose(np.asarray(out.astype(jnp.float32)),
                                   np.asarray(ref.astype(jnp.float32)),
                                   rtol=1e-2, atol=1e-2)
        assert out.shape == (N, H, W, planes * 4)
        assert out.dtype == jnp.bfloat16
        assert (a_out, k_out) == (a, k)

    key = jax.random.PRNGKey(0)
    k1, k2 = jax.random.split(key)

    # Main demo config: width=8, Cout=32 == inplanes, selects bn10/bn20/bn30.
    run_case(k1, N=2, H=16, W=16, inplanes=32, planes=8, a=2, k=8)
    # Non-square spatial + different BN branch: exercises guard rows / wrap masks.
    run_case(k2, N=4, H=12, W=8, inplanes=32, planes=8, a=3, k=16)

    print("KERNEL_OK")
</pallas_src>

<mosaic_0001>
module attributes {stable_mosaic.version = 11 : i64} {
  func.func @_bottleneck_kernel(%arg0: i32, %arg1: memref<1x256x32xbf16, #tpu.memory_space<vmem>>, %arg2: memref<256x2xbf16, #tpu.memory_space<vmem>>, %arg3: memref<32x8xbf16, #tpu.memory_space<vmem>>, %arg4: memref<72x8xbf16, #tpu.memory_space<vmem>>, %arg5: memref<8x32xbf16, #tpu.memory_space<vmem>>, %arg6: memref<1x8xf32, #tpu.memory_space<vmem>>, %arg7: memref<1x8xf32, #tpu.memory_space<vmem>>, %arg8: memref<1x32xf32, #tpu.memory_space<vmem>>, %arg9: memref<1x256x32xbf16, #tpu.memory_space<vmem>>, %arg10: memref<320x8xbf16, #tpu.memory_space<vmem>>, %arg11: memref<256x72xbf16, #tpu.memory_space<vmem>>) attributes {dimension_semantics = [#tpu.dimension_semantics<parallel>], iteration_bounds = array<i64: 2>, scalar_prefetch = 0 : i64, scratch_operands = 2 : i64, tpu.core_type = #tpu.core_type<tc>, window_params = [{transform_indices = @transform_0, window_bounds = array<i64: 1, 256, 32>}, {pipeline_mode = #tpu.pipeline_mode<synchronous>, transform_indices = @transform_1, window_bounds = array<i64: 256, 2>}, {pipeline_mode = #tpu.pipeline_mode<synchronous>, transform_indices = @transform_2, window_bounds = array<i64: 32, 8>}, {pipeline_mode = #tpu.pipeline_mode<synchronous>, transform_indices = @transform_3, window_bounds = array<i64: 72, 8>}, {pipeline_mode = #tpu.pipeline_mode<synchronous>, transform_indices = @transform_4, window_bounds = array<i64: 8, 32>}, {pipeline_mode = #tpu.pipeline_mode<synchronous>, transform_indices = @transform_5, window_bounds = array<i64: 1, 8>}, {pipeline_mode = #tpu.pipeline_mode<synchronous>, transform_indices = @transform_6, window_bounds = array<i64: 1, 8>}, {pipeline_mode = #tpu.pipeline_mode<synchronous>, transform_indices = @transform_7, window_bounds = array<i64: 1, 32>}, {transform_indices = @transform_8, window_bounds = array<i64: 1, 256, 32>}]} {
    %cst = arith.constant 0.000000e+00 : bf16
    %0 = vector.broadcast %cst : bf16 to vector<17x8xbf16>
    %c15 = arith.constant 15 : index
    %c0 = arith.constant 0 : index
    %1 = vector.load %arg10[%c15, %c0] : memref<320x8xbf16, #tpu.memory_space<vmem>>, vector<17x8xbf16>
    tpu.vector_store %arg10[%c15, %c0], %0 {strides = array<i32>} : memref<320x8xbf16, #tpu.memory_space<vmem>>, vector<17x8xbf16>,
    %c288 = arith.constant 288 : index
    %c0_0 = arith.constant 0 : index
    %2 = vector.load %arg10[%c288, %c0_0] : memref<320x8xbf16, #tpu.memory_space<vmem>>, vector<17x8xbf16>
    tpu.vector_store %arg10[%c288, %c0_0], %0 {strides = array<i32>} : memref<320x8xbf16, #tpu.memory_space<vmem>>, vector<17x8xbf16>,
    %c0_1 = arith.constant 0 : index
    %c0_2 = arith.constant 0 : index
    %c0_3 = arith.constant 0 : index
    %3 = vector.load %arg1[%c0_1, %c0_2, %c0_3] : memref<1x256x32xbf16, #tpu.memory_space<vmem>>, vector<1x256x32xbf16>
    %4 = vector.shape_cast %3 : vector<1x256x32xbf16> to vector<256x32xbf16>
    %c0_4 = arith.constant 0 : index
    %c0_5 = arith.constant 0 : index
    %5 = vector.load %arg3[%c0_4, %c0_5] : memref<32x8xbf16, #tpu.memory_space<vmem>>, vector<32x8xbf16>
    %cst_6 = arith.constant dense<0.000000e+00> : vector<256x8xf32>
    %6 = tpu.matmul %4, %5, %cst_6 {dimension_numbers = #tpu.dot_dimension_numbers<[1], [0], [0], [1], [0, 0, 1, 1], [], []>} : vector<256x32xbf16>, vector<32x8xbf16>, vector<256x8xf32> -> vector<256x8xf32>
    %c0_7 = arith.constant 0 : index
    %c0_8 = arith.constant 0 : index
    %7 = vector.load %arg6[%c0_7, %c0_8] : memref<1x8xf32, #tpu.memory_space<vmem>>, vector<1x8xf32>
    %8 = vector.broadcast %7 : vector<1x8xf32> to vector<256x8xf32>
    %9 = arith.addf %6, %8 : vector<256x8xf32>
    %cst_9 = arith.constant 0.000000e+00 : f32
    %10 = vector.broadcast %cst_9 : f32 to vector<256x8xf32>
    %11 = arith.maximumf %9, %10 : vector<256x8xf32>
    %12 = arith.truncf %11 : vector<256x8xf32> to vector<256x8xbf16>
    %c0_10 = arith.constant 0 : index
    %c0_11 = arith.constant 0 : index
    %13 = vector.load %arg2[%c0_10, %c0_11] : memref<256x2xbf16, #tpu.memory_space<vmem>>, vector<256x1xbf16>
    %c0_12 = arith.constant 0 : index
    %c1 = arith.constant 1 : index
    %14 = vector.load %arg2[%c0_12, %c1] : memref<256x2xbf16, #tpu.memory_space<vmem>>, vector<256x1xbf16>
    %c32 = arith.constant 32 : index
    %c0_13 = arith.constant 0 : index
    %15 = vector.load %arg10[%c32, %c0_13] : memref<320x8xbf16, #tpu.memory_space<vmem>>, vector<256x8xbf16>
    tpu.vector_store %arg10[%c32, %c0_13], %12 {strides = array<i32>} : memref<320x8xbf16, #tpu.memory_space<vmem>>, vector<256x8xbf16>,
    %c15_14 = arith.constant 15 : index
    %c0_15 = arith.constant 0 : index
    %16 = vector.load %arg10[%c15_14, %c0_15] : memref<320x8xbf16, #tpu.memory_space<vmem>>, vector<256x8xbf16>
    %17 = vector.broadcast %13 : vector<256x1xbf16> to vector<256x8xbf16>
    %18 = arith.mulf %16, %17 : vector<256x8xbf16>
    %c16 = arith.constant 16 : index
    %c0_16 = arith.constant 0 : index
    %19 = vector.load %arg10[%c16, %c0_16] : memref<320x8xbf16, #tpu.memory_space<vmem>>, vector<256x8xbf16>
    %c17 = arith.constant 17 : index
    %c0_17 = arith.constant 0 : index
    %20 = vector.load %arg10[%c17, %c0_17] : memref<320x8xbf16, #tpu.memory_space<vmem>>, vector<256x8xbf16>
    %21 = vector.broadcast %14 : vector<256x1xbf16> to vector<256x8xbf16>
    %22 = arith.mulf %20, %21 : vector<256x8xbf16>
    %c31 = arith.constant 31 : index
    %c0_18 = arith.constant 0 : index
    %23 = vector.load %arg10[%c31, %c0_18] : memref<320x8xbf16, #tpu.memory_space<vmem>>, vector<256x8xbf16>
    %24 = vector.broadcast %13 : vector<256x1xbf16> to vector<256x8xbf16>
    %25 = arith.mulf %23, %24 : vector<256x8xbf16>
    %c32_19 = arith.constant 32 : index
    %c0_20 = arith.constant 0 : index
    %26 = vector.load %arg10[%c32_19, %c0_20] : memref<320x8xbf16, #tpu.memory_space<vmem>>, vector<256x8xbf16>
    %c33 = arith.constant 33 : index
    %c0_21 = arith.constant 0 : index
    %27 = vector.load %arg10[%c33, %c0_21] : memref<320x8xbf16, #tpu.memory_space<vmem>>, vector<256x8xbf16>
    %28 = vector.broadcast %14 : vector<256x1xbf16> to vector<256x8xbf16>
    %29 = arith.mulf %27, %28 : vector<256x8xbf16>
    %c47 = arith.constant 47 : index
    %c0_22 = arith.constant 0 : index
    %30 = vector.load %arg10[%c47, %c0_22] : memref<320x8xbf16, #tpu.memory_space<vmem>>, vector<256x8xbf16>
    %31 = vector.broadcast %13 : vector<256x1xbf16> to vector<256x8xbf16>
    %32 = arith.mulf %30, %31 : vector<256x8xbf16>
    %c48 = arith.constant 48 : index
    %c0_23 = arith.constant 0 : index
    %33 = vector.load %arg10[%c48, %c0_23] : memref<320x8xbf16, #tpu.memory_space<vmem>>, vector<256x8xbf16>
    %c49 = arith.constant 49 : index
    %c0_24 = arith.constant 0 : index
    %34 = vector.load %arg10[%c49, %c0_24] : memref<320x8xbf16, #tpu.memory_space<vmem>>, vector<256x8xbf16>
    %35 = vector.broadcast %14 : vector<256x1xbf16> to vector<256x8xbf16>
    %36 = arith.mulf %34, %35 : vector<256x8xbf16>
    %37 = tpu.concatenate %18, %19, %22, %25, %26, %29, %32, %33, %36 in 1 : vector<256x8xbf16>, vector<256x8xbf16>, vector<256x8xbf16>, vector<256x8xbf16>, vector<256x8xbf16>, vector<256x8xbf16>, vector<256x8xbf16>, vector<256x8xbf16>, vector<256x8xbf16> -> vector<256x72xbf16>
    %c0_25 = arith.constant 0 : index
    %c0_26 = arith.constant 0 : index
    %38 = vector.load %arg11[%c0_25, %c0_26] : memref<256x72xbf16, #tpu.memory_space<vmem>>, vector<256x72xbf16>
    tpu.vector_store %arg11[%c0_25, %c0_26], %37 {strides = array<i32>} : memref<256x72xbf16, #tpu.memory_space<vmem>>, vector<256x72xbf16>,
    %c0_27 = arith.constant 0 : index
    %c0_28 = arith.constant 0 : index
    %39 = vector.load %arg11[%c0_27, %c0_28] : memref<256x72xbf16, #tpu.memory_space<vmem>>, vector<256x72xbf16>
    %c0_29 = arith.constant 0 : index
    %c0_30 = arith.constant 0 : index
    %40 = vector.load %arg4[%c0_29, %c0_30] : memref<72x8xbf16, #tpu.memory_space<vmem>>, vector<72x8xbf16>
    %cst_31 = arith.constant dense<0.000000e+00> : vector<256x8xf32>
    %41 = tpu.matmul %39, %40, %cst_31 {dimension_numbers = #tpu.dot_dimension_numbers<[1], [0], [0], [1], [0, 0, 1, 1], [], []>} : vector<256x72xbf16>, vector<72x8xbf16>, vector<256x8xf32> -> vector<256x8xf32>
    %c0_32 = arith.constant 0 : index
    %c0_33 = arith.constant 0 : index
    %42 = vector.load %arg7[%c0_32, %c0_33] : memref<1x8xf32, #tpu.memory_space<vmem>>, vector<1x8xf32>
    %43 = vector.broadcast %42 : vector<1x8xf32> to vector<256x8xf32>
    %44 = arith.addf %41, %43 : vector<256x8xf32>
    %cst_34 = arith.constant 0.000000e+00 : f32
    %45 = vector.broadcast %cst_34 : f32 to vector<256x8xf32>
    %46 = arith.maximumf %44, %45 : vector<256x8xf32>
    %47 = arith.truncf %46 : vector<256x8xf32> to vector<256x8xbf16>
    %c0_35 = arith.constant 0 : index
    %c0_36 = arith.constant 0 : index
    %48 = vector.load %arg5[%c0_35, %c0_36] : memref<8x32xbf16, #tpu.memory_space<vmem>>, vector<8x32xbf16>
    %cst_37 = arith.constant dense<0.000000e+00> : vector<256x32xf32>
    %49 = tpu.matmul %47, %48, %cst_37 {dimension_numbers = #tpu.dot_dimension_numbers<[1], [0], [0], [1], [0, 0, 1, 1], [], []>} : vector<256x8xbf16>, vector<8x32xbf16>, vector<256x32xf32> -> vector<256x32xf32>
    %c0_38 = arith.constant 0 : index
    %c0_39 = arith.constant 0 : index
    %50 = vector.load %arg8[%c0_38, %c0_39] : memref<1x32xf32, #tpu.memory_space<vmem>>, vector<1x32xf32>
    %51 = vector.broadcast %50 : vector<1x32xf32> to vector<256x32xf32>
    %52 = arith.addf %49, %51 : vector<256x32xf32>
    %53 = arith.extf %4 : vector<256x32xbf16> to vector<256x32xf32>
    %54 = arith.addf %52, %53 : vector<256x32xf32>
    %cst_40 = arith.constant 0.000000e+00 : f32
    %55 = vector.broadcast %cst_40 : f32 to vector<256x32xf32>
    %56 = arith.maximumf %54, %55 : vector<256x32xf32>
    %57 = vector.shape_cast %56 : vector<256x32xf32> to vector<1x256x32xf32>
    %58 = arith.truncf %57 : vector<1x256x32xf32> to vector<1x256x32xbf16>
    %c0_41 = arith.constant 0 : index
    %c0_42 = arith.constant 0 : index
    %c0_43 = arith.constant 0 : index
    %59 = vector.load %arg9[%c0_41, %c0_42, %c0_43] : memref<1x256x32xbf16, #tpu.memory_space<vmem>>, vector<1x256x32xbf16>
    tpu.vector_store %arg9[%c0_41, %c0_42, %c0_43], %58 {strides = array<i32>} : memref<1x256x32xbf16, #tpu.memory_space<vmem>>, vector<1x256x32xbf16>,
    return
  }
  func.func @transform_0(%arg0: i32) -> (i32, i32, i32) {
    %c0_i32 = arith.constant 0 : i32
    %c0_i32_0 = arith.constant 0 : i32
    %c0_i32_1 = arith.constant 0 : i32
    return %arg0, %c0_i32, %c0_i32_0 : i32, i32, i32
  }
  func.func @transform_1(%arg0: i32) -> (i32, i32) {
    %c0_i32 = arith.constant 0 : i32
    %c0_i32_0 = arith.constant 0 : i32
    %c0_i32_1 = arith.constant 0 : i32
    return %c0_i32, %c0_i32_0 : i32, i32
  }
  func.func @transform_2(%arg0: i32) -> (i32, i32) {
    %c0_i32 = arith.constant 0 : i32
    %c0_i32_0 = arith.constant 0 : i32
    %c0_i32_1 = arith.constant 0 : i32
    return %c0_i32, %c0_i32_0 : i32, i32
  }
  func.func @transform_3(%arg0: i32) -> (i32, i32) {
    %c0_i32 = arith.constant 0 : i32
    %c0_i32_0 = arith.constant 0 : i32
    %c0_i32_1 = arith.constant 0 : i32
    return %c0_i32, %c0_i32_0 : i32, i32
  }
  func.func @transform_4(%arg0: i32) -> (i32, i32) {
    %c0_i32 = arith.constant 0 : i32
    %c0_i32_0 = arith.constant 0 : i32
    %c0_i32_1 = arith.constant 0 : i32
    return %c0_i32, %c0_i32_0 : i32, i32
  }
  func.func @transform_5(%arg0: i32) -> (i32, i32) {
    %c0_i32 = arith.constant 0 : i32
    %c0_i32_0 = arith.constant 0 : i32
    %c0_i32_1 = arith.constant 0 : i32
    return %c0_i32, %c0_i32_0 : i32, i32
  }
  func.func @transform_6(%arg0: i32) -> (i32, i32) {
    %c0_i32 = arith.constant 0 : i32
    %c0_i32_0 = arith.constant 0 : i32
    %c0_i32_1 = arith.constant 0 : i32
    return %c0_i32, %c0_i32_0 : i32, i32
  }
  func.func @transform_7(%arg0: i32) -> (i32, i32) {
    %c0_i32 = arith.constant 0 : i32
    %c0_i32_0 = arith.constant 0 : i32
    %c0_i32_1 = arith.constant 0 : i32
    return %c0_i32, %c0_i32_0 : i32, i32
  }
  func.func @transform_8(%arg0: i32) -> (i32, i32, i32) {
    %c0_i32 = arith.constant 0 : i32
    %c0_i32_0 = arith.constant 0 : i32
    %c0_i32_1 = arith.constant 0 : i32
    return %arg0, %c0_i32, %c0_i32_0 : i32, i32, i32
  }
}

</mosaic_0001>

<bundles_post_ra>
// kernel: bottleneck_forward.1
= control target key start
LH: loop header
LB: loop body
LE: loop exit
PB: predicated region body
PF: predicated region fallthrough
CT: control target
= control target key end

     0   :  { %13 = vsyncpa [#allocation5], 0  ;;  %s6789_s0 = inlined_call_operand.vmem [shape: bf16[2,256,32], index: 0, kind: input, shape index: {}]   ;;  %s6790_s1 = inlined_call_operand.vmem [shape: bf16[256,2], index: 1, kind: input, shape index: {}]   ;;  %s6791_s2 = inlined_call_operand.vmem [shape: bf16[32,8], index: 2, kind: input, shape index: {}]   ;;  %s6792_s3 = inlined_call_operand.vmem [shape: bf16[72,8], index: 3, kind: input, shape index: {}]   ;;  %s6793_s4 = inlined_call_operand.vmem [shape: bf16[8,32], index: 4, kind: input, shape index: {}]   ;;  %s6794_s5 = inlined_call_operand.vmem [shape: f32[1,8], index: 5, kind: input, shape index: {}]   ;;  %s6795_s6 = inlined_call_operand.vmem [shape: f32[1,8], index: 6, kind: input, shape index: {}]   ;;  %s6796_s7 = inlined_call_operand.vmem [shape: f32[1,32], index: 7, kind: input, shape index: {}]   ;;  %s6797_s8 = inlined_call_operand.hbm [shape: bf16[2,256,32], index: 8, kind: output, shape index: {}]  }
   0x1   :  { %15 = vsyncpa [#allocation5 + $0x1], 0  ;;  %s4856_s27 = smov 0   ;;  %s4858_s28 = smov 0  }
   0x2   :  { %s4860_s29 = smov 0   ;;  %s4862_s30 = smov 0  }
   0x3 LB: > { %s4877_s9 = sadd.s32 4294967295, %s4796_s30   ;;  %s4250_s10 = sadd.s32 4294967294, %s4796_s30   ;;  %s4796_s30 = sphi %s4862_s30, %s6900_s30   ;;  %s4792_s29 = sphi %s4860_s29, %s6899_s29   ;;  %s4788_s28 = sphi %s4858_s28, %s6898_s28   ;;  %s4784_s27 = sphi %s4856_s27, %s6897_s27  }
   0x4   : > { %s4881_s11 = sadd.s32 1, %s4796_s30   ;;  %s201_s12 = sadd.s32 1, %s4792_s29 }
   0x5   : > { %s198_s13 = ssub.s32 %s4796_s30, %s4881_s11  ;;  %p211_p0 = scmp.ne.s32.totalorder %s4792_s29, %s4788_s28 }
   0x6   : > { %p199_p1 = scmp.eq.s32.totalorder %s198_s13, 0  ;;  %p212_p2 = scmp.eq.s32.totalorder %s4877_s9, 1 }
   0x7   : > { %p217_p3 = scmp.ne.s32.totalorder %s4788_s28, %s4784_s27  ;;  %p218_p4 = scmp.eq.s32.totalorder %s4250_s10, 1 }
   0x8   : > { %s4892_s14 = scalar_select %p199_p1, %s4792_s29, %s201_s12  }
   0x9   : > { %p4894_p5 = por %p212_p2, %p211_p0  ;;  %p4898_p6 = por %p218_p4, %p217_p3 }
   0xa   : > { %p4253_p7 = scmp.ge.s32.totalorder %s4796_s30, 1  ;;  %p265_p8 = scmp.lt.s32.totalorder %s4796_s30, 3 }
   0xc   : > { %p266_p9 = pnand %p4253_p7, %p265_p8 }
   0xe   : > { %269 = sbr.rel (%p266_p9) target bundleno = 1122 (0x462), region = 52 }
  0x15   : > { %v713_v0 = vld [vmem:[%s6790_s1] sm:$0xf]  ;;  %v4798_v1 = vmov 1   ;;  %v4799_v2 = vmov 0   ;;  %p299_p10 = scmp.lt.s32.totalorder %s4877_s9, 1  ;;  %v4678_v6 = vld [vmem:[%s6791_s2 + $0x8] sm:$0xff]   ;;  %v786_v54 = vlaneseq }
  0x16   : > { %4659 = vset.pattern.permute.xlu1 %v4798_v1  ;;  %4660 = vset.pattern.permute.xlu0 %v4799_v2  ;;  %v4677_v3 = vld [vmem:[%s6791_s2] sm:$0xff]   ;;  %v4919_v5 = vld [vmem:[%s6790_s1 + $0xc] sm:$0xf]  ;;  %v718_v7 = vld [vmem:[%s6790_s1 + $0x14] sm:$0xf]  ;;  %vm455_vm0 = vcmask 261120  }
  0x17   : > { %1422 = vperm.xlu1 %4659, %v713_v0   ;;  %780 = vperm.xlu0 %4660, %v713_v0   ;;  %v714_v4 = vld [vmem:[%s6790_s1 + $0x4] sm:$0xf]  ;;  %s300_s10 = scalar_select %p299_p10, %s4877_s9, 1  ;;  %v719_v14 = vld [vmem:[%s6790_s1 + $0x18] sm:$0xf]  ;;  %vm311_vm1 = vcmask 64512  }
  0x18   : > { %4490 = vmatprep.subr.bf16.mxu0 %v4677_v3  ;;  %4602 = vmatprep.subr.bf16.mxu1 %v4677_v3  ;;  %v722_v19 = vld [vmem:[%s6790_s1 + $0x24] sm:$0xf]  ;;  %v715_v20 = vld [vmem:[%s6790_s1 + $0x8] sm:$0xf]  ;;  %v717_v22 = vld [vmem:[%s6790_s1 + $0x10] sm:$0xf] }
  0x19   : > { %4491 = vmatpush3.bf16.msra.mxu0 %v4677_v3  ;;  %4604 = vmatpush3.bf16.msra.mxu1 %v4677_v3  ;;  %s4400_s12 = sshll.u32 %s300_s10, 7  ;;  %v723_v21 = vld [vmem:[%s6790_s1 + $0x28] sm:$0xf]  ;;  %v726_v26 = vld [vmem:[%s6790_s1 + $0x34] sm:$0xf]  ;;  %312 = vst.msk [vmem:[#allocation2 + $0x8] sm:$0xff] %vm311_vm1, %v4799_v2 }
  0x1a   : > { %4492 = vmatprep.subr.bf16.mxu0 %v4678_v6  ;;  %4603 = vmatprep.subr.bf16.mxu1 %v4678_v6  ;;  %s4932_s20 = scalar_lea.vmem %s6789_s0, %s4400_s12  ;;  %v727_v28 = vld [vmem:[%s6790_s1 + $0x38] sm:$0xf]  ;;  %v721_v31 = vld [vmem:[%s6790_s1 + $0x20] sm:$0xf]  ;;  %v730_v32 = vld [vmem:[%s6790_s1 + $0x44] sm:$0xf] }
  0x1b   : > { %1433 = vperm.xlu1 %4659, %v714_v4   ;;  %816 = vperm.xlu0 %4660, %v4919_v5   ;;  %v320_v8 = vld [vmem:[%s4932_s20] sm:$0xff]   ;;  %v322_v10 = vld [vmem:[%s4932_s20 + $0x8] sm:$0xff]   ;;  %v324_v12 = vld [vmem:[%s4932_s20 + $0x10] sm:$0xff]   ;;  %313 = vst.msk [vmem:[#allocation2 + $0x90] sm:$0xff] %vm311_vm1, %v4799_v2  ;;  %vm305_vm2 = vcmask 64519   ;;  %v787_v56 = vshrl.u32 %v786_v54, 7 }
  0x1c   : > { %v336_v9 = vld [vmem:[%s4932_s20 + $0x40] sm:$0xff]   ;;  %v338_v11 = vld [vmem:[%s4932_s20 + $0x48] sm:$0xff]   ;;  %v340_v13 = vld [vmem:[%s4932_s20 + $0x50] sm:$0xff]   ;;  %4494 = vmatprep.mubr.msk.bf16.mxu0 %vm455_vm0, %v320_v8  ;;  %vm306_vm3 = vsmask.f32 7966  ;;  %s4801_s10 = smov 16  }
  0x1d   : > { %4493 = vmatpush3.bf16.msra.mxu0 %v4678_v6  ;;  %4605 = vmatpush3.bf16.msra.mxu1 %v4678_v6  ;;  %v326_v15 = vld [vmem:[%s4932_s20 + $0x18] sm:$0xff]   ;;  %v328_v17 = vld [vmem:[%s4932_s20 + $0x20] sm:$0xff]   ;;  %v330_v23 = vld [vmem:[%s4932_s20 + $0x28] sm:$0xff]   ;;  %v4800_v52 = vmov 839922192   ;;  %s4802_s17 = smov 8  }
  0x1e   : > { %4510 = vmatprep.mubr.msk.bf16.mxu1 %vm455_vm0, %v336_v9  ;;  %v342_v16 = vld [vmem:[%s4932_s20 + $0x58] sm:$0xff]   ;;  %v344_v18 = vld [vmem:[%s4932_s20 + $0x60] sm:$0xff]   ;;  %v346_v24 = vld [vmem:[%s4932_s20 + $0x68] sm:$0xff]   ;;  %v784_v53 = vunpack.c.l.s4 %v4800_v52  ;;  %s4803_s18 = smov 24   ;;  %vm1242_vm5 = vsmask.f32 7424 }
  0x1f   : > { %1477 = vperm.xlu1 %4659, %v718_v7   ;;  %840 = vperm.xlu0 %4660, %v718_v7   ;;  %v332_v25 = vld [vmem:[%s4932_s20 + $0x30] sm:$0xff]   ;;  %v334_v29 = vld [vmem:[%s4932_s20 + $0x38] sm:$0xff]   ;;  %v731_v33 = vld [vmem:[%s6790_s1 + $0x48] sm:$0xf]  ;;  %s4804_s22 = smov 48   ;;  %vm2281_vm7 = vcmask 1046528  }
  0x20   : > { %4495 = vmatmul.mubr.msk.bf16.vlgmr.msra.gmra.mrb[0].mxu0 %vm455_vm0, %v322_v10  ;;  %4511 = vmatmul.mubr.msk.bf16.vlgmr.msra.gmra.mrb[0].mxu1 %vm455_vm0, %v338_v11  ;;  %v348_v27 = vld [vmem:[%s4932_s20 + $0x70] sm:$0xff]   ;;  %v350_v30 = vld [vmem:[%s4932_s20 + $0x78] sm:$0xff]   ;;  %v738_v37 = vld [vmem:[%s6790_s1 + $0x64] sm:$0xf]  ;;  %v785_v55 = vunpack.c.0.s8 %v784_v53  ;;  %vm315_vm6 = vsmask.f32 256 }
  0x21   : > { %4498 = vmatprep.mubr.msk.bf16.mxu0 %vm455_vm0, %v324_v12  ;;  %4514 = vmatprep.mubr.msk.bf16.mxu1 %vm455_vm0, %v340_v13  ;;  %v720_v34 = vld [vmem:[%s6790_s1 + $0x1c] sm:$0xf]  ;;  %v734_v35 = vld [vmem:[%s6790_s1 + $0x54] sm:$0xf]  ;;  %v735_v36 = vld [vmem:[%s6790_s1 + $0x58] sm:$0xf] }
  0x22   : > { %v5019_v38 = vld [vmem:[%s6790_s1 + $0x68] sm:$0xf]  ;;  %v725_v39 = vld [vmem:[%s6790_s1 + $0x30] sm:$0xf]  ;;  %v5028_v40 = vld [vmem:[%s6790_s1 + $0x74] sm:$0xf]  ;;  %v5069_v57 = vsub.s32 %v785_v55, %v787_v56 }
  0x23   : > { %4661 = vset.pattern.permute.xlu1 %v4799_v2  ;;  %852 = vperm.xlu0 %4660, %v719_v14   ;;  %v724_v41 = vld [vmem:[%s6790_s1 + $0x2c] sm:$0xf]  ;;  %v729_v42 = vld [vmem:[%s6790_s1 + $0x40] sm:$0xf]  ;;  %vm307_vm4 = vmand %vm305_vm2, %vm306_vm3  ;;  %s4805_s23 = smov 56   ;;  %s4806_s24 = smov 40  }
  0x24   : > { %792 = vperm.xlu1 %4661, %v714_v4   ;;  %v308_v43 = vld [vmem:[#allocation2] sm:$0x80]  ;;  %v728_v45 = vld [vmem:[%s6790_s1 + $0x3c] sm:$0xf]  ;;  %v732_v46 = vld [vmem:[%s6790_s1 + $0x4c] sm:$0xf] }
  0x25   : > { %v309_v44 = vsel %vm307_vm4, 0, %v308_v43  ;;  %v736_v47 = vld [vmem:[%s6790_s1 + $0x5c] sm:$0xf]  ;;  %v740_v48 = vld [vmem:[%s6790_s1 + $0x6c] sm:$0xf]  ;;  %s4807_s25 = smov 64  }
  0x26   : > { %310 = vst [vmem:[#allocation2] sm:$0x80] %v309_v44  ;;  %v733_v49 = vld [vmem:[%s6790_s1 + $0x50] sm:$0xf]  ;;  %v5061_v50 = vld [vmem:[%s6790_s1 + $0x7c] sm:$0xf] }
  0x27   : > { %888 = vperm.xlu0 %4660, %v722_v19   ;;  %v737_v51 = vld [vmem:[%s6790_s1 + $0x60] sm:$0xf]  ;;  %v741_v7 = vld [vmem:[%s6790_s1 + $0x70] sm:$0xf]  ;;  %v5088_v10 = vld [vmem:[#allocation2 + $0x8] sm:$0xff]  ;;  %s4808_s26 = smov 32  }
  0x28   : > { %804 = vperm.xlu1 %4661, %v715_v20   ;;  %4499 = vmatmul.mubr.msk.bf16.gmra.mrb[4].mxu0 %vm455_vm0, %v326_v15  ;;  %v5185_v53 = vld [vmem:[%s6794_s5] ss:$0 sm:$0xff]  ;;  %vm3484_vm8 = vcmask 1043456   ;;  %vm314_vm9 = vcmask 57344   ;;  %vm2985_vm11 = vcmask 130048   ;;  %vm3020_vm12 = vcmask 195584  }
  0x29   : > { %4515 = vmatmul.mubr.msk.bf16.gmra.mrb[4].mxu1 %vm455_vm0, %v342_v16  ;;  %4502 = vmatprep.mubr.msk.bf16.mxu0 %vm455_vm0, %v328_v17  ;;  %vm316_vm10 = vmand %vm314_vm9, %vm315_vm6  ;;  %vm3089_vm13 = vcmask 326656   ;;  %vm3124_vm14 = vcmask 392192   ;;  %vm3159_vm15 = vcmask 457728   ;;  %vm3194_vm2 = vcmask 523264  }
  0x2a   : > { %4518 = vmatprep.mubr.msk.bf16.mxu1 %vm455_vm0, %v344_v18  ;;  %vm3360_vm3 = vcmask 588800  }
  0x2b   : > { %900 = vperm.xlu0 %4660, %v723_v21  }
  0x2c   : > { %828 = vperm.xlu1 %4661, %v717_v22  }
  0x2f   : > { %936 = vperm.xlu0 %4660, %v726_v26  }
  0x30   : > { %4662 = vset.pattern.permute.xlu1 %v4798_v1  ;;  %4503 = vmatmul.mubr.msk.bf16.gmra.mrb[8].mxu0 %vm455_vm0, %v330_v23 }
  0x31   : > { %4519 = vmatmul.mubr.msk.bf16.gmra.mrb[8].mxu1 %vm455_vm0, %v346_v24  ;;  %1488 = vperm.xlu1 %4662, %v719_v14  }
  0x32   : > { %4506 = vmatprep.mubr.msk.bf16.mxu0 %vm455_vm0, %v332_v25  ;;  %4522 = vmatprep.mubr.msk.bf16.mxu1 %vm455_vm0, %v348_v27 }
  0x33   : > { %948 = vperm.xlu0 %4660, %v727_v28  }
  0x35   : > { %1510 = vperm.xlu1 %4662, %v721_v31  }
  0x37   : > { %984 = vperm.xlu0 %4660, %v730_v32  }
  0x38   : > { %4507 = vmatmul.mubr.msk.bf16.gmra.mrb[12].mxu0 %vm455_vm0, %v334_v29 }
  0x39   : > { %4523 = vmatmul.mubr.msk.bf16.gmra.mrb[12].mxu1 %vm455_vm0, %v350_v30  ;;  %1521 = vperm.xlu1 %4662, %v722_v19   ;;  %v743_v19 = vld [vmem:[%s6790_s1 + $0x78] sm:$0xf]  ;;  %v2014_v30 = vld [vmem:[#allocation2 + $0x8] sm:$0x80] }
  0x3b   : > { %996 = vperm.xlu0 %4660, %v731_v33  }
  0x3d   : > { %4663 = vset.pattern.permute.xlu1 %v4799_v2 }
  0x3e   : > { %864 = vperm.xlu1 %4663, %v720_v34  }
  0x3f   : > { %1032 = vperm.xlu0 %4660, %v734_v35  }
  0x42   : > { %876 = vperm.xlu1 %4663, %v721_v31  }
  0x43   : > { %1044 = vperm.xlu0 %4660, %v735_v36  }
  0x46   : > { %4664 = vset.pattern.permute.xlu1 %v4798_v1 }
  0x47   : > { %1080 = vperm.xlu0 %4660, %v738_v37   ;;  %1532 = vperm.xlu1 %4664, %v723_v21  }
  0x4b   : > { %1092 = vperm.xlu0 %4660, %v5019_v38   ;;  %1554 = vperm.xlu1 %4664, %v725_v39  }
  0x4f   : > { %1128 = vperm.xlu0 %4660, %v5028_v40   ;;  %1565 = vperm.xlu1 %4664, %v726_v26   ;;  %v2104_v26 = vshll.u32 %v5088_v10, 16 }
  0x53   : > { %4674 = vset.pattern.permute.xlu0 %v4798_v1  ;;  %4665 = vset.pattern.permute.xlu1 %v4799_v2 }
  0x54   : > { %1444 = vperm.xlu0 %4674, %v715_v20   ;;  %912 = vperm.xlu1 %4665, %v724_v41  }
  0x58   : > { %1455 = vperm.xlu0 %4674, %v4919_v5   ;;  %924 = vperm.xlu1 %4665, %v725_v39  }
  0x5c   : > { %1466 = vperm.xlu0 %4674, %v717_v22   ;;  %4666 = vset.pattern.permute.xlu1 %v4798_v1 }
  0x5d   : > { %1576 = vperm.xlu1 %4666, %v727_v28  }
  0x60   : > { %1499 = vperm.xlu0 %4674, %v720_v34  }
  0x61   : > { %1598 = vperm.xlu1 %4666, %v729_v42  }
  0x64   : > { %1543 = vperm.xlu0 %4674, %v724_v41  }
  0x65   : > { %1609 = vperm.xlu1 %4666, %v730_v32  }
  0x68   : > { %1587 = vperm.xlu0 %4674, %v728_v45  }
  0x69   : > { %4667 = vset.pattern.permute.xlu1 %v4799_v2 }
  0x6a   : > { %960 = vperm.xlu1 %4667, %v728_v45  }
  0x6c   : > { %1631 = vperm.xlu0 %4674, %v732_v46  }
  0x6e   : > { %972 = vperm.xlu1 %4667, %v729_v42  }
  0x70   : > { %1675 = vperm.xlu0 %4674, %v736_v47  }
  0x72   : > { %4668 = vset.pattern.permute.xlu1 %v4798_v1 }
  0x73   : > { %1620 = vperm.xlu1 %4668, %v731_v33  }
  0x74   : > { %1719 = vperm.xlu0 %4674, %v740_v48  }
  0x77   : > { %1642 = vperm.xlu1 %4668, %v733_v49  }
  0x78   : > { %1763 = vperm.xlu0 %4674, %v5061_v50  }
  0x7b   : > { %1653 = vperm.xlu1 %4668, %v734_v35  }
  0x7f   : > { %4669 = vset.pattern.permute.xlu1 %v4799_v2 }
  0x80   : > { %1008 = vperm.xlu1 %4669, %v732_v46  }
  0x84   : > { %1020 = vperm.xlu1 %4669, %v733_v49  }
  0x88   : > { %4670 = vset.pattern.permute.xlu1 %v4798_v1 }
  0x89   : > { %1664 = vperm.xlu1 %4670, %v735_v36  }
  0x8d   : > { %1686 = vperm.xlu1 %4670, %v737_v51  }
  0x91   : > { %1697 = vperm.xlu1 %4670, %v738_v37  }
  0x95   : > { %4671 = vset.pattern.permute.xlu1 %v4799_v2 }
  0x96   : > { %v1423_v58 = vpop.permute.xlu1 %1422  ;;  %1056 = vperm.xlu1 %4671, %v736_v47   ;;  %v781_v59 = vpop.permute.xlu0 %780 }
  0x97   : > { %v1431_v60 = vrot.slane %v1423_v58, %v5069_v57  ;;  %v789_v20 = vrot.slane %v781_v59, %v5069_v57 }
  0x9a   : > { %v1434_v61 = vpop.permute.xlu1 %1433  ;;  %1068 = vperm.xlu1 %4671, %v737_v51   ;;  %v5076_v3 = vpop.permute.xlu0 %816 }
  0x9b   : > { %v1442_v62 = vrot.slane %v1434_v61, %v5069_v57  ;;  %v825_v51 = vrot.slane %v5076_v3, %v5069_v57 }
  0x9d   : > { %v4308_v63 = vcombine.low %v1431_v60, %v1442_v62 }
  0x9e   : > { %v5074_v0 = vpop.permute.xlu1 %1477  ;;  %4672 = vset.pattern.permute.xlu1 %v4798_v1  ;;  %v5090_v11 = vpop.permute.xlu0 %840 }
  0x9f   : > { %v1854_v4 = vshrl.u32 %v4308_v63, 16  ;;  %v1857_v5 = vshll.u32 %v4308_v63, 16  ;;  %1708 = vperm.xlu1 %4672, %v5019_v38  }
  0xa1   : > { %v5080_v6 = vrot.slane %v1854_v4, 7 }
  0xa2   : > { %v5101_v15 = vpop.permute.xlu0 %852 }
  0xa3   : > { %v5086_v8 = vor.u32 %v1857_v5, %v5080_v6  ;;  %v793_v9 = vpop.permute.xlu1 %792  ;;  %1730 = vperm.xlu1 %4672, %v741_v7  }
  0xa4   : > { %v801_v21 = vrot.slane %v793_v9, %v5069_v57 }
  0xa5   : > { %v1997_v12 = vmul.bf16 %v5086_v8, %v5088_v10 }
  0xa6   : > { %v5106_v17 = vpop.permute.xlu0 %888  ;;  %v5120_v24 = vcombine.low %v789_v20, %v801_v21 }
  0xa7   : > { %v5094_v13 = vpop.permute.xlu1 %804  ;;  %v5096_v14 = vrot.slane %v1997_v12, 1  ;;  %1741 = vperm.xlu1 %4672, %v5028_v40  }
  0xa8   : > { %v1244_v27 = vshll.u32 %v5120_v24, 16  ;;  %v813_v52 = vrot.slane %v5094_v13, %v5069_v57 }
  0xa9   : > { %2315 = vrot.lane.b32.xlu0 %v5096_v14, %s4801_s10 }
  0xaa   : > { %v5118_v23 = vpop.permute.xlu0 %900  ;;  %v5134_v31 = vrot.slane %v1244_v27, 1  ;;  %v5193_v63 = vcombine.low %v813_v52, %v825_v51 }
  0xab   : > { %v5103_v16 = vpop.permute.xlu1 %828  ;;  %4673 = vset.pattern.permute.xlu1 %v4799_v2 }
  0xac   : > { %1104 = vperm.xlu1 %4673, %v740_v48   ;;  %6824 = vst [vmem:[#allocation7_spill] sm:$0xff] %v5134_v31 }
  0xae   : > { %v5127_v28 = vpop.permute.xlu0 %936 }
  0xb0   : > { %1116 = vperm.xlu1 %4673, %v741_v7   ;;  %v5108_v18 = vpop.permute.xlu1 %1488 }
  0xb2   : > { %v5138_v33 = vpop.permute.xlu0 %948 }
  0xb4   : > { %4675 = vset.pattern.permute.xlu1 %v4798_v1  ;;  %v5116_v22 = vpop.permute.xlu1 %1510  ;;  %v5132_v1 = vrot.slane %v2104_v26, 1 }
  0xb5   : > { %1752 = vperm.xlu1 %4675, %v743_v19  }
  0xb6   : > { %v5146_v35 = vpop.permute.xlu0 %984 }
  0xb8   : > { %v5122_v25 = vpop.permute.xlu1 %1521 }
  0xb9   : > { %4676 = vset.pattern.permute.xlu1 %v4799_v2  ;;  %v2016_v2 = vmul.bf16 %v2014_v30, %v5134_v31 }
  0xba   : > { %1140 = vperm.xlu1 %4676, %v743_v19   ;;  %v5150_v37 = vpop.permute.xlu0 %996  ;;  %v1247_v19 = vshrl.u32 %v5120_v24, 16  ;;  %v837_v24 = vrot.slane %v5103_v16, %v5069_v57 }
  0xbd   : > { %v5129_v29 = vpop.permute.xlu1 %864 }
  0xbe   : > { %1152 = vperm.xlu1 %4676, %v5061_v50   ;;  %v5156_v40 = vpop.permute.xlu0 %1032 }
  0xc1   : > { %v5136_v32 = vpop.permute.xlu1 %876 }
  0xc2   : > { %2230 = vrot.lane.b32.xlu1 %v5132_v1, %s4802_s17  ;;  %v5160_v42 = vpop.permute.xlu0 %1044 }
  0xc6   : > { %v5143_v34 = vpop.permute.xlu1 %1532  ;;  %2366 = vrot.lane.b32.xlu1 %v2016_v2, %s4803_s18  ;;  %v5164_v44 = vpop.permute.xlu0 %1080 }
  0xca   : > { %v5148_v36 = vpop.permute.xlu1 %1554  ;;  %v5170_v47 = vpop.permute.xlu0 %1092 }
  0xcb   : > { %6825 = vst [vmem:[#allocation8_spill] sm:$0xff] %v5170_v47 }
  0xce   : > { %v5152_v38 = vpop.permute.xlu1 %1565  ;;  %v5174_v49 = vpop.permute.xlu0 %1128 }
  0xcf   : > { %6826 = vst [vmem:[#allocation9_spill] sm:$0xff] %v5174_v49 }
  0xd3   : > { %v5154_v39 = vpop.permute.xlu1 %912  ;;  %v5187_v54 = vpop.permute.xlu0 %1444 }
  0xd7   : > { %v5158_v41 = vpop.permute.xlu1 %924 }
  0xdc   : > { %v5162_v43 = vpop.permute.xlu1 %1576 }
  0xe0   : > { %v5166_v45 = vpop.permute.xlu1 %1598 }
  0xe4   : > { %v5168_v46 = vpop.permute.xlu1 %1609 }
  0xe9   : > { %v5172_v48 = vpop.permute.xlu1 %960 }
  0xed   : > { %v5176_v50 = vpop.permute.xlu1 %972 }
  0xf2   : > { %v5189_v55 = vpop.permute.xlu1 %1620 }
  0xf3   : > { %6827 = vst [vmem:[#allocation10_spill] sm:$0xff] %v5189_v55  ;;  %v4496_v56 = vpop.f32.mrb[0].mxu0  ;;  %v4512_v58 = vpop.f32.mrb[0].mxu1 }
  0xf4   : > { %v547_v59 = vadd.f32 %v4496_v56, %v5185_v53  ;;  %v611_v60 = vadd.f32 %v4512_v58, %v5185_v53  ;;  %v538_v61 = vpop.f32.mrb[1].mxu0  ;;  %v602_v62 = vpop.f32.mrb[1].mxu1  ;;  %v849_v56 = vrot.slane %v5090_v11, %v5069_v57  ;;  %v1251_v58 = vshll.u32 %v5193_v63, 16 }
  0xf5   : > { %v603_v3 = vadd.f32 %v5185_v53, %v602_v62  ;;  %v4497_v4 = vpop.f32.mrb[2].mxu0  ;;  %v4513_v5 = vpop.f32.mrb[2].mxu1  ;;  %v539_v7 = vadd.f32 %v5185_v53, %v538_v61 }
  0xf6   : > { %v550_v9 = vadd.f32 %v4497_v4, %v5185_v53  ;;  %v541_v12 = vpop.f32.mrb[3].mxu0  ;;  %v605_v13 = vpop.f32.mrb[3].mxu1  ;;  %v667_v20 = vmax.f32 %v547_v59, 0.0  ;;  %v683_v21 = vmax.f32 %v611_v60, 0.0  ;;  %v614_v26 = vadd.f32 %v4513_v5, %v5185_v53 }
  0xf7   : > { %v5200_v27 = vpop.permute.xlu1 %1642  ;;  %v681_v30 = vmax.f32 %v603_v3, 0.0  ;;  %v542_v51 = vadd.f32 %v5185_v53, %v541_v12  ;;  %v606_v52 = vadd.f32 %v5185_v53, %v605_v13  ;;  %v1456_v59 = vpop.permute.xlu0 %1455  ;;  %v665_v61 = vmax.f32 %v539_v7, 0.0 }
  0xf8   : > { %6828 = vst [vmem:[#allocation11_spill] sm:$0xff] %v5200_v27  ;;  %v668_v2 = vmax.f32 %v550_v9, 0.0  ;;  %v684_v60 = vmax.f32 %v614_v26, 0.0  ;;  %v1249_v3 = vor.u32 %v1247_v19, %v5134_v31  ;;  %v1453_v9 = vrot.slane %v5187_v54, %v5069_v57 }
  0xf9   : > { %v666_v4 = vmax.f32 %v542_v51, 0.0  ;;  %v682_v5 = vmax.f32 %v606_v52, 0.0  ;;  %v1464_v27 = vrot.slane %v1456_v59, %v5069_v57  ;;  %v1255_v19 = vshrl.u32 %v5193_v63, 16 }
  0xfa   : > { %v698_v62 = vpack.c.bf16 %v668_v2, %v667_v20  ;;  %v706_v12 = vpack.c.bf16 %v684_v60, %v683_v21  ;;  %v1253_v2 = vrot.slane %v1251_v58, 1  ;;  %v5221_v59 = vcombine.low %v837_v24, %v849_v56 }
  0xfb   : > { %v5212_v13 = vpop.permute.xlu1 %1653  ;;  %v4500_v11 = vpop.f32.mrb[4].mxu0  ;;  %v697_v16 = vpack.c.bf16 %v666_v4, %v665_v61  ;;  %v705_v55 = vpack.c.bf16 %v682_v5, %v681_v30  ;;  %v5231_v24 = vcombine.low %v1453_v9, %v1464_v27 }
  0xfc   : > { %6829 = vst [vmem:[#allocation12_spill] sm:$0xff] %v5212_v13  ;;  %746 = vst.msk [vmem:[#allocation2 + $0x18] sm:$0xff] %vm311_vm1, %v698_v62  ;;  %v563_v7 = vadd.f32 %v4500_v11, %v5185_v53  ;;  %v4516_v20 = vpop.f32.mrb[4].mxu1  ;;  %v554_v26 = vpop.f32.mrb[5].mxu0 }
  0xfd   : > { %754 = vst.msk [vmem:[#allocation2 + $0x58] sm:$0xff] %vm311_vm1, %v706_v12  ;;  %v627_v54 = vadd.f32 %v4516_v20, %v5185_v53  ;;  %v555_v21 = vadd.f32 %v5185_v53, %v554_v26  ;;  %v618_v51 = vpop.f32.mrb[5].mxu1  ;;  %v4501_v52 = vpop.f32.mrb[6].mxu0  ;;  %745 = vst.msk [vmem:[#allocation2 + $0x10] sm:$0xff] %vm311_vm1, %v697_v16 }
  0xfe   : > { %753 = vst.msk [vmem:[#allocation2 + $0x50] sm:$0xff] %vm311_vm1, %v705_v55  ;;  %v671_v30 = vmax.f32 %v563_v7, 0.0  ;;  %v619_v60 = vadd.f32 %v5185_v53, %v618_v51  ;;  %v566_v58 = vadd.f32 %v4501_v52, %v5185_v53  ;;  %v4517_v63 = vpop.f32.mrb[6].mxu1  ;;  %v557_v61 = vpop.f32.mrb[7].mxu0  ;;  %v1259_v51 = vshll.u32 %v5221_v59, 16 }
  0xff   : > { %v687_v62 = vmax.f32 %v627_v54, 0.0  ;;  %v669_v4 = vmax.f32 %v555_v21, 0.0  ;;  %v630_v5 = vadd.f32 %v4517_v63, %v5185_v53  ;;  %v558_v12 = vadd.f32 %v5185_v53, %v557_v61  ;;  %v621_v11 = vpop.f32.mrb[7].mxu1  ;;  %v5229_v56 = vpop.permute.xlu1 %1008 }
 0x100   : > { %v672_v16 = vmax.f32 %v566_v58, 0.0  ;;  %v685_v55 = vmax.f32 %v619_v60, 0.0  ;;  %v622_v26 = vadd.f32 %v5185_v53, %v621_v11  ;;  %v861_v54 = vrot.slane %v5101_v15, %v5069_v57  ;;  %v1467_v52 = vpop.permute.xlu0 %1466 }
 0x101   : > { %v688_v7 = vmax.f32 %v630_v5, 0.0  ;;  %v670_v20 = vmax.f32 %v558_v12, 0.0  ;;  %v1257_v21 = vor.u32 %v1255_v19, %v1253_v2  ;;  %v5240_v60 = vsel %vm1242_vm5, %v1249_v3, %v1253_v2 }
 0x102   : > { %v700_v63 = vpack.c.bf16 %v672_v16, %v671_v30  ;;  %v686_v49 = vmax.f32 %v622_v26, 0.0  ;;  %6831 = vst [vmem:[#allocation14_spill] sm:$0xff] %v5240_v60  ;;  %v873_v5 = vrot.slane %v5129_v29, %v5069_v57  ;;  %v1861_v15 = vshrl.u32 %v5231_v24, 16 }
 0x103   : > { %v708_v61 = vpack.c.bf16 %v688_v7, %v687_v62  ;;  %v699_v13 = vpack.c.bf16 %v670_v20, %v669_v4  ;;  %v5237_v27 = vpop.permute.xlu1 %1020  ;;  %v4504_v9 = vpop.f32.mrb[8].mxu0  ;;  %v5242_v58 = vld [vmem:[#allocation2 + $0x18] sm:$0xff]  ;;  %v1486_v3 = vrot.slane %v5074_v0, %v5069_v57  ;;  %v5257_v7 = vrot.slane %v1259_v51, 1 }
 0x104   : > { %6830 = vst [vmem:[#allocation13_spill] sm:$0xff] %v5237_v27  ;;  %748 = vst.msk [vmem:[#allocation2 + $0x28] sm:$0xff] %vm311_vm1, %v700_v63  ;;  %v579_v19 = vadd.f32 %v4504_v9, %v5185_v53  ;;  %v4520_v30 = vpop.f32.mrb[8].mxu1  ;;  %v570_v62 = vpop.f32.mrb[9].mxu0  ;;  %v2069_v4 = vmul.bf16 %v5242_v58, %v5240_v60  ;;  %v707_v29 = vpack.c.bf16 %v686_v49, %v685_v55 }
 0x105   : > { %756 = vst.msk [vmem:[#allocation2 + $0x68] sm:$0xff] %vm311_vm1, %v708_v61  ;;  %747 = vst.msk [vmem:[#allocation2 + $0x20] sm:$0xff] %vm311_vm1, %v699_v13  ;;  %v643_v12 = vadd.f32 %v4520_v30, %v5185_v53  ;;  %v634_v11 = vpop.f32.mrb[9].mxu1  ;;  %v4505_v16 = vpop.f32.mrb[10].mxu0  ;;  %v1475_v20 = vrot.slane %v1467_v52, %v5069_v57  ;;  %v571_v26 = vadd.f32 %v5185_v53, %v570_v62  ;;  %v5268_v30 = vrot.slane %v1861_v15, 7 }
 0x106   : > { %v635_v63 = vadd.f32 %v5185_v53, %v634_v11  ;;  %v4521_v0 = vpop.f32.mrb[10].mxu1  ;;  %2664 = vrot.lane.b32.xlu0 %v2069_v4, %s4804_s22  ;;  %v573_v61 = vpop.f32.mrb[11].mxu0  ;;  %755 = vst.msk [vmem:[#allocation2 + $0x60] sm:$0xff] %vm311_vm1, %v707_v29  ;;  %v675_v49 = vmax.f32 %v579_v19, 0.0  ;;  %v582_v55 = vadd.f32 %v4505_v16, %v5185_v53  ;;  %v5266_v52 = vcombine.low %v861_v54, %v873_v5  ;;  %v2066_v11 = vld [vmem:[#allocation2 + $0x10] sm:$0x80] }
 0x107   : > { %v691_v13 = vmax.f32 %v643_v12, 0.0  ;;  %v646_v51 = vadd.f32 %v4521_v0, %v5185_v53  ;;  %v637_v9 = vpop.f32.mrb[11].mxu1  ;;  %v1864_v62 = vshll.u32 %v5231_v24, 16  ;;  %v5273_v4 = vsel %vm1242_vm5, %v1257_v21, %v5257_v7 }
 0x108   : > { %v689_v2 = vmax.f32 %v635_v63, 0.0  ;;  %v676_v29 = vmax.f32 %v582_v55, 0.0  ;;  %v638_v12 = vadd.f32 %v5185_v53, %v637_v9  ;;  %v5276_v16 = vcombine.low %v1475_v20, %v1486_v3  ;;  %v5281_v15 = vpop.permute.xlu1 %1664  ;;  %v5284_v63 = vld [vmem:[#allocation2 + $0x10] sm:$0xff] }
 0x109   : > { %v692_v19 = vmax.f32 %v646_v51, 0.0  ;;  %v673_v0 = vmax.f32 %v571_v26, 0.0  ;;  %v2018_v54 = vmul.bf16 %v5242_v58, %v5273_v4  ;;  %v574_v5 = vadd.f32 %v5185_v53, %v573_v61  ;;  %6832 = vst [vmem:[#allocation15_spill] sm:$0xff] %v5281_v15 }
 0x10a   : > { %v702_v24 = vpack.c.bf16 %v676_v29, %v675_v49  ;;  %v690_v21 = vmax.f32 %v638_v12, 0.0  ;;  %v2068_v47 = vmul.bf16 %v2066_v11, %v5134_v31  ;;  %v897_v3 = vrot.slane %v5106_v17, %v5069_v57 }
 0x10b   : > { %v710_v27 = vpack.c.bf16 %v692_v19, %v691_v13  ;;  %v4508_v55 = vpop.f32.mrb[12].mxu0  ;;  %v1267_v20 = vshll.u32 %v5266_v52, 16  ;;  %v885_v26 = vrot.slane %v5136_v32, %v5069_v57  ;;  %2370 = vrot.lane.b32.xlu1 %v2018_v54, %s4803_s18  ;;  %v674_v61 = vmax.f32 %v574_v5, 0.0 }
 0x10c   : > { %v4524_v51 = vpop.f32.mrb[12].mxu1  ;;  %v586_v49 = vpop.f32.mrb[13].mxu0  ;;  %v1866_v13 = vor.u32 %v1864_v62, %v5268_v30  ;;  %750 = vst.msk [vmem:[#allocation2 + $0x38] sm:$0xff] %vm311_vm1, %v702_v24  ;;  %v709_v9 = vpack.c.bf16 %v690_v21, %v689_v2  ;;  %2662 = vrot.lane.b32.xlu0 %v2068_v47, %s4804_s22  ;;  %v595_v17 = vadd.f32 %v4508_v55, %v5185_v53  ;;  %v1869_v32 = vshrl.u32 %v5276_v16, 16 }
 0x10d   : > { %758 = vst.msk [vmem:[#allocation2 + $0x78] sm:$0xff] %vm311_vm1, %v710_v27  ;;  %v587_v11 = vadd.f32 %v5185_v53, %v586_v49  ;;  %v4509_v29 = vpop.f32.mrb[14].mxu0  ;;  %v650_v19 = vpop.f32.mrb[13].mxu1  ;;  %v701_v12 = vpack.c.bf16 %v674_v61, %v673_v0  ;;  %v2017_v54 = vmul.bf16 %v5284_v63, %v5240_v60  ;;  %v2697_v21 = vshll.u32 %v5242_v58, 16 }
 0x10e   : > { %v598_v62 = vadd.f32 %v4509_v29, %v5185_v53  ;;  %v589_v5 = vpop.f32.mrb[15].mxu0  ;;  %v4525_v24 = vpop.f32.mrb[14].mxu1  ;;  %757 = vst.msk [vmem:[#allocation2 + $0x70] sm:$0xff] %vm311_vm1, %v709_v9  ;;  %v679_v27 = vmax.f32 %v595_v17, 0.0  ;;  %v1497_v49 = vrot.slane %v5108_v18, %v5069_v57  ;;  %v2049_v61 = vmul.bf16 %v5086_v8, %v5284_v63 }
 0x10f   : > { %v677_v47 = vmax.f32 %v587_v11, 0.0  ;;  %v590_v2 = vadd.f32 %v5185_v53, %v589_v5  ;;  %v653_v55 = vpop.f32.mrb[15].mxu1  ;;  %749 = vst.msk [vmem:[#allocation2 + $0x30] sm:$0xff] %vm311_vm1, %v701_v12  ;;  %2368 = vrot.lane.b32.xlu1 %v2017_v54, %s4803_s18  ;;  %v5311_v9 = vpop.permute.xlu1 %1686  ;;  %v5313_v11 = vrot.slane %v2697_v21, 1  ;;  %v2086_v29 = vmul.bf16 %v5242_v58, %v5086_v8 }
 0x110   : > { %v680_v0 = vmax.f32 %v598_v62, 0.0  ;;  %v5319_v18 = vsel %vm315_vm6, %v5080_v6, %v1866_v13  ;;  %v5321_v12 = vrot.slane %v1869_v32, 7  ;;  %v1500_v54 = vpop.permute.xlu0 %1499  ;;  %v2578_v5 = vrot.slane %v2049_v61, 1 }
 0x111   : > { %v678_v17 = vmax.f32 %v590_v2, 0.0  ;;  %v2050_v60 = vmul.bf16 %v5242_v58, %v5319_v18  ;;  %v5325_v31 = vrot.slane %v1267_v20, 1  ;;  %v1271_v2 = vshrl.u32 %v5266_v52, 16  ;;  %2816 = vrot.lane.b32.xlu0 %v5313_v11, %s4805_s23 }
 0x112   : > { %v704_v62 = vpack.c.bf16 %v680_v0, %v679_v27  ;;  %v5328_v21 = vcombine.low %v885_v26, %v897_v3  ;;  %v1872_v6 = vshll.u32 %v5276_v16, 16  ;;  %v2401_v20 = vshll.u32 %v5284_v63, 16 }
 0x113   : > { %v703_v15 = vpack.c.bf16 %v678_v17, %v677_v47  ;;  %2611 = vrot.lane.b32.xlu1 %v2578_v5, %s4806_s24  ;;  %v2579_v8 = vrot.slane %v2050_v60, 1  ;;  %v659_v13 = vadd.f32 %v4524_v51, %v5185_v53  ;;  %v1508_v52 = vrot.slane %v1500_v54, %v5069_v57  ;;  %v5346_v61 = vpop.permute.xlu1 %1697  ;;  %v5357_v54 = vld [vmem:[#allocation2 + $0x20] sm:$0xff] }
 0x114   : > { %752 = vst.msk [vmem:[#allocation2 + $0x48] sm:$0xff] %vm311_vm1, %v704_v62  ;;  %v5339_v3 = vrot.slane %v2086_v29, 1  ;;  %v651_v26 = vadd.f32 %v5185_v53, %v650_v19  ;;  %v662_v16 = vadd.f32 %v4525_v24, %v5185_v53  ;;  %v1874_v32 = vor.u32 %v1872_v6, %v5321_v12 }
 0x115   : > { %751 = vst.msk [vmem:[#allocation2 + $0x40] sm:$0xff] %vm311_vm1, %v703_v15  ;;  %v2403_v27 = vrot.slane %v2401_v20, 1  ;;  %v2404_v47 = vshrl.u32 %v5284_v63, 16  ;;  %v695_v60 = vmax.f32 %v659_v13, 0.0  ;;  %v1275_v0 = vshll.u32 %v5328_v21, 16 }
 0x116   : > { %2900 = vrot.lane.b32.xlu0 %v5339_v3, %s4807_s25  ;;  %v2580_v15 = vsel %vm2281_vm7, %v2578_v5, %v2579_v8  ;;  %v696_v51 = vmax.f32 %v662_v16, 0.0  ;;  %v1519_v19 = vrot.slane %v5116_v22, %v5069_v57  ;;  %v1530_v24 = vrot.slane %v5122_v25, %v5069_v57 }
 0x117   : > { %2613 = vrot.lane.b32.xlu1 %v2580_v15, %s4806_s24  ;;  %v2406_v17 = vor.u32 %v2404_v47, %v2403_v27  ;;  %v654_v29 = vadd.f32 %v5185_v53, %v653_v55  ;;  %v1273_v62 = vor.u32 %v1271_v2, %v5325_v31  ;;  %v4311_v6 = vcombine.low %v1497_v49, %v1508_v52  ;;  %v5373_v55 = vld [vmem:[#allocation2 + $0x28] sm:$0xff]  ;;  %v5377_v2 = vpop.permute.xlu1 %1056 }
 0x118   : > { %v693_v20 = vmax.f32 %v651_v26, 0.0  ;;  %v712_v13 = vpack.c.bf16 %v696_v51, %v695_v60  ;;  %v6833_v5 = vshrl.u32 %v5088_v10, 16  ;;  %v1875_v22 = vsel %vm315_vm6, %v5268_v30, %v1874_v32  ;;  %6834 = vst [vmem:[#allocation16_spill] sm:$0xff] %v5373_v55 }
 0x119   : > { %v1998_v25 = vmul.bf16 %v5319_v18, %v5284_v63  ;;  %v5367_v47 = vrot.slane %v1275_v0, 1  ;;  %v2122_v53 = vsel %vm1242_vm5, %v2406_v17, %v5313_v11  ;;  %v694_v10 = vmax.f32 %v654_v29, 0.0 }
 0x11a   : > { %v2109_v16 = vor.u32 %v6833_v5, %v5132_v1  ;;  %2527 = vrot.lane.b32.xlu0 %v2403_v27, %s4808_s26  ;;  %760 = vst.msk [vmem:[#allocation2 + $0x88] sm:$0xff] %vm311_vm1, %v712_v13  ;;  %v2051_v1 = vmul.bf16 %v5357_v54, %v1875_v22  ;;  %v4312_v30 = vcombine.low %v1519_v19, %v1530_v24  ;;  %v1877_v49 = vshrl.u32 %v4311_v6, 16 }
 0x11b   : > { %2234 = vrot.lane.b32.xlu1 %v2122_v53, %s4802_s17  ;;  %v5381_v52 = vsel %vm1242_vm5, %v1273_v62, %v5367_v47  ;;  %v711_v26 = vpack.c.bf16 %v694_v10, %v693_v20  ;;  %v2283_v0 = vrot.slane %v1998_v25, 1  ;;  %v1999_v15 = vmul.bf16 %v5242_v58, %v1875_v22  ;;  %v5396_v13 = vpop.permute.xlu1 %1068 }
 0x11c   : > { %6835 = vst [vmem:[#allocation17_spill] sm:$0xff] %v5381_v52  ;;  %v2020_v32 = vmul.bf16 %v5373_v55, %v5381_v52  ;;  %v2114_v60 = vsel %vm1242_vm5, %v2109_v16, %v2403_v27  ;;  %v5389_v51 = vrot.slane %v2051_v1, 1  ;;  %v2704_v19 = vshll.u32 %v5357_v54, 16 }
 0x11d   : > { %759 = vst.msk [vmem:[#allocation2 + $0x80] sm:$0xff] %vm311_vm1, %v711_v26  ;;  %v1885_v24 = vshrl.u32 %v4312_v30, 16  ;;  %v1879_v17 = vrot.slane %v1877_v49, 7  ;;  %v1880_v29 = vshll.u32 %v4311_v6, 16  ;;  %v2284_v62 = vsel %vm2281_vm7, %v5096_v14, %v2283_v0 }
 0x11e   : > { %2232 = vrot.lane.b32.xlu0 %v2114_v60, %s4802_s17  ;;  %v2285_v27 = vrot.slane %v1999_v15, 1  ;;  %v2700_v20 = vshrl.u32 %v5242_v58, 16  ;;  %v2582_v5 = vsel %vm2281_vm7, %v2579_v8, %v5389_v51  ;;  %v2706_v16 = vrot.slane %v2704_v19, 1 }
 0x11f   : > { %2374 = vrot.lane.b32.xlu1 %v2020_v32, %s4803_s18  ;;  %v1263_v25 = vshrl.u32 %v5221_v59, 16  ;;  %v5404_v10 = vrot.slane %v1885_v24, 7  ;;  %v1888_v14 = vshll.u32 %v4312_v30, 16  ;;  %v1882_v1 = vor.u32 %v1880_v29, %v1879_v17 }
 0x120   : > { %v2702_v6 = vor.u32 %v2700_v20, %v5313_v11  ;;  %v2286_v58 = vsel %vm2281_vm7, %v2283_v0, %v2285_v27  ;;  %v2087_v8 = vmul.bf16 %v5357_v54, %v5319_v18  ;;  %v2088_v59 = vmul.bf16 %v1875_v22, %v5373_v55  ;;  %v5417_v11 = vpop.permute.xlu1 %1708  ;;  %v1544_v20 = vpop.permute.xlu0 %1543 }
 0x121   : > { %v1265_v26 = vor.u32 %v1263_v25, %v5257_v7  ;;  %v1890_v30 = vor.u32 %v1888_v14, %v5404_v10  ;;  %v5422_v32 = vsel %vm315_vm6, %v5321_v12, %v1882_v1  ;;  %v921_v60 = vrot.slane %v5154_v39, %v5069_v57 }
 0x122   : > { %2317 = vrot.lane.b32.xlu0 %v2284_v62, %s4801_s10  ;;  %v5408_v49 = vsel %vm1242_vm5, %v2702_v6, %v2706_v16  ;;  %v5427_v18 = vrot.slane %v2087_v8, 1  ;;  %v5429_v22 = vrot.slane %v2088_v59, 1  ;;  %v2000_v7 = vmul.bf16 %v5357_v54, %v5422_v32 }
 0x123   : > { %2615 = vrot.lane.b32.xlu1 %v2582_v5, %s4806_s24  ;;  %v5437_v0 = vsel %vm1242_vm5, %v1265_v26, %v5325_v31  ;;  %v909_v12 = vrot.slane %v5118_v23, %v5069_v57  ;;  %v933_v39 = vrot.slane %v5158_v41, %v5069_v57  ;;  %v945_v15 = vrot.slane %v5127_v28, %v5069_v57  ;;  %v4695_v26 = vld [vmem:[%s6792_s3] sm:$0xff]  }
 0x124   : > { %v5448_v19 = vsel %vm315_vm6, %v1879_v17, %v1890_v30  ;;  %v5450_v29 = vpop.permute.xlu1 %1730  ;;  %v2871_v31 = vsel %vm2281_vm7, %v5427_v18, %v5429_v22  ;;  %v2287_v23 = vrot.slane %v2000_v7, 1  ;;  %v2070_v28 = vmul.bf16 %v5357_v54, %v5273_v4  ;;  %4526 = vmatprep.subr.bf16.mxu1 %v4695_v26 }
 0x125   : > { %v4297_v24 = vcombine.low %v909_v12, %v921_v60  ;;  %v2001_v41 = vmul.bf16 %v5448_v19, %v5373_v55  ;;  %v5459_v62 = vcombine.low %v933_v39, %v945_v15  ;;  %v2708_v6 = vshrl.u32 %v5357_v54, 16  ;;  %4527 = vmatpush3.bf16.msra.mxu1 %v4695_v26 }
 0x126   : > { %2319 = vrot.lane.b32.xlu0 %v2286_v58, %s4801_s10  ;;  %v2288_v5 = vsel %vm2281_vm7, %v2285_v27, %v2287_v23  ;;  %v1563_v14 = vrot.slane %v5148_v36, %v5069_v57  ;;  %v1574_v1 = vrot.slane %v5152_v38, %v5069_v57  ;;  %v2019_v27 = vmul.bf16 %v5357_v54, %v5437_v0 }
 0x127   : > { %2818 = vrot.lane.b32.xlu1 %v5408_v49, %s4805_s23  ;;  %v1283_v17 = vshll.u32 %v4297_v24, 16  ;;  %v5465_v25 = vrot.slane %v2001_v41, 1  ;;  %v1291_v58 = vshll.u32 %v5459_v62, 16  ;;  %v2712_v59 = vshll.u32 %v5373_v55, 16 }
 0x128   : > { %v5474_v8 = vpop.permute.xlu1 %1741  ;;  %v1541_v36 = vrot.slane %v5143_v34, %v5069_v57  ;;  %v1552_v30 = vrot.slane %v1544_v20, %v5069_v57  ;;  %v2710_v7 = vor.u32 %v2708_v6, %v2706_v16  ;;  %v4314_v12 = vcombine.low %v1563_v14, %v1574_v1  ;;  %v4697_v16 = vld [vmem:[%s6792_s3 + $0x10] sm:$0xff]  }
 0x129   : > { %v5485_v60 = vrot.slane %v1283_v17, 1  ;;  %v2290_v38 = vsel %vm2281_vm7, %v2287_v23, %v5465_v25  ;;  %v1287_v39 = vshrl.u32 %v4297_v24, 16  ;;  %v2714_v15 = vrot.slane %v2712_v59, 1  ;;  %v4696_v23 = vld [vmem:[%s6792_s3 + $0x8] sm:$0xff]   ;;  %v5509_v17 = vld [vmem:[#allocation2 + $0x38] sm:$0xff]  ;;  %v5522_v1 = vld [vmem:[#allocation2 + $0x30] sm:$0xff] }
 0x12a   : > { %2529 = vrot.lane.b32.xlu0 %v2122_v53, %s4808_s26  ;;  %v2071_v53 = vmul.bf16 %v5373_v55, %v5437_v0  ;;  %v4313_v34 = vcombine.low %v1541_v36, %v1552_v30  ;;  %6836 = vst [vmem:[#allocation18_spill] sm:$0xff] %v5509_v17  ;;  %4528 = vmatprep.subr.bf16.mxu1 %v4696_v23  ;;  %v1901_v20 = vshrl.u32 %v4314_v12, 16  ;;  %6838 = vst [vmem:[#allocation20_spill] sm:$0xff] %v5522_v1 }
 0x12b   : > { %2236 = vrot.lane.b32.xlu1 %v5408_v49, %s4802_s17  ;;  %v1289_v41 = vor.u32 %v1287_v39, %v5485_v60  ;;  %v5505_v24 = vsel %vm1242_vm5, %v2710_v7, %v2714_v15  ;;  %4529 = vmatpush3.bf16.msra.mxu1 %v4696_v23  ;;  %v2428_v59 = vshrl.u32 %v5373_v55, 16  ;;  %v2432_v26 = vshll.u32 %v5522_v1, 16 }
 0x12c   : > { %v1893_v6 = vshrl.u32 %v4313_v34, 16  ;;  %4530 = vmatprep.subr.bf16.mxu1 %v4697_v16  ;;  %v1904_v36 = vshll.u32 %v4314_v12, 16  ;;  %v5531_v30 = vrot.slane %v1901_v20, 7  ;;  %v2072_v12 = vmul.bf16 %v5522_v1, %v5381_v52 }
 0x12e   : > { %2668 = vrot.lane.b32.xlu0 %v2071_v53, %s4804_s22  ;;  %v5491_v53 = vrot.slane %v1291_v58, 1  ;;  %v1895_v39 = vrot.slane %v1893_v6, 7  ;;  %v1906_v20 = vor.u32 %v1904_v36, %v5531_v30  ;;  %v1588_v36 = vpop.permute.xlu0 %1587 }
 0x12f   : > { %2904 = vrot.lane.b32.xlu1 %v2871_v31, %s4807_s25  ;;  %v2052_v31 = vmul.bf16 %v5422_v32, %v5373_v55  ;;  %4531 = vmatpush3.bf16.msra.mxu1 %v4697_v16 }
 0x131   : > { %v2583_v58 = vrot.slane %v2052_v31, 1  ;;  %v969_v31 = vrot.slane %v5172_v48, %v5069_v57  ;;  %v957_v48 = vrot.slane %v5138_v33, %v5069_v57  ;;  %v1041_v33 = vrot.slane %v5156_v40, %v5069_v57 }
 0x132   : > { %2666 = vrot.lane.b32.xlu0 %v2070_v28, %s4804_s22  ;;  %v5502_v28 = vpop.permute.xlu1 %1104  ;;  %v981_v40 = vrot.slane %v5176_v50, %v5069_v57 }
 0x133   : > { %2321 = vrot.lane.b32.xlu1 %v2288_v5, %s4801_s10  ;;  %v5515_v5 = vsel %vm1242_vm5, %v1289_v41, %v5491_v53  ;;  %v2584_v23 = vsel %vm2281_vm7, %v5389_v51, %v2583_v58  ;;  %v1279_v41 = vshrl.u32 %v5328_v21, 16 }
 0x134   : > { %6837 = vst [vmem:[#allocation19_spill] sm:$0xff] %v5515_v5  ;;  %v2022_v14 = vmul.bf16 %v5509_v17, %v5515_v5 }
 0x136   : > { %2372 = vrot.lane.b32.xlu0 %v2019_v27, %s4803_s18  ;;  %v4698_v27 = vld [vmem:[%s6792_s3 + $0x18] sm:$0xff]   ;;  %v5537_v7 = vpop.permute.xlu1 %1116 }
 0x137   : > { %2323 = vrot.lane.b32.xlu1 %v2290_v38, %s4801_s10  ;;  %v1618_v38 = vrot.slane %v5168_v46, %v5069_v57  ;;  %4532 = vmatprep.subr.bf16.mxu1 %v4698_v27  ;;  %v2053_v46 = vmul.bf16 %v5522_v1, %v5448_v19 }
 0x138   : > { %4533 = vmatpush3.bf16.msra.mxu1 %v4698_v27  ;;  %v1053_v27 = vrot.slane %v5160_v42, %v5069_v57  ;;  %v1596_v42 = vrot.slane %v1588_v36, %v5069_v57 }
 0x13a   : > { %2531 = vrot.lane.b32.xlu0 %v5408_v49, %s4808_s26  ;;  %v2869_v49 = vsel %vm2281_vm7, %v5339_v3, %v5427_v18  ;;  %v1607_v3 = vrot.slane %v5166_v45, %v5069_v57  ;;  %v1896_v18 = vshll.u32 %v4313_v34, 16  ;;  %v2430_v45 = vor.u32 %v2714_v15, %v2428_v59  ;;  %v5565_v59 = vpop.permute.xlu1 %1752 }
 0x13b   : > { %2820 = vrot.lane.b32.xlu1 %v5505_v24, %s4805_s23  ;;  %v5546_v34 = vrot.slane %v2432_v26, 1  ;;  %v993_v15 = vrot.slane %v5146_v35, %v5069_v57  ;;  %6839 = vst [vmem:[#allocation21_spill] sm:$0xff] %v5565_v59  ;;  %v5573_v35 = vrot.slane %v2053_v46, 1  ;;  %v1281_v26 = vor.u32 %v1279_v41, %v5367_v47 }
 0x13c   : > { %v5556_v51 = vcombine.low %v1607_v3, %v1618_v38  ;;  %v1898_v6 = vor.u32 %v1896_v18, %v1895_v39  ;;  %v1295_v3 = vshrl.u32 %v5459_v62, 16  ;;  %v1585_v18 = vrot.slane %v5162_v43, %v5069_v57  ;;  %v6840_v62 = vld [vmem:[#allocation8_spill] sm:$0xff] }
 0x13d   : > { %v5569_v21 = vsel %vm1242_vm5, %v2430_v45, %v5546_v34  ;;  %v2586_v43 = vsel %vm2281_vm7, %v2583_v58, %v5573_v35  ;;  %v4300_v46 = vcombine.low %v981_v40, %v993_v15  ;;  %v5614_v58 = vsel %vm1242_vm5, %v1281_v26, %v5485_v60  ;;  %v6843_v60 = vld [vmem:[#allocation13_spill] sm:$0xff] }
 0x13e   : > { %2902 = vrot.lane.b32.xlu0 %v2869_v49, %s4807_s25  ;;  %v1005_v49 = vrot.slane %v5150_v37, %v5069_v57  ;;  %v1089_v37 = vrot.slane %v5164_v44, %v5069_v57  ;;  %v1917_v38 = vshrl.u32 %v5556_v51, 16  ;;  %v1017_v44 = vrot.slane %v5229_v56, %v5069_v57  ;;  %6842 = vst [vmem:[#allocation8_spill] sm:$0xff] %v5614_v58 }
 0x13f   : > { %2378 = vrot.lane.b32.xlu1 %v2022_v14, %s4803_s18  ;;  %v4299_v14 = vcombine.low %v957_v48, %v969_v31  ;;  %v5593_v50 = vsel %vm315_vm6, %v5404_v10, %v1898_v6  ;;  %v5596_v31 = vsel %vm315_vm6, %v1895_v39, %v1906_v20  ;;  %v6841_v10 = vld [vmem:[#allocation9_spill] sm:$0xff]  ;;  %v1297_v39 = vor.u32 %v1295_v3, %v5491_v53  ;;  %v1141_v20 = vpop.permute.xlu1 %1140  ;;  %v4699_v53 = vld [vmem:[%s6792_s3 + $0x20] ss:$0 sps:$4 sm:$0xff]  }
 0x140   : > { %v2003_v56 = vmul.bf16 %v5596_v31, %v5509_v17  ;;  %v1137_v45 = vrot.slane %v6841_v10, %v5069_v57  ;;  %v5616_v48 = vrot.slane %v1917_v38, 7  ;;  %v5619_v41 = vcombine.low %v1585_v18, %v1596_v42  ;;  %4606 = vmatprep.subr.msk.bf16.mxu1 %vm3484_vm8, %v4699_v53 }
 0x141   : > { %v1299_v47 = vshll.u32 %v4299_v14, 16  ;;  %v2073_v6 = vmul.bf16 %v5509_v17, %v5614_v58  ;;  %v1303_v40 = vshrl.u32 %v4299_v14, 16  ;;  %v4301_v36 = vcombine.low %v1005_v49, %v1017_v44 }
 0x142   : > { %2617 = vrot.lane.b32.xlu0 %v2584_v23, %s4806_s24  ;;  %v2002_v23 = vmul.bf16 %v5522_v1, %v5593_v50  ;;  %v1029_v26 = vrot.slane %v6843_v60, %v5069_v57  ;;  %v5631_v18 = vrot.slane %v2003_v56, 1  ;;  %v2724_v38 = vshrl.u32 %v5522_v1, 16 }
 0x143   : > { %2670 = vrot.lane.b32.xlu1 %v2072_v12, %s4804_s22  ;;  %v1101_v12 = vrot.slane %v6840_v62, %v5069_v57  ;;  %v1301_v15 = vrot.slane %v1299_v47, 1  ;;  %v1307_v62 = vshll.u32 %v4300_v46, 16  ;;  %v1065_v47 = vrot.slane %v5377_v2, %v5069_v57 }
 0x144   : > { %v5629_v3 = vrot.slane %v2002_v23, 1  ;;  %v1077_v14 = vrot.slane %v5396_v13, %v5069_v57  ;;  %v1113_v44 = vrot.slane %v5502_v28, %v5069_v57  ;;  %v2728_v23 = vshll.u32 %v5509_v17, 16  ;;  %v1153_v28 = vpop.permute.xlu1 %1152 }
 0x145   : > { %v1305_v2 = vor.u32 %v1303_v40, %v1301_v15  ;;  %v1315_v56 = vshll.u32 %v4301_v36, 16  ;;  %v2089_v13 = vmul.bf16 %v5522_v1, %v5422_v32  ;;  %v3486_v10 = vsel %vm3484_vm8, %v4699_v53, 0 }
 0x146   : > { %2238 = vrot.lane.b32.xlu0 %v5505_v24, %s4802_s17  ;;  %v1125_v60 = vrot.slane %v5537_v7, %v5069_v57  ;;  %v2294_v42 = vsel %vm2281_vm7, %v5629_v3, %v5631_v18  ;;  %v2726_v40 = vor.u32 %v2724_v38, %v5546_v34  ;;  %v1309_v16 = vrot.slane %v1307_v62, 1  ;;  %4535 = vmatpush3.bf16.msra.mxu1 %v3486_v10 }
 0x147   : > { %2535 = vrot.lane.b32.xlu1 %v5569_v21, %s4808_s26  ;;  %v4304_v49 = vcombine.low %v1077_v14, %v1089_v37  ;;  %v4305_v7 = vcombine.low %v1101_v12, %v1113_v44  ;;  %v2730_v53 = vrot.slane %v2728_v23, 1  ;;  %v1149_v59 = vrot.slane %v1141_v20, %v5069_v57 }
 0x148   : > { %v2872_v34 = vrot.slane %v2089_v13, 1  ;;  %v1317_v37 = vrot.slane %v1315_v56, 1  ;;  %v4306_v38 = vcombine.low %v1125_v60, %v1137_v45  ;;  %v5676_v12 = vsel %vm1242_vm5, %v1297_v39, %v1301_v15  ;;  %v5687_v39 = vld [vmem:[#allocation2 + $0x40] sm:$0xff] }
 0x149   : > { %6844 = vst [vmem:[#allocation9_spill] sm:$0xff] %v5676_v12  ;;  %v1339_v62 = vshll.u32 %v4304_v49, 16  ;;  %v1347_v14 = vshll.u32 %v4305_v7, 16  ;;  %v5683_v44 = vsel %vm1242_vm5, %v1305_v2, %v1309_v16  ;;  %6846 = vst [vmem:[#allocation22_spill] sm:$0xff] %v5687_v39 }
 0x14a   : > { %2533 = vrot.lane.b32.xlu0 %v5505_v24, %s4808_s26  ;;  %v4303_v24 = vcombine.low %v1053_v27, %v1065_v47  ;;  %v1319_v47 = vshrl.u32 %v4301_v36, 16  ;;  %6845 = vst [vmem:[#allocation13_spill] sm:$0xff] %v5683_v44  ;;  %v1355_v10 = vshll.u32 %v4306_v38, 16  ;;  %v2444_v36 = vshrl.u32 %v5509_v17, 16  ;;  %v5715_v27 = vld [vmem:[#allocation2 + $0x48] sm:$0xff] }
 0x14b   : > { %2619 = vrot.lane.b32.xlu1 %v2586_v43, %s4806_s24  ;;  %v2021_v43 = vmul.bf16 %v5522_v1, %v5614_v58  ;;  %v1341_v60 = vrot.slane %v1339_v62, 1  ;;  %6847 = vst [vmem:[#allocation23_spill] sm:$0xff] %v5715_v27 }
 0x14c   : > { %v1331_v20 = vshll.u32 %v4303_v24, 16  ;;  %v1321_v13 = vor.u32 %v1319_v47, %v1317_v37  ;;  %v1357_v62 = vrot.slane %v1355_v10, 1  ;;  %v2446_v47 = vor.u32 %v2730_v53, %v2444_v36 }
 0x14d   : > { %v1912_v36 = vshll.u32 %v5619_v41, 16 }
 0x14e   : > { %2672 = vrot.lane.b32.xlu0 %v2073_v6, %s4804_s22  ;;  %v5652_v6 = vcombine.low %v1029_v26, %v1041_v33  ;;  %v1311_v33 = vshrl.u32 %v4300_v46, 16  ;;  %v2090_v26 = vmul.bf16 %v5448_v19, %v5509_v17 }
 0x14f   : > { %2240 = vrot.lane.b32.xlu1 %v5569_v21, %s4802_s17 }
 0x150   : > { %v1313_v19 = vor.u32 %v1311_v33, %v1309_v16  ;;  %v1323_v46 = vshll.u32 %v5652_v6, 16  ;;  %v1327_v45 = vshrl.u32 %v5652_v6, 16  ;;  %v5689_v15 = vrot.slane %v2090_v26, 1 }
 0x151   : > { %v2448_v16 = vshll.u32 %v5687_v39, 16  ;;  %v1335_v6 = vshrl.u32 %v4303_v24, 16  ;;  %v2055_v24 = vmul.bf16 %v5687_v39, %v5596_v31 }
 0x152   : > { %2376 = vrot.lane.b32.xlu0 %v2021_v43, %s4803_s18  ;;  %v1161_v43 = vrot.slane %v1153_v28, %v5069_v57  ;;  %v1325_v2 = vrot.slane %v1323_v46, 1  ;;  %v1349_v28 = vrot.slane %v1347_v14, 1  ;;  %v2875_v46 = vsel %vm2281_vm7, %v2872_v34, %v5689_v15 }
 0x153   : > { %2327 = vrot.lane.b32.xlu1 %v2294_v42, %s4801_s10  ;;  %v5671_v42 = vsel %vm1242_vm5, %v2726_v40, %v2730_v53  ;;  %v2054_v40 = vmul.bf16 %v5593_v50, %v5509_v17  ;;  %v2450_v14 = vrot.slane %v2448_v16, 1  ;;  %v1359_v17 = vshrl.u32 %v4306_v38, 16  ;;  %v5731_v38 = vld [vmem:[#allocation2 + $0x50] sm:$0xff] }
 0x154   : > { %v4307_v23 = vcombine.low %v1149_v59, %v1161_v43  ;;  %v1333_v59 = vrot.slane %v1331_v20, 1  ;;  %v2074_v43 = vmul.bf16 %v5687_v39, %v5515_v5  ;;  %v5708_v20 = vpop.permute.xlu0 %1631  ;;  %v5717_v1 = vrot.slane %v2055_v24, 1 }
 0x155   : > { %v5720_v53 = vsel %vm1242_vm5, %v1321_v13, %v1325_v2  ;;  %v1361_v16 = vor.u32 %v1359_v17, %v1357_v62  ;;  %v6850_v13 = vshrl.u32 %v5619_v41, 16  ;;  %v5760_v41 = vld [vmem:[#allocation2 + $0x60] sm:$0xff] }
 0x156   : > { %2822 = vrot.lane.b32.xlu0 %v5569_v21, %s4805_s23  ;;  %v2873_v21 = vsel %vm2281_vm7, %v5429_v22, %v2872_v34  ;;  %v1343_v22 = vshrl.u32 %v4304_v49, 16  ;;  %v1363_v26 = vshll.u32 %v4307_v23, 16  ;;  %v1351_v49 = vshrl.u32 %v4305_v7, 16 }
 0x157   : > { %2824 = vrot.lane.b32.xlu1 %v5671_v42, %s4805_s23  ;;  %v1337_v33 = vor.u32 %v1335_v6, %v1333_v59  ;;  %v2292_v34 = vsel %vm2281_vm7, %v5465_v25, %v5629_v3  ;;  %v1367_v5 = vshrl.u32 %v4307_v23, 16  ;;  %v2587_v7 = vrot.slane %v2054_v40, 1 }
 0x158   : > { %v1345_v56 = vor.u32 %v1343_v22, %v1341_v60  ;;  %v1353_v32 = vor.u32 %v1351_v49, %v1349_v28  ;;  %v1365_v10 = vrot.slane %v1363_v26, 1  ;;  %v2451_v25 = vsel %vm1242_vm5, %v2446_v47, %v2450_v14  ;;  %v5747_v6 = vpop.permute.xlu0 %1675  ;;  %v5780_v49 = vld [vmem:[#allocation2 + $0x78] sm:$0xff] }
 0x159   : > { %v5734_v23 = vsel %vm1242_vm5, %v1337_v33, %v1341_v60  ;;  %v2740_v40 = vshrl.u32 %v5687_v39, 16  ;;  %v5752_v60 = vld [vmem:[#allocation2 + $0x58] sm:$0xff]  ;;  %6853 = vst [vmem:[#allocation28_spill] sm:$0xff] %v5780_v49 }
 0x15a   : > { %2906 = vrot.lane.b32.xlu0 %v2873_v21, %s4807_s25  ;;  %v1329_v21 = vor.u32 %v1327_v45, %v1325_v2  ;;  %v5723_v45 = vsel %vm1242_vm5, %v1313_v19, %v1317_v37  ;;  %v5740_v19 = vsel %vm1242_vm5, %v1353_v32, %v1357_v62  ;;  %v5743_v17 = vsel %vm1242_vm5, %v1345_v56, %v1349_v28  ;;  %v317_v33 = vld [vmem:[#allocation2 + $0x98] sm:$0x1]  ;;  %v5762_v28 = vld [vmem:[#allocation2 + $0x68] sm:$0xff]  ;;  %v5782_v62 = vld [vmem:[#allocation2 + $0x80] sm:$0xff] }
 0x15b   : > { %2242 = vrot.lane.b32.xlu1 %v5671_v42, %s4802_s17  ;;  %6848 = vst [vmem:[#allocation24_spill] sm:$0xff] %v5740_v19  ;;  %6849 = vst [vmem:[#allocation25_spill] sm:$0xff] %v5743_v17  ;;  %v1911_v2 = vrot.slane %v6850_v13, 7  ;;  %v5749_v22 = vor.u32 %v1367_v5, %v1365_v10  ;;  %v2590_v32 = vsel %vm2281_vm7, %v2587_v7, %v5717_v1  ;;  %v5764_v5 = vld [vmem:[#allocation2 + $0x70] sm:$0xff]  ;;  %v318_v47 = vsel %vm316_vm10, 0, %v317_v33 }
 0x15c   : > { %v5737_v37 = vsel %vm1242_vm5, %v1329_v21, %v1333_v59  ;;  %v2588_v56 = vsel %vm2281_vm7, %v5573_v35, %v2587_v7  ;;  %v5767_v26 = vsel %vm1242_vm5, %v1361_v16, %v1365_v10  ;;  %6854 = vst [vmem:[#allocation29_spill] sm:$0xff] %v5782_v62  ;;  %v2744_v21 = vshll.u32 %v5715_v27, 16  ;;  %319 = vst [vmem:[#allocation2 + $0x98] sm:$0x1] %v318_v47 }
 0x15d   : > { %6851 = vst [vmem:[#allocation26_spill] sm:$0xff] %v5749_v22  ;;  %6852 = vst [vmem:[#allocation27_spill] sm:$0xff] %v5767_v26  ;;  %v6855_v10 = vshll.u32 %v5556_v51, 16  ;;  %v1914_v13 = vor.u32 %v1912_v36, %v1911_v2  ;;  %v2742_v33 = vor.u32 %v2740_v40, %v2450_v14  ;;  %v2024_v35 = vmul.bf16 %v5715_v27, %v5683_v44 }
 0x15e   : > { %2908 = vrot.lane.b32.xlu0 %v2875_v46, %s4807_s25  ;;  %v2746_v47 = vrot.slane %v2744_v21, 1  ;;  %v2076_v22 = vmul.bf16 %v5731_v38, %v5683_v44  ;;  %v2075_v17 = vmul.bf16 %v5715_v27, %v5676_v12  ;;  %v2026_v58 = vmul.bf16 %v5752_v60, %v5720_v53 }
 0x15f   : > { %2674 = vrot.lane.b32.xlu1 %v2074_v43, %s4804_s22  ;;  %v1922_v16 = vor.u32 %v6855_v10, %v5616_v48  ;;  %v5801_v7 = vsel %vm315_vm6, %v5531_v30, %v1914_v13 }
 0x160   : > { %v2747_v36 = vsel %vm1242_vm5, %v2742_v33, %v2746_v47  ;;  %v6857_v33 = vld [vmem:[#allocation10_spill] sm:$0xff] }
 0x161   : > { %v5804_v51 = vsel %vm315_vm6, %v1911_v2, %v1922_v16 }
 0x162   : > { %2325 = vrot.lane.b32.xlu0 %v2292_v34, %s4801_s10  ;;  %v2005_v14 = vmul.bf16 %v5715_v27, %v5804_v51  ;;  %v2057_v3 = vmul.bf16 %v5804_v51, %v5731_v38 }
 0x163   : > { %2539 = vrot.lane.b32.xlu1 %v2451_v25, %s4808_s26 }
 0x164   : > { %v5822_v21 = vrot.slane %v2005_v14, 1  ;;  %v6858_v14 = vld [vmem:[#allocation11_spill] sm:$0xff] }
 0x166   : > { %2621 = vrot.lane.b32.xlu0 %v2588_v56, %s4806_s24  ;;  %v5794_v56 = vpop.permute.xlu0 %1719 }
 0x167   : > { %2623 = vrot.lane.b32.xlu1 %v2590_v32, %s4806_s24  ;;  %v2091_v32 = vmul.bf16 %v5687_v39, %v5593_v50  ;;  %v2092_v50 = vmul.bf16 %v5715_v27, %v5596_v31 }
 0x169   : > { %v2876_v34 = vrot.slane %v2091_v32, 1  ;;  %v5819_v40 = vrot.slane %v2092_v50, 1  ;;  %v2464_v32 = vshll.u32 %v5731_v38, 16  ;;  %v1629_v50 = vrot.slane %v6857_v33, %v5069_v57 }
 0x16a   : > { %2537 = vrot.lane.b32.xlu0 %v5671_v42, %s4808_s26  ;;  %v2004_v42 = vmul.bf16 %v5687_v39, %v5801_v7  ;;  %v5815_v30 = vpop.permute.xlu0 %1763 }
 0x16b   : > { %2244 = vrot.lane.b32.xlu1 %v2451_v25, %s4802_s17  ;;  %6856 = vst [vmem:[#allocation30_spill] sm:$0xff] %v5815_v30  ;;  %v2877_v2 = vsel %vm2281_vm7, %v5689_v15, %v2876_v34  ;;  %v2879_v16 = vsel %vm2281_vm7, %v2876_v34, %v5819_v40  ;;  %v2460_v15 = vshrl.u32 %v5715_v27, 16  ;;  %v6859_v34 = vld [vmem:[#allocation12_spill] sm:$0xff]  ;;  %v2466_v43 = vrot.slane %v2464_v32, 1 }
 0x16c   : > { %v2295_v31 = vrot.slane %v2004_v42, 1  ;;  %v1640_v42 = vrot.slane %v5708_v20, %v5069_v57  ;;  %v1662_v24 = vrot.slane %v6859_v34, %v5069_v57 }
 0x16d   : > { %v2462_v20 = vor.u32 %v2746_v47, %v2460_v15 }
 0x16e   : > { %2826 = vrot.lane.b32.xlu0 %v2451_v25, %s4805_s23  ;;  %v5824_v25 = vpop.permute.xlu1 %2230  ;;  %v5827_v10 = vpop.permute.xlu0 %2315  ;;  %v2298_v13 = vsel %vm2281_vm7, %v2295_v31, %v5822_v21  ;;  %v2296_v33 = vsel %vm2281_vm7, %v5631_v18, %v2295_v31  ;;  %v4317_v34 = vcombine.low %v1629_v50, %v1640_v42  ;;  %v2756_v42 = vshrl.u32 %v5731_v38, 16 }
 0x16f   : > { %2828 = vrot.lane.b32.xlu1 %v2747_v36, %s4805_s23  ;;  %v2467_v18 = vsel %vm1242_vm5, %v2462_v20, %v2466_v43 }
 0x170   : > { %v1925_v15 = vshrl.u32 %v4317_v34, 16 }
 0x172   : > { %2910 = vrot.lane.b32.xlu0 %v2877_v2, %s4807_s25  ;;  %v1651_v2 = vrot.slane %v6858_v14, %v5069_v57  ;;  %v2056_v14 = vmul.bf16 %v5715_v27, %v5801_v7 }
 0x173   : > { %2246 = vrot.lane.b32.xlu1 %v2747_v36, %s4802_s17 }
 0x174   : > { %v4318_v59 = vcombine.low %v1651_v2, %v1662_v24  ;;  %v2591_v31 = vrot.slane %v2056_v14, 1  ;;  %v1927_v2 = vrot.slane %v1925_v15, 7 }
 0x176   : > { %2912 = vrot.lane.b32.xlu0 %v2879_v16, %s4807_s25  ;;  %v5847_v16 = vpop.permute.xlu1 %2366  ;;  %v1933_v32 = vshrl.u32 %v4318_v59, 16  ;;  %v1936_v14 = vshll.u32 %v4318_v59, 16 }
 0x177   : > { %2331 = vrot.lane.b32.xlu1 %v2298_v13, %s4801_s10  ;;  %v2023_v13 = vmul.bf16 %v5687_v39, %v5676_v12  ;;  %v761_v12 = vld [vmem:[#allocation2] sm:$0x80] }
 0x178   : > { %v5845_v46 = vpop.permute.xlu0 %2664  ;;  %v5876_v20 = vrot.slane %v1933_v32, 7 }
 0x17a   : > { %2329 = vrot.lane.b32.xlu0 %v2296_v33, %s4801_s10  ;;  %v1928_v33 = vshll.u32 %v4317_v34, 16  ;;  %v2758_v34 = vor.u32 %v2756_v42, %v2466_v43  ;;  %v1938_v59 = vor.u32 %v1936_v14, %v5876_v20 }
 0x17b   : > { %2382 = vrot.lane.b32.xlu1 %v2024_v35, %s4803_s18  ;;  %v5868_v35 = vrot.slane %v2057_v3, 1  ;;  %v2760_v3 = vshll.u32 %v5752_v60, 16 }
 0x17c   : > { %v1930_v15 = vor.u32 %v1928_v33, %v1927_v2  ;;  %v5910_v43 = vsel %vm315_vm6, %v1927_v2, %v1938_v59 }
 0x17d   : > { %v5861_v26 = vpop.permute.xlu1 %2370  ;;  %v2594_v50 = vsel %vm2281_vm7, %v2591_v31, %v5868_v35  ;;  %v2059_v55 = vmul.bf16 %v5910_v43, %v5760_v41 }
 0x17e   : > { %2380 = vrot.lane.b32.xlu0 %v2023_v13, %s4803_s18  ;;  %v5865_v47 = vpop.permute.xlu0 %2662 }
 0x17f   : > { %2543 = vrot.lane.b32.xlu1 %v2467_v18, %s4808_s26 }
 0x181   : > { %v5870_v24 = vpop.permute.xlu1 %2368 }
 0x182   : > { %2541 = vrot.lane.b32.xlu0 %v2747_v36, %s4808_s26  ;;  %v2592_v36 = vsel %vm2281_vm7, %v5717_v1, %v2591_v31  ;;  %v2093_v1 = vmul.bf16 %v5801_v7, %v5731_v38  ;;  %v2007_v7 = vmul.bf16 %v5752_v60, %v5910_v43 }
 0x183   : > { %2627 = vrot.lane.b32.xlu1 %v2594_v50, %s4806_s24  ;;  %v5879_v13 = vpop.permute.xlu0 %2816  ;;  %v2762_v50 = vrot.slane %v2760_v3, 1 }
 0x185   : > { %v5882_v39 = vpop.permute.xlu1 %2611  ;;  %v5898_v44 = vsel %vm1242_vm5, %v2758_v34, %v2762_v50  ;;  %v5931_v34 = vrot.slane %v2007_v7, 1  ;;  %v1706_v7 = vrot.slane %v5346_v61, %v5069_v57 }
 0x186   : > { %2625 = vrot.lane.b32.xlu0 %v2592_v36, %s4806_s24 }
 0x187   : > { %2678 = vrot.lane.b32.xlu1 %v2076_v22, %s4804_s22  ;;  %v5907_v22 = vsel %vm315_vm6, %v5616_v48, %v1930_v15  ;;  %v2880_v48 = vrot.slane %v2093_v1, 1 }
 0x188   : > { %v5891_v32 = vpop.permute.xlu0 %2900  ;;  %v2006_v33 = vmul.bf16 %v5907_v22, %v5731_v38 }
 0x189   : > { %v5895_v19 = vpop.permute.xlu1 %2613  ;;  %v2881_v3 = vsel %vm2281_vm7, %v5819_v40, %v2880_v48  ;;  %v2476_v40 = vshrl.u32 %v5752_v60, 16 }
 0x18a   : > { %2676 = vrot.lane.b32.xlu0 %v2075_v17, %s4804_s22  ;;  %v2094_v17 = vmul.bf16 %v5752_v60, %v5804_v51  ;;  %v2299_v51 = vrot.slane %v2006_v33, 1  ;;  %v1695_v33 = vrot.slane %v5311_v9, %v5069_v57 }
 0x18b   : > { %2832 = vrot.lane.b32.xlu1 %v5898_v44, %s4805_s23  ;;  %v2478_v61 = vor.u32 %v2762_v50, %v2476_v40 }
 0x18c   : > { %v5912_v31 = vpop.permute.xlu0 %2527  ;;  %v5928_v36 = vrot.slane %v2094_v17, 1  ;;  %v2302_v1 = vsel %vm2281_vm7, %v2299_v51, %v5931_v34  ;;  %v2480_v17 = vshll.u32 %v5760_v41, 16  ;;  %v2300_v9 = vsel %vm2281_vm7, %v5822_v21, %v2299_v51 }
 0x18d   : > { %v5914_v42 = vpop.permute.xlu1 %2234  ;;  %v2025_v21 = vmul.bf16 %v5731_v38, %v5723_v45 }
 0x18e   : > { %2830 = vrot.lane.b32.xlu0 %v2467_v18, %s4805_s23 }
 0x18f   : > { %2248 = vrot.lane.b32.xlu1 %v2467_v18, %s4802_s17  ;;  %v2883_v18 = vsel %vm2281_vm7, %v2880_v48, %v5928_v36 }
 0x190   : > { %v2233_v2 = vpop.permute.xlu0 %2232 }
 0x191   : > { %v5924_v14 = vpop.permute.xlu1 %2374 }
 0x192   : > { %6860 = vst [vmem:[#allocation10_spill] sm:$0xff] %v5924_v14  ;;  %2914 = vrot.lane.b32.xlu0 %v2881_v3, %s4807_s25  ;;  %v6861_v3 = vld [vmem:[#allocation15_spill] sm:$0xff] }
 0x193   : > { %2250 = vrot.lane.b32.xlu1 %v5898_v44, %s4802_s17  ;;  %v1673_v48 = vrot.slane %v6861_v3, %v5069_v57  ;;  %v2058_v3 = vmul.bf16 %v5752_v60, %v5907_v22  ;;  %v6862_v14 = vld [vmem:[#allocation7_spill] sm:$0xff] }
 0x194   : > { %v2318_v15 = vpop.permute.xlu0 %2317  ;;  %v1387_v49 = vmul.bf16 %v6862_v14, %v761_v12  ;;  %v4716_v14 = vld [vmem:[#allocation2 + $0x8] sm:$0xff] }
 0x195   : > { %v5935_v59 = vpop.permute.xlu1 %2615 }
 0x196   : > { %2916 = vrot.lane.b32.xlu0 %v2883_v18, %s4807_s25  ;;  %v1684_v18 = vrot.slane %v5747_v6, %v5069_v57  ;;  %v4320_v6 = vcombine.low %v1695_v33, %v1706_v7  ;;  %v2936_v50 = vsel %vm311_vm1, %v1387_v49, %v5824_v25  ;;  %v6863_v7 = vld [vmem:[#allocation14_spill] sm:$0xff] }
 0x197   : > { %2335 = vrot.lane.b32.xlu1 %v2302_v1, %s4801_s10  ;;  %v2482_v1 = vrot.slane %v2480_v17, 1  ;;  %v2595_v17 = vrot.slane %v2058_v3, 1  ;;  %v2987_v25 = vsel %vm2985_vm11, %v2936_v50, %v5827_v10  ;;  %v2776_v50 = vshll.u32 %v5762_v28, 16 }
 0x198   : > { %v5951_v27 = vpop.permute.xlu0 %2319  ;;  %v4319_v62 = vcombine.low %v1673_v48, %v1684_v18  ;;  %v1949_v33 = vshrl.u32 %v4320_v6, 16  ;;  %v1388_v48 = vmul.bf16 %v4716_v14, %v6863_v7  ;;  %v1952_v49 = vshll.u32 %v4320_v6, 16 }
 0x199   : > { %v5955_v30 = vpop.permute.xlu1 %2818  ;;  %v5975_v40 = vsel %vm1242_vm5, %v2478_v61, %v2482_v1 }
 0x19a   : > { %2333 = vrot.lane.b32.xlu0 %v2300_v9, %s4801_s10  ;;  %v1941_v12 = vshrl.u32 %v4319_v62, 16  ;;  %v2939_v61 = vsel %vm311_vm1, %v1388_v48, %v2233_v2  ;;  %v5995_v14 = vrot.slane %v1949_v33, 7  ;;  %v1944_v7 = vshll.u32 %v4319_v62, 16 }
 0x19b   : > { %2386 = vrot.lane.b32.xlu1 %v2026_v58, %s4803_s18  ;;  %v5978_v58 = vrot.slane %v2059_v55, 1  ;;  %v3022_v55 = vsel %vm3020_vm12, %v2987_v25, %v5847_v16  ;;  %v2989_v6 = vsel %vm2985_vm11, %v2939_v61, %v2318_v15  ;;  %v2596_v33 = vsel %vm2281_vm7, %v5868_v35, %v2595_v17 }
 0x19c   : > { %v2530_v52 = vpop.permute.xlu0 %2529  ;;  %v3056_v10 = vsel %vm455_vm0, %v3022_v55, %v5912_v31  ;;  %v1943_v16 = vrot.slane %v1941_v12, 7  ;;  %v3024_v15 = vsel %vm3020_vm12, %v2989_v6, %v5870_v24  ;;  %v1954_v62 = vor.u32 %v1952_v49, %v5995_v14 }
 0x19d   : > { %v5970_v51 = vpop.permute.xlu1 %2236  ;;  %v2598_v3 = vsel %vm2281_vm7, %v2595_v17, %v5978_v58  ;;  %v3091_v31 = vsel %vm3089_vm13, %v3056_v10, %v5882_v39  ;;  %v3058_v25 = vsel %vm455_vm0, %v3024_v15, %v2530_v52  ;;  %v6864_v35 = vmul.bf16 %v5284_v63, %v5273_v4 }
 0x19e   : > { %2384 = vrot.lane.b32.xlu0 %v2025_v21, %s4803_s18  ;;  %v2772_v21 = vshrl.u32 %v5760_v41, 16  ;;  %v1946_v55 = vor.u32 %v1944_v7, %v1943_v16  ;;  %v6023_v61 = vrot.slane %v2776_v50, 1  ;;  %v2077_v24 = vmul.bf16 %v5752_v60, %v5723_v45 }
 0x19f   : > { %2547 = vrot.lane.b32.xlu1 %v5975_v40, %s4808_s26  ;;  %v2942_v17 = vsel %vm311_vm1, %v6864_v35, %v5914_v42  ;;  %v3126_v52 = vsel %vm3124_vm14, %v3091_v31, %v5865_v47  ;;  %v2095_v4 = vmul.bf16 %v5907_v22, %v5760_v41  ;;  %v3093_v63 = vsel %vm3089_vm13, %v3058_v25, %v5895_v19 }
 0x1a0   : > { %v5983_v18 = vpop.permute.xlu0 %2668  ;;  %v2774_v12 = vor.u32 %v2772_v21, %v2482_v1  ;;  %v2991_v1 = vsel %vm2985_vm11, %v2942_v17, %v5951_v27  ;;  %v6045_v47 = vsel %vm315_vm6, %v1943_v16, %v1954_v62  ;;  %v3161_v27 = vsel %vm3159_vm15, %v3126_v52, %v5879_v13 }
 0x1a1   : > { %v2905_v9 = vpop.permute.xlu1 %2904  ;;  %v3026_v19 = vsel %vm3020_vm12, %v2991_v1, %v5861_v26  ;;  %v3128_v6 = vsel %vm3124_vm14, %v3093_v63, %v5845_v46  ;;  %v2884_v16 = vrot.slane %v2095_v4, 1  ;;  %v2096_v50 = vmul.bf16 %v5762_v28, %v5910_v43 }
 0x1a2   : > { %2545 = vrot.lane.b32.xlu0 %v5898_v44, %s4808_s26  ;;  %v2078_v44 = vmul.bf16 %v5760_v41, %v5720_v53  ;;  %v6039_v42 = vsel %vm1242_vm5, %v2774_v12, %v6023_v61  ;;  %v2009_v26 = vmul.bf16 %v5762_v28, %v6045_v47  ;;  %v2492_v1 = vshrl.u32 %v5762_v28, 16 }
 0x1a3   : > { %2631 = vrot.lane.b32.xlu1 %v2598_v3, %s4806_s24  ;;  %v6053_v3 = vsel %vm315_vm6, %v5876_v20, %v1946_v55  ;;  %v3196_v20 = vsel %vm3194_vm2, %v3161_v27, %v5891_v32  ;;  %v6082_v15 = vrot.slane %v2096_v50, 1  ;;  %v2496_v4 = vshll.u32 %v5764_v5, 16 }
 0x1a4   : > { %v2667_v2 = vpop.permute.xlu0 %2666  ;;  %v2008_v46 = vmul.bf16 %v6053_v3, %v5760_v41  ;;  %v6085_v25 = vrot.slane %v2009_v26, 1 }
 0x1a5   : > { %v6002_v48 = vpop.permute.xlu1 %2321  ;;  %v2887_v52 = vsel %vm2281_vm7, %v2884_v16, %v6082_v15 }
 0x1a6   : > { %2629 = vrot.lane.b32.xlu0 %v2596_v33, %s4806_s24 }
 0x1a7   : > { %2682 = vrot.lane.b32.xlu1 %v2078_v44, %s4804_s22 }
 0x1a8   : > { %v6021_v39 = vpop.permute.xlu0 %2372 }
 0x1a9   : > { %v6031_v49 = vpop.permute.xlu1 %2323 }
 0x1aa   : > { %2680 = vrot.lane.b32.xlu0 %v2077_v24, %s4804_s22 }
 0x1ab   : > { %2836 = vrot.lane.b32.xlu1 %v6039_v42, %s4805_s23 }
 0x1ac   : > { %v2532_v22 = vpop.permute.xlu0 %2531 }
 0x1ad   : > { %v2821_v21 = vpop.permute.xlu1 %2820  ;;  %v3060_v10 = vsel %vm455_vm0, %v3026_v19, %v2532_v22 }
 0x1ae   : > { %v3095_v13 = vsel %vm3089_vm13, %v3060_v10, %v5935_v59  ;;  %2834 = vrot.lane.b32.xlu0 %v5975_v40, %s4805_s23  ;;  %v3163_v59 = vsel %vm3159_vm15, %v3128_v6, %v5955_v30  ;;  %v2303_v30 = vrot.slane %v2008_v46, 1  ;;  %v1750_v10 = vrot.slane %v5474_v8, %v5069_v57 }
 0x1af   : > { %v3130_v7 = vsel %vm3124_vm14, %v3095_v13, %v2667_v2  ;;  %2252 = vrot.lane.b32.xlu1 %v5975_v40, %s4802_s17  ;;  %v2885_v2 = vsel %vm2281_vm7, %v5928_v36, %v2884_v16  ;;  %v3229_v40 = vshrl.u32 %v3196_v20, 16  ;;  %v1717_v13 = vrot.slane %v5417_v11, %v5069_v57 }
 0x1b0   : > { %v3165_v43 = vsel %vm3159_vm15, %v3130_v7, %v2821_v21  ;;  %v2903_v44 = vpop.permute.xlu0 %2902  ;;  %v2306_v19 = vsel %vm2281_vm7, %v2303_v30, %v6085_v25  ;;  %v1739_v21 = vrot.slane %v5450_v29, %v5069_v57  ;;  %v2028_v29 = vmul.bf16 %v5762_v28, %v5734_v23 }
 0x1b1   : > { %v3200_v33 = vsel %vm3194_vm2, %v3165_v43, %v2905_v9  ;;  %v6077_v31 = vpop.permute.xlu1 %2378  ;;  %v3198_v32 = vsel %vm3194_vm2, %v3163_v59, %v2903_v44  ;;  %v3231_v63 = vrot.slane %v3229_v40, 7  ;;  %v2304_v8 = vsel %vm2281_vm7, %v5931_v34, %v2303_v30  ;;  %v4717_v40 = vld [vmem:[#allocation2 + $0x18] sm:$0xff] }
 0x1b2   : > { %v3239_v12 = vshrl.u32 %v3200_v33, 16  ;;  %v3232_v62 = vshrl.u32 %v3198_v32, 16  ;;  %2918 = vrot.lane.b32.xlu0 %v2885_v2, %s4807_s25  ;;  %v3242_v55 = vshll.u32 %v3200_v33, 16  ;;  %v3235_v17 = vshll.u32 %v3198_v32, 16 }
 0x1b3   : > { %2254 = vrot.lane.b32.xlu1 %v6039_v42, %s4802_s17  ;;  %v2494_v20 = vor.u32 %v6023_v61, %v2492_v1  ;;  %v2498_v7 = vrot.slane %v2496_v4, 1  ;;  %v2061_v46 = vmul.bf16 %v6045_v47, %v5764_v5  ;;  %v1728_v11 = vrot.slane %v5794_v56, %v5069_v57 }
 0x1b4   : > { %v6089_v9 = vrot.slane %v3239_v12, 7  ;;  %v3234_v35 = vrot.slane %v3232_v62, 7  ;;  %v6091_v24 = vpop.permute.xlu0 %2617  ;;  %v4322_v43 = vcombine.low %v1739_v21, %v1750_v10  ;;  %v2027_v44 = vmul.bf16 %v5760_v41, %v5737_v37  ;;  %v6865_v62 = vld [vmem:[#allocation17_spill] sm:$0xff] }
 0x1b5   : > { %v6093_v36 = vpop.permute.xlu1 %2670  ;;  %v2060_v34 = vmul.bf16 %v5762_v28, %v6053_v3  ;;  %v4321_v33 = vcombine.low %v1717_v13, %v1728_v11  ;;  %v6130_v61 = vsel %vm1242_vm5, %v2494_v20, %v2498_v7  ;;  %v6133_v2 = vrot.slane %v2061_v46, 1 }
 0x1b6   : > { %v3237_v27 = vor.u32 %v3235_v17, %v3234_v35  ;;  %v3244_v22 = vor.u32 %v3242_v55, %v6089_v9  ;;  %2920 = vrot.lane.b32.xlu0 %v2887_v52, %s4807_s25  ;;  %v1965_v56 = vshrl.u32 %v4322_v43, 16  ;;  %v1390_v12 = vmul.bf16 %v4717_v40, %v5437_v0 }
 0x1b7   : > { %2339 = vrot.lane.b32.xlu1 %v2306_v19, %s4801_s10  ;;  %v6866_v30 = vmul.bf16 %v5357_v54, %v6865_v62  ;;  %v2599_v52 = vrot.slane %v2060_v34, 1  ;;  %v1957_v4 = vshrl.u32 %v4321_v33, 16  ;;  %v2788_v54 = vshrl.u32 %v5764_v5, 16 }
 0x1b8   : > { %v3238_v6 = vsel %vm315_vm6, %v3231_v63, %v3237_v27  ;;  %v3245_v16 = vsel %vm315_vm6, %v3234_v35, %v3244_v22  ;;  %v2239_v50 = vpop.permute.xlu0 %2238  ;;  %v2945_v27 = vsel %vm311_vm1, %v1390_v12, %v5970_v51  ;;  %v6155_v22 = vrot.slane %v1965_v56, 7 }
 0x1b9   : > { %3361 = vst.msk [vmem:[#allocation3] sm:$0xff] %vm3360_vm3, %v3238_v6  ;;  %3362 = vst.msk [vmem:[#allocation3 + $0x8] sm:$0xff] %vm3360_vm3, %v3245_v16  ;;  %v2536_v26 = vpop.permute.xlu1 %2535  ;;  %v2948_v55 = vsel %vm311_vm1, %v6866_v30, %v2239_v50  ;;  %v2602_v0 = vsel %vm2281_vm7, %v2599_v52, %v6133_v2  ;;  %v1968_v19 = vshll.u32 %v4322_v43, 16  ;;  %v2993_v21 = vsel %vm2985_vm11, %v2945_v27, %v6002_v48 }
 0x1ba   : > { %2337 = vrot.lane.b32.xlu0 %v2304_v8, %s4801_s10  ;;  %v2995_v10 = vsel %vm2985_vm11, %v2948_v55, %v6031_v49  ;;  %v3028_v51 = vsel %vm3020_vm12, %v2993_v21, %v6021_v39  ;;  %v1959_v50 = vrot.slane %v1957_v4, 7  ;;  %v2080_v48 = vmul.bf16 %v5764_v5, %v5734_v23  ;;  %v6868_v8 = vld [vmem:[#allocation10_spill] sm:$0xff] }
 0x1bb   : > { %2390 = vrot.lane.b32.xlu1 %v2028_v29, %s4803_s18  ;;  %v2600_v49 = vsel %vm2281_vm7, %v5978_v58, %v2599_v52  ;;  %v3030_v20 = vsel %vm3020_vm12, %v2995_v10, %v6868_v8  ;;  %v2790_v39 = vor.u32 %v2788_v54, %v2498_v7  ;;  %v1960_v46 = vshll.u32 %v4321_v33, 16 }
 0x1bc   : > { %v2534_v59 = vpop.permute.xlu0 %2533  ;;  %v1970_v11 = vor.u32 %v1968_v19, %v6155_v22  ;;  %v2079_v58 = vmul.bf16 %v5762_v28, %v5737_v37  ;;  %v3064_v56 = vsel %vm455_vm0, %v3030_v20, %v2536_v26  ;;  %v2097_v7 = vmul.bf16 %v6053_v3, %v5764_v5 }
 0x1bd   : > { %v2620_v32 = vpop.permute.xlu1 %2619  ;;  %v3062_v13 = vsel %vm455_vm0, %v3028_v51, %v2534_v59  ;;  %v1962_v34 = vor.u32 %v1960_v46, %v1959_v50 }
 0x1be   : > { %2388 = vrot.lane.b32.xlu0 %v2027_v44, %s4803_s18  ;;  %v3097_v43 = vsel %vm3089_vm13, %v3062_v13, %v6091_v24  ;;  %v6198_v12 = vsel %vm315_vm6, %v1959_v50, %v1970_v11  ;;  %v3099_v26 = vsel %vm3089_vm13, %v3064_v56, %v2620_v32  ;;  %v6869_v11 = vld [vmem:[#allocation29_spill] sm:$0xff]  ;;  %v6872_v56 = vld [vmem:[#allocation8_spill] sm:$0xff] }
 0x1bf   : > { %2551 = vrot.lane.b32.xlu1 %v6130_v61, %s4808_s26  ;;  %v3132_v24 = vsel %vm3124_vm14, %v3097_v43, %v5983_v18  ;;  %v6205_v52 = vsel %vm315_vm6, %v5995_v14, %v1962_v34  ;;  %v3134_v4 = vsel %vm3124_vm14, %v3099_v26, %v6093_v36  ;;  %v2512_v43 = vshll.u32 %v6869_v11, 16  ;;  %v6871_v34 = vld [vmem:[#allocation16_spill] sm:$0xff] }
 0x1c0   : > { %v6142_v35 = vpop.permute.xlu0 %2672  ;;  %v3377_v17 = vld [vmem:[#allocation3] sm:$0xff]  ;;  %v3378_v1 = vld [vmem:[#allocation3 + $0x8] sm:$0xff] }
 0x1c1   : > { %v6144_v63 = vpop.permute.xlu1 %2240  ;;  %4536 = vmatprep.mubr.msk.bf16.mxu1 %vm3360_vm3, %v3377_v17  ;;  %v2888_v17 = vrot.slane %v2097_v7, 1 }
 0x1c2   : > { %2549 = vrot.lane.b32.xlu0 %v6039_v42, %s4808_s26  ;;  %4537 = vmatmul.mubr.msk.bf16.vlgmr.msra.gmra.mrb[16].mxu1 %vm3360_vm3, %v3378_v1  ;;  %v6867_v42 = vld [vmem:[#allocation28_spill] sm:$0xff] }
 0x1c3   : > { %2635 = vrot.lane.b32.xlu1 %v2602_v0, %s4806_s24  ;;  %v2792_v16 = vshll.u32 %v6867_v42, 16  ;;  %v2098_v18 = vmul.bf16 %v6867_v42, %v6045_v47  ;;  %v2011_v32 = vmul.bf16 %v6867_v42, %v6198_v12  ;;  %v2010_v47 = vmul.bf16 %v6205_v52, %v5764_v5 }
 0x1c4   : > { %v6164_v6 = vpop.permute.xlu0 %2376  ;;  %v2889_v10 = vsel %vm2281_vm7, %v6082_v15, %v2888_v17 }
 0x1c5   : > { %v6168_v29 = vpop.permute.xlu1 %2327  ;;  %v6181_v44 = vrot.slane %v2792_v16, 1  ;;  %v6225_v51 = vrot.slane %v2098_v18, 1  ;;  %v2307_v8 = vrot.slane %v2010_v47, 1  ;;  %v6875_v18 = vld [vmem:[#allocation24_spill] sm:$0xff] }
 0x1c6   : > { %2633 = vrot.lane.b32.xlu0 %v2600_v49, %s4806_s24 }
 0x1c7   : > { %2686 = vrot.lane.b32.xlu1 %v2080_v48, %s4804_s22  ;;  %v6190_v33 = vsel %vm1242_vm5, %v2790_v39, %v6181_v44  ;;  %v2891_v20 = vsel %vm2281_vm7, %v2888_v17, %v6225_v51 }
 0x1c8   : > { %v2823_v59 = vpop.permute.xlu0 %2822 }
 0x1c9   : > { %v2825_v40 = vpop.permute.xlu1 %2824  ;;  %v3167_v62 = vsel %vm3159_vm15, %v3132_v24, %v2823_v59  ;;  %v6870_v59 = vld [vmem:[#allocation21_spill] sm:$0xff] }
 0x1ca   : > { %2684 = vrot.lane.b32.xlu0 %v2079_v58, %s4804_s22  ;;  %v3169_v27 = vsel %vm3159_vm15, %v3134_v4, %v2825_v40  ;;  %v1761_v58 = vrot.slane %v6870_v59, %v5069_v57  ;;  %v6873_v40 = vmul.bf16 %v6871_v34, %v6872_v56  ;;  %v2514_v4 = vrot.slane %v2512_v43, 1 }
 0x1cb   : > { %2840 = vrot.lane.b32.xlu1 %v6190_v33, %s4805_s23 }
 0x1cc   : > { %v2907_v3 = vpop.permute.xlu0 %2906  ;;  %v2951_v7 = vsel %vm311_vm1, %v6873_v40, %v6144_v63 }
 0x1cd   : > { %v2243_v30 = vpop.permute.xlu1 %2242  ;;  %v3202_v55 = vsel %vm3194_vm2, %v3167_v62, %v2907_v3  ;;  %v6874_v62 = vld [vmem:[#allocation30_spill] sm:$0xff] }
 0x1ce   : > { %v3246_v1 = vshrl.u32 %v3202_v55, 16  ;;  %2838 = vrot.lane.b32.xlu0 %v6130_v61, %s4805_s23  ;;  %v3249_v0 = vshll.u32 %v3202_v55, 16  ;;  %v1772_v3 = vrot.slane %v6874_v62, %v5069_v57 }
 0x1cf   : > { %2256 = vrot.lane.b32.xlu1 %v6130_v61, %s4802_s17  ;;  %v6228_v61 = vrot.slane %v2011_v32, 1  ;;  %v2308_v32 = vsel %vm2281_vm7, %v6085_v25, %v2307_v8 }
 0x1d0   : > { %v3248_v14 = vrot.slane %v3246_v1, 7  ;;  %v2909_v54 = vpop.permute.xlu0 %2908  ;;  %v2030_v1 = vmul.bf16 %v6867_v42, %v6875_v18  ;;  %v4323_v57 = vcombine.low %v1761_v58, %v1772_v3 }
 0x1d1   : > { %v6220_v19 = vpop.permute.xlu1 %2674  ;;  %v3204_v21 = vsel %vm3194_vm2, %v3169_v27, %v2909_v54  ;;  %v2310_v46 = vsel %vm2281_vm7, %v2307_v8, %v6228_v61  ;;  %v2063_v27 = vmul.bf16 %v6198_v12, %v6869_v11 }
 0x1d2   : > { %v3251_v36 = vor.u32 %v3249_v0, %v3248_v14  ;;  %v3253_v16 = vshrl.u32 %v3204_v21, 16  ;;  %2922 = vrot.lane.b32.xlu0 %v2889_v10, %s4807_s25  ;;  %v3256_v48 = vshll.u32 %v3204_v21, 16  ;;  %v6877_v0 = vld [vmem:[#allocation19_spill] sm:$0xff]  ;;  %v1973_v8 = vshrl.u32 %v4323_v57, 16 }
 0x1d3   : > { %2258 = vrot.lane.b32.xlu1 %v6190_v33, %s4802_s17  ;;  %v1976_v62 = vshll.u32 %v4323_v57, 16 }
 0x1d4   : > { %v3252_v50 = vsel %vm315_vm6, %v6089_v9, %v3251_v36  ;;  %v6234_v13 = vrot.slane %v3253_v16, 7  ;;  %v2326_v49 = vpop.permute.xlu0 %2325  ;;  %v2508_v9 = vshrl.u32 %v6867_v42, 16  ;;  %v6879_v36 = vld [vmem:[#allocation25_spill] sm:$0xff]  ;;  %v2062_v16 = vmul.bf16 %v6867_v42, %v6205_v52 }
 0x1d5   : > { %3363 = vst.msk [vmem:[#allocation3 + $0x10] sm:$0xff] %vm3360_vm3, %v3252_v50  ;;  %v2540_v15 = vpop.permute.xlu1 %2539  ;;  %v2997_v55 = vsel %vm2985_vm11, %v2951_v7, %v2326_v49  ;;  %v6299_v56 = vrot.slane %v1973_v8, 7 }
 0x1d6   : > { %v3258_v39 = vor.u32 %v3256_v48, %v6234_v13  ;;  %2924 = vrot.lane.b32.xlu0 %v2891_v20, %s4807_s25  ;;  %v2510_v63 = vor.u32 %v6181_v44, %v2508_v9  ;;  %v3032_v21 = vsel %vm3020_vm12, %v2997_v55, %v6164_v6  ;;  %v2029_v44 = vmul.bf16 %v5764_v5, %v6879_v36 }
 0x1d7   : > { %2343 = vrot.lane.b32.xlu1 %v2310_v46, %s4801_s10  ;;  %v6284_v6 = vrot.slane %v2063_v27, 1  ;;  %v2603_v9 = vrot.slane %v2062_v16, 1  ;;  %v2082_v55 = vmul.bf16 %v6869_v11, %v6875_v18  ;;  %v2081_v27 = vmul.bf16 %v6867_v42, %v6879_v36 }
 0x1d8   : > { %v3259_v24 = vsel %vm315_vm6, %v3248_v14, %v3258_v39  ;;  %v2622_v26 = vpop.permute.xlu0 %2621  ;;  %v6876_v14 = vld [vmem:[#allocation20_spill] sm:$0xff] }
 0x1d9   : > { %3364 = vst.msk [vmem:[#allocation3 + $0x18] sm:$0xff] %vm3360_vm3, %v3259_v24  ;;  %v2624_v17 = vpop.permute.xlu1 %2623  ;;  %v6878_v54 = vmul.bf16 %v6876_v14, %v6877_v0  ;;  %v2606_v34 = vsel %vm2281_vm7, %v2603_v9, %v6284_v6 }
 0x1da   : > { %2341 = vrot.lane.b32.xlu0 %v2308_v32, %s4801_s10  ;;  %v1978_v32 = vor.u32 %v1976_v62, %v6299_v56 }
 0x1db   : > { %2394 = vrot.lane.b32.xlu1 %v2030_v1, %s4803_s18  ;;  %v2954_v47 = vsel %vm311_vm1, %v6878_v54, %v2243_v30  ;;  %v2515_v30 = vsel %vm1242_vm5, %v2510_v63, %v2514_v4 }
 0x1dc   : > { %v2538_v25 = vpop.permute.xlu0 %2537  ;;  %v3379_v10 = vld [vmem:[#allocation3 + $0x10] sm:$0xff]  ;;  %v2999_v20 = vsel %vm2985_vm11, %v2954_v47, %v6168_v29  ;;  %v2804_v29 = vshrl.u32 %v6869_v11, 16 }
 0x1dd   : > { %v6277_v50 = vpop.permute.xlu1 %2244  ;;  %v3066_v48 = vsel %vm455_vm0, %v3032_v21, %v2538_v25  ;;  %4540 = vmatprep.mubr.msk.bf16.mxu1 %vm3360_vm3, %v3379_v10  ;;  %v3034_v58 = vsel %vm3020_vm12, %v2999_v20, %v6077_v31  ;;  %v2099_v21 = vmul.bf16 %v6205_v52, %v6869_v11 }
 0x1de   : > { %v3101_v49 = vsel %vm3089_vm13, %v3066_v48, %v2622_v26  ;;  %2392 = vrot.lane.b32.xlu0 %v2029_v44, %s4803_s18  ;;  %v3068_v40 = vsel %vm455_vm0, %v3034_v58, %v2540_v15  ;;  %v2604_v15 = vsel %vm2281_vm7, %v6133_v2, %v2603_v9  ;;  %v6336_v44 = vsel %vm315_vm6, %v6155_v22, %v1978_v32  ;;  %v2048_v32 = vld [vmem:[#allocation2 + $0x90] sm:$0x1] }
 0x1df   : > { %2555 = vrot.lane.b32.xlu1 %v2515_v30, %s4808_s26  ;;  %v3136_v59 = vsel %vm3124_vm14, %v3101_v49, %v6142_v35  ;;  %v6303_v35 = vld [vmem:[#allocation2 + $0x88] sm:$0xff]  ;;  %v3103_v7 = vsel %vm3089_vm13, %v3068_v40, %v2624_v17  ;;  %v2806_v17 = vor.u32 %v2804_v29, %v2514_v4  ;;  %v2892_v20 = vrot.slane %v2099_v21, 1  ;;  %v6883_v21 = vld [vmem:[#allocation9_spill] sm:$0xff] }
 0x1e0   : > { %v2827_v39 = vpop.permute.xlu0 %2826  ;;  %v3380_v46 = vld [vmem:[#allocation3 + $0x18] sm:$0xff]  ;;  %v2520_v26 = vshll.u32 %v6303_v35, 16  ;;  %v3138_v63 = vsel %vm3124_vm14, %v3103_v7, %v6220_v19  ;;  %v2012_v22 = vmul.bf16 %v6336_v44, %v6869_v11 }
 0x1e1   : > { %v2829_v43 = vpop.permute.xlu1 %2828  ;;  %4541 = vmatmul.mubr.msk.bf16.gmra.mrb[20].mxu1 %vm3360_vm3, %v3380_v46  ;;  %v3171_v31 = vsel %vm3159_vm15, %v3136_v59, %v2827_v39  ;;  %v1420_v39 = vld [vmem:[#allocation2 + $0x88] sm:$0x1]  ;;  %v2100_v46 = vmul.bf16 %v6303_v35, %v6198_v12  ;;  %v2893_v12 = vsel %vm2281_vm7, %v6225_v51, %v2892_v20 }
 0x1e2   : > { %2553 = vrot.lane.b32.xlu0 %v6190_v33, %s4808_s26  ;;  %v3173_v57 = vsel %vm3159_vm15, %v3138_v63, %v2829_v43  ;;  %v2522_v2 = vrot.slane %v2520_v26, 1  ;;  %v2013_v59 = vmul.bf16 %v6299_v56, %v1420_v39  ;;  %v2311_v29 = vrot.slane %v2012_v22, 1 }
 0x1e3   : > { %2639 = vrot.lane.b32.xlu1 %v2606_v34, %s4806_s24  ;;  %v6357_v34 = vrot.slane %v2100_v46, 1  ;;  %v2064_v63 = vmul.bf16 %v6303_v35, %v6336_v44 }
 0x1e4   : > { %v2911_v24 = vpop.permute.xlu0 %2910  ;;  %v6329_v10 = vsel %vm1242_vm5, %v2806_v17, %v2522_v2  ;;  %v2313_v7 = vrot.slane %v2013_v59, 1  ;;  %v6885_v59 = vld [vmem:[#allocation22_spill] sm:$0xff] }
 0x1e5   : > { %v6308_v3 = vpop.permute.xlu1 %2246  ;;  %v3206_v33 = vsel %vm3194_vm2, %v3171_v31, %v2911_v24  ;;  %v2895_v24 = vsel %vm2281_vm7, %v2892_v20, %v6357_v34 }
 0x1e6   : > { %v3260_v1 = vshrl.u32 %v3206_v33, 16  ;;  %2637 = vrot.lane.b32.xlu0 %v2604_v15, %s4806_s24  ;;  %v3263_v0 = vshll.u32 %v3206_v33, 16  ;;  %v2314_v26 = vsel %vm2281_vm7, %v2311_v29, %v2313_v7 }
 0x1e7   : > { %2690 = vrot.lane.b32.xlu1 %v2082_v55, %s4804_s22  ;;  %v6880_v55 = vld [vmem:[#allocation26_spill] sm:$0xff] }
 0x1e8   : > { %v3262_v14 = vrot.slane %v3260_v1, 7  ;;  %v2913_v54 = vpop.permute.xlu0 %2912  ;;  %v2032_v15 = vmul.bf16 %v6303_v35, %v6880_v55  ;;  %v2312_v1 = vsel %vm2281_vm7, %v6228_v61, %v2311_v29  ;;  %v6882_v61 = vld [vmem:[#allocation18_spill] sm:$0xff] }
 0x1e9   : > { %v6323_v47 = vpop.permute.xlu1 %2331  ;;  %v3208_v4 = vsel %vm3194_vm2, %v3173_v57, %v2913_v54  ;;  %v6881_v57 = vld [vmem:[#allocation27_spill] sm:$0xff] }
 0x1ea   : > { %v3265_v25 = vor.u32 %v3263_v0, %v3262_v14  ;;  %v3267_v19 = vshrl.u32 %v3208_v4, 16  ;;  %2688 = vrot.lane.b32.xlu0 %v2081_v27, %s4804_s22  ;;  %v3270_v52 = vshll.u32 %v3208_v4, 16  ;;  %v2065_v0 = vmul.bf16 %v2048_v32, %v6299_v56 }
 0x1eb   : > { %2844 = vrot.lane.b32.xlu1 %v6329_v10, %s4805_s23 }
 0x1ec   : > { %v3266_v16 = vsel %vm315_vm6, %v6234_v13, %v3265_v25  ;;  %v6340_v48 = vrot.slane %v3267_v19, 7  ;;  %v2330_v49 = vpop.permute.xlu0 %2329  ;;  %v6884_v25 = vmul.bf16 %v6882_v61, %v6883_v21  ;;  %v2609_v46 = vrot.slane %v2065_v0, 1 }
 0x1ed   : > { %3365 = vst.msk [vmem:[#allocation3 + $0x20] sm:$0xff] %vm3360_vm3, %v3266_v16  ;;  %v6343_v8 = vpop.permute.xlu1 %2382  ;;  %v2607_v16 = vrot.slane %v2064_v63, 1 }
 0x1ee   : > { %v3272_v9 = vor.u32 %v3270_v52, %v6340_v48  ;;  %2842 = vrot.lane.b32.xlu0 %v2515_v30, %s4805_s23  ;;  %v2957_v19 = vsel %vm311_vm1, %v6884_v25, %v6277_v50  ;;  %v6886_v50 = vld [vmem:[#allocation13_spill] sm:$0xff] }
 0x1ef   : > { %2260 = vrot.lane.b32.xlu1 %v2515_v30, %s4802_s17  ;;  %v3001_v52 = vsel %vm2985_vm11, %v2957_v19, %v2330_v49 }
 0x1f0   : > { %v3273_v13 = vsel %vm315_vm6, %v3262_v14, %v3272_v9  ;;  %v2381_v43 = vpop.permute.xlu0 %2380  ;;  %v2031_v14 = vmul.bf16 %v6869_v11, %v6881_v57  ;;  %v2067_v9 = vld [vmem:[#allocation2 + $0x90] sm:$0xff] }
 0x1f1   : > { %3366 = vst.msk [vmem:[#allocation3 + $0x28] sm:$0xff] %vm3360_vm3, %v3273_v13  ;;  %v2544_v58 = vpop.permute.xlu1 %2543  ;;  %v3036_v20 = vsel %vm3020_vm12, %v3001_v52, %v2381_v43  ;;  %v2809_v13 = vshll.u32 %v2067_v9, 16  ;;  %v2813_v7 = vshrl.u32 %v2067_v9, 16 }
 0x1f2   : > { %2926 = vrot.lane.b32.xlu0 %v2893_v12, %s4807_s25  ;;  %v6887_v12 = vmul.bf16 %v6885_v59, %v6886_v50 }
 0x1f3   : > { %2262 = vrot.lane.b32.xlu1 %v2806_v17, %s4802_s17  ;;  %v2524_v17 = vshrl.u32 %v6303_v35, 16 }
 0x1f4   : > { %v2542_v40 = vpop.permute.xlu0 %2541  ;;  %v3381_v30 = vld [vmem:[#allocation3 + $0x20] sm:$0xff]  ;;  %v2960_v29 = vsel %vm311_vm1, %v6887_v12, %v6308_v3 }
 0x1f5   : > { %v2628_v31 = vpop.permute.xlu1 %2627  ;;  %4544 = vmatprep.mubr.msk.bf16.mxu1 %vm3360_vm3, %v3381_v30  ;;  %v2526_v4 = vor.u32 %v2524_v17, %v2522_v2  ;;  %v3070_v2 = vsel %vm455_vm0, %v3036_v20, %v2542_v40  ;;  %v2610_v30 = vsel %vm2281_vm7, %v2607_v16, %v2609_v46  ;;  %v3003_v43 = vsel %vm2985_vm11, %v2960_v29, %v6323_v47  ;;  %v2085_v17 = vld [vmem:[#allocation2 + $0x98] sm:$0x1] }
 0x1f6   : > { %2928 = vrot.lane.b32.xlu0 %v2895_v24, %s4807_s25  ;;  %v3038_v24 = vsel %vm3020_vm12, %v3003_v43, %v6343_v8  ;;  %v2608_v47 = vsel %vm2281_vm7, %v6284_v6, %v2607_v16  ;;  %v2101_v8 = vmul.bf16 %v2067_v9, %v6336_v44 }
 0x1f7   : > { %2347 = vrot.lane.b32.xlu1 %v2314_v26, %s4801_s10 }
 0x1f8   : > { %v2626_v51 = vpop.permute.xlu0 %2625  ;;  %v3382_v62 = vld [vmem:[#allocation3 + $0x28] sm:$0xff] }
 0x1f9   : > { %v2679_v33 = vpop.permute.xlu1 %2678  ;;  %4545 = vmatmul.mubr.msk.bf16.gmra.mrb[24].mxu1 %vm3360_vm3, %v3382_v62  ;;  %v3105_v49 = vsel %vm3089_vm13, %v3070_v2, %v2626_v51  ;;  %v2084_v51 = vmul.bf16 %v2067_v9, %v6880_v55  ;;  %v3072_v62 = vsel %vm455_vm0, %v3038_v24, %v2544_v58  ;;  %v3697_v24 = vld [vmem:[%s6793_s4] sm:$0xf] }
 0x1fa   : > { %2345 = vrot.lane.b32.xlu0 %v2312_v1, %s4801_s10  ;;  %v2811_v1 = vrot.slane %v2809_v13, 1  ;;  %v3107_v32 = vsel %vm3089_vm13, %v3072_v62, %v2628_v31  ;;  %v2102_v31 = vmul.bf16 %v2085_v17, %v6299_v56  ;;  %4607 = vmatprep.subr.msk.bf16.mxu0 %vm3484_vm8, %v3697_v24 }
 0x1fb   : > { %2398 = vrot.lane.b32.xlu1 %v2032_v15, %s4803_s18 }
 0x1fc   : > { %v2677_v27 = vpop.permute.xlu0 %2676  ;;  %v2815_v58 = vor.u32 %v2813_v7, %v2811_v1  ;;  %v2812_v46 = vsel %vm1242_vm5, %v2526_v4, %v2811_v1 }
 0x1fd   : > { %v2833_v54 = vpop.permute.xlu1 %2832  ;;  %v3140_v40 = vsel %vm3124_vm14, %v3105_v49, %v2677_v27  ;;  %v3142_v27 = vsel %vm3124_vm14, %v3107_v32, %v2679_v33  ;;  %v2896_v33 = vrot.slane %v2101_v8, 1  ;;  %v6890_v32 = vmul.bf16 %v5731_v38, %v5720_v53 }
 0x1fe   : > { %2396 = vrot.lane.b32.xlu0 %v2031_v14, %s4803_s18  ;;  %v2083_v14 = vmul.bf16 %v6303_v35, %v6881_v57  ;;  %v3177_v0 = vsel %vm3159_vm15, %v3142_v27, %v2833_v54 }
 0x1ff   : > { %2559 = vrot.lane.b32.xlu1 %v2526_v4, %s4808_s26  ;;  %v2897_v50 = vsel %vm2281_vm7, %v6357_v34, %v2896_v33  ;;  %v6888_v34 = vld [vmem:[#allocation23_spill] sm:$0xff] }
 0x200   : > { %v2831_v39 = vpop.permute.xlu0 %2830 }
 0x201   : > { %v6390_v22 = vpop.permute.xlu1 %2248  ;;  %v3175_v3 = vsel %vm3159_vm15, %v3140_v40, %v2831_v39  ;;  %v2898_v39 = vrot.slane %v2102_v31, 1 }
 0x202   : > { %2557 = vrot.lane.b32.xlu0 %v6329_v10, %s4808_s26  ;;  %s296_s26 = sand.u32 1, %s4788_s28  }
 0x203   : > { %2643 = vrot.lane.b32.xlu1 %v2610_v30, %s4806_s24  ;;  %v2899_v2 = vsel %vm2281_vm7, %v2896_v33, %v2898_v39  ;;  %s4254_s19 = sshll.u32 %s296_s26, 7 }
 0x204   : > { %v2915_v26 = vpop.permute.xlu0 %2914  ;;  %s6627_s21 = scalar_lea.vmem [#allocation4], %s4254_s19 }
 0x205   : > { %v6410_v15 = vpop.permute.xlu1 %2250  ;;  %v3210_v10 = vsel %vm3194_vm2, %v3175_v3, %v2915_v26  ;;  %v6889_v3 = vmul.bf16 %v6888_v34, %v5723_v45  ;;  %s4188_s12 = sshll.u32 %s6627_s21, 4  ;;  %s6738_s12 = int_to_ptr.vmem [resolvable:$true] %s4188_s12 }
 0x206   : > { %v3274_v63 = vshrl.u32 %v3210_v10, 16  ;;  %2641 = vrot.lane.b32.xlu0 %v2608_v47, %s4806_s24  ;;  %v3277_v61 = vshll.u32 %v3210_v10, 16  ;;  %v2966_v45 = vsel %vm311_vm1, %v6890_v32, %v6410_v15  ;;  %s4734_s18 = scalar_lea.vmem %s6738_s12, 2048 }
 0x207   : > { %2694 = vrot.lane.b32.xlu1 %v2084_v51, %s4804_s22  ;;  %v2963_v26 = vsel %vm311_vm1, %v6889_v3, %v6390_v22  ;;  %v3754_v51 = vsel %vm3484_vm8, %v3697_v24, 0  ;;  %p4735_p11 = scmp.ne.s32.totalorder %s6738_s12, %s4734_s18 }
 0x208   : > { %v3276_v6 = vrot.slane %v3274_v63, 7  ;;  %v2917_v21 = vpop.permute.xlu0 %2916  ;;  %4569 = vmatpush3.bf16.msra.mxu0 %v3754_v51  ;;  %v6892_v51 = vmul.bf16 %v5760_v41, %v5734_v23 }
 0x209   : > { %v2336_v25 = vpop.permute.xlu1 %2335  ;;  %v3212_v19 = vsel %vm3194_vm2, %v3177_v0, %v2917_v21  ;;  %p4736_p12 = pnand %p4735_p11, %p4894_p5 }
 0x20a   : > { %v3279_v16 = vor.u32 %v3277_v61, %v3276_v6  ;;  %v3281_v44 = vshrl.u32 %v3212_v19, 16  ;;  %2692 = vrot.lane.b32.xlu0 %v2083_v14, %s4804_s22  ;;  %v3284_v54 = vshll.u32 %v3212_v19, 16  ;;  %v3007_v63 = vsel %vm2985_vm11, %v2966_v45, %v2336_v25  ;;  %s4809_s22 = smov [#allocation4]  }
 0x20b   : > { %2848 = vrot.lane.b32.xlu1 %v2815_v58, %s4805_s23  ;;  %p4737_p13 = pneg %p4736_p12 }
 0x20c   : > { %v3280_v35 = vsel %vm315_vm6, %v6340_v48, %v3279_v16  ;;  %v3283_v52 = vrot.slane %v3281_v44, 7  ;;  %v2334_v20 = vpop.permute.xlu0 %2333 }
 0x20d   : > { %3367 = vst.msk [vmem:[#allocation3 + $0x30] sm:$0xff] %vm3360_vm3, %v3280_v35  ;;  %v2387_v56 = vpop.permute.xlu1 %2386  ;;  %v3005_v62 = vsel %vm2985_vm11, %v2963_v26, %v2334_v20 }
 0x20e   : > { %v3286_v9 = vor.u32 %v3284_v54, %v3283_v52  ;;  %2846 = vrot.lane.b32.xlu0 %v2812_v46, %s4805_s23  ;;  %v3042_v27 = vsel %vm3020_vm12, %v3007_v63, %v2387_v56  ;;  %s4738_s23 = sshll.u32 %s4809_s22, 4  ;;  %s4739_s23 = int_to_ptr.vmem [resolvable:$false] %s4738_s23 }
 0x20f   : > { %2932 = vrot.lane.b32.xlu1 %v2899_v2, %s4807_s25  ;;  %s4740_s24 = scalar_lea.vmem %s4739_s23, 4096  ;;  %p4741_p0 = scmp.lt.s32.totalorder %s6738_s12, %s4739_s23 }
 0x210   : > { %v3287_v13 = vsel %vm315_vm6, %v3276_v6, %v3286_v9  ;;  %v2385_v59 = vpop.permute.xlu0 %2384  ;;  %p4742_p1 = scmp.lt.s32.totalorder %s4740_s24, %s4734_s18 }
 0x211   : > { %3368 = vst.msk [vmem:[#allocation3 + $0x38] sm:$0xff] %vm3360_vm3, %v3287_v13  ;;  %v2548_v48 = vpop.permute.xlu1 %2547  ;;  %v3040_v10 = vsel %vm3020_vm12, %v3005_v62, %v2385_v59 }
 0x212   : > { %2930 = vrot.lane.b32.xlu0 %v2897_v50, %s4807_s25  ;;  %v3076_v0 = vsel %vm455_vm0, %v3042_v27, %v2548_v48  ;;  %p4743_p2 = por %p4742_p1, %p4741_p0 }
 0x214   : > { %v2546_v12 = vpop.permute.xlu0 %2545  ;;  %v3383_v4 = vld [vmem:[#allocation3 + $0x30] sm:$0xff]  ;;  %p4744_p3 = pnand %p4743_p2, %p4737_p13 }
 0x215   : > { %v2632_v29 = vpop.permute.xlu1 %2631  ;;  %4548 = vmatprep.mubr.msk.bf16.mxu1 %vm3360_vm3, %v3383_v4  ;;  %v3074_v1 = vsel %vm455_vm0, %v3040_v10, %v2546_v12 }
 0x216   : > { %v3111_v53 = vsel %vm3089_vm13, %v3076_v0, %v2632_v29 }
 0x218   : > { %v2630_v49 = vpop.permute.xlu0 %2629  ;;  %v3384_v30 = vld [vmem:[#allocation3 + $0x38] sm:$0xff] }
 0x219   : > { %v2683_v43 = vpop.permute.xlu1 %2682  ;;  %4549 = vmatmul.mubr.msk.bf16.gmra.mrb[28].mxu1 %vm3360_vm3, %v3384_v30  ;;  %v3109_v22 = vsel %vm3089_vm13, %v3074_v1, %v2630_v49 }
 0x21a   : > { %v3146_v15 = vsel %vm3124_vm14, %v3111_v53, %v2683_v43  ;;  %v6891_v43 = vmul.bf16 %v5752_v60, %v5737_v37 }
 0x21c   : > { %v2681_v40 = vpop.permute.xlu0 %2680 }
 0x21d   : > { %v2837_v7 = vpop.permute.xlu1 %2836  ;;  %v3144_v8 = vsel %vm3124_vm14, %v3109_v22, %v2681_v40 }
 0x21e   : > { %v3181_v21 = vsel %vm3159_vm15, %v3146_v15, %v2837_v7 }
 0x220   : > { %v2835_v47 = vpop.permute.xlu0 %2834 }
 0x221   : > { %v2253_v17 = vpop.permute.xlu1 %2252  ;;  %v3179_v58 = vsel %vm3159_vm15, %v3144_v8, %v2835_v47 }
 0x222   : > { %v2969_v40 = vsel %vm311_vm1, %v6891_v43, %v2253_v17 }
 0x224   : > { %v2919_v14 = vpop.permute.xlu0 %2918 }
 0x225   : > { %v2255_v6 = vpop.permute.xlu1 %2254  ;;  %v3214_v61 = vsel %vm3194_vm2, %v3179_v58, %v2919_v14 }
 0x226   : > { %v3288_v38 = vshrl.u32 %v3214_v61, 16  ;;  %v3291_v25 = vshll.u32 %v3214_v61, 16  ;;  %v2972_v62 = vsel %vm311_vm1, %v6892_v51, %v2255_v6 }
 0x228   : > { %v3290_v31 = vrot.slane %v3288_v38, 7  ;;  %v2921_v19 = vpop.permute.xlu0 %2920 }
 0x229   : > { %v2340_v16 = vpop.permute.xlu1 %2339  ;;  %v3216_v44 = vsel %vm3194_vm2, %v3181_v21, %v2921_v19 }
 0x22a   : > { %v3293_v33 = vor.u32 %v3291_v25, %v3290_v31  ;;  %v3295_v35 = vshrl.u32 %v3216_v44, 16  ;;  %v3298_v39 = vshll.u32 %v3216_v44, 16  ;;  %v3011_v47 = vsel %vm2985_vm11, %v2972_v62, %v2340_v16 }
 0x22c   : > { %v3294_v54 = vsel %vm315_vm6, %v3283_v52, %v3293_v33  ;;  %v3297_v20 = vrot.slane %v3295_v35, 7  ;;  %v2338_v56 = vpop.permute.xlu0 %2337 }
 0x22d   : > { %3369 = vst.msk [vmem:[#allocation3 + $0x40] sm:$0xff] %vm3360_vm3, %v3294_v54  ;;  %v2391_v46 = vpop.permute.xlu1 %2390  ;;  %v3009_v7 = vsel %vm2985_vm11, %v2969_v40, %v2338_v56 }
 0x22e   : > { %v3300_v9 = vor.u32 %v3298_v39, %v3297_v20  ;;  %v3046_v60 = vsel %vm3020_vm12, %v3011_v47, %v2391_v46 }
 0x230   : > { %v3301_v2 = vsel %vm315_vm6, %v3290_v31, %v3300_v9  ;;  %v2389_v13 = vpop.permute.xlu0 %2388 }
 0x231   : > { %3370 = vst.msk [vmem:[#allocation3 + $0x48] sm:$0xff] %vm3360_vm3, %v3301_v2  ;;  %v2552_v59 = vpop.permute.xlu1 %2551  ;;  %v3044_v24 = vsel %vm3020_vm12, %v3009_v7, %v2389_v13  ;;  %v6893_v13 = vmul.bf16 %v5762_v28, %v6879_v36 }
 0x232   : > { %v3080_v32 = vsel %vm455_vm0, %v3046_v60, %v2552_v59 }
 0x234   : > { %v2550_v48 = vpop.permute.xlu0 %2549  ;;  %v3385_v50 = vld [vmem:[#allocation3 + $0x40] sm:$0xff] }
 0x235   : > { %v2636_v12 = vpop.permute.xlu1 %2635  ;;  %4552 = vmatprep.mubr.msk.bf16.mxu1 %vm3360_vm3, %v3385_v50  ;;  %v3078_v3 = vsel %vm455_vm0, %v3044_v24, %v2550_v48 }
 0x236   : > { %v3115_v23 = vsel %vm3089_vm13, %v3080_v32, %v2636_v12 }
 0x238   : > { %v2634_v4 = vpop.permute.xlu0 %2633  ;;  %v3386_v52 = vld [vmem:[#allocation3 + $0x48] sm:$0xff] }
 0x239   : > { %v2687_v29 = vpop.permute.xlu1 %2686  ;;  %4553 = vmatmul.mubr.msk.bf16.gmra.mrb[32].mxu1 %vm3360_vm3, %v3386_v52  ;;  %v3113_v10 = vsel %vm3089_vm13, %v3078_v3, %v2634_v4 }
 0x23a   : > { %v3150_v63 = vsel %vm3124_vm14, %v3115_v23, %v2687_v29  ;;  %v6894_v29 = vmul.bf16 %v5764_v5, %v6875_v18 }
 0x23c   : > { %v2685_v49 = vpop.permute.xlu0 %2684 }
 0x23d   : > { %v2841_v30 = vpop.permute.xlu1 %2840  ;;  %v3148_v37 = vsel %vm3124_vm14, %v3113_v10, %v2685_v49 }
 0x23e   : > { %v3185_v8 = vsel %vm3159_vm15, %v3150_v63, %v2841_v30 }
 0x240   : > { %v2839_v34 = vpop.permute.xlu0 %2838 }
 0x241   : > { %v2257_v26 = vpop.permute.xlu1 %2256  ;;  %v3183_v1 = vsel %vm3159_vm15, %v3148_v37, %v2839_v34 }
 0x242   : > { %v2975_v59 = vsel %vm311_vm1, %v6893_v13, %v2257_v26 }
 0x244   : > { %v2923_v17 = vpop.permute.xlu0 %2922 }
 0x245   : > { %v2259_v45 = vpop.permute.xlu1 %2258  ;;  %v3218_v22 = vsel %vm3194_vm2, %v3183_v1, %v2923_v17 }
 0x246   : > { %v3302_v41 = vshrl.u32 %v3218_v22, 16  ;;  %v3305_v58 = vshll.u32 %v3218_v22, 16  ;;  %v2978_v49 = vsel %vm311_vm1, %v6894_v29, %v2259_v45 }
 0x248   : > { %v3304_v27 = vrot.slane %v3302_v41, 7  ;;  %v2925_v14 = vpop.permute.xlu0 %2924 }
 0x249   : > { %v2344_v0 = vpop.permute.xlu1 %2343  ;;  %v3220_v6 = vsel %vm3194_vm2, %v3185_v8, %v2925_v14 }
 0x24a   : > { %v3307_v61 = vor.u32 %v3305_v58, %v3304_v27  ;;  %v3309_v53 = vshrl.u32 %v3220_v6, 16  ;;  %v3312_v21 = vshll.u32 %v3220_v6, 16  ;;  %v3015_v43 = vsel %vm2985_vm11, %v2978_v49, %v2344_v0 }
 0x24c   : > { %v3308_v38 = vsel %vm315_vm6, %v3297_v20, %v3307_v61  ;;  %v3311_v15 = vrot.slane %v3309_v53, 7  ;;  %v2342_v31 = vpop.permute.xlu0 %2341 }
 0x24d   : > { %3371 = vst.msk [vmem:[#allocation3 + $0x50] sm:$0xff] %vm3360_vm3, %v3308_v38  ;;  %v2395_v25 = vpop.permute.xlu1 %2394  ;;  %v3013_v48 = vsel %vm2985_vm11, %v2975_v59, %v2342_v31 }
 0x24e   : > { %v3314_v19 = vor.u32 %v3312_v21, %v3311_v15  ;;  %v3050_v36 = vsel %vm3020_vm12, %v3015_v43, %v2395_v25 }
 0x250   : > { %v3315_v16 = vsel %vm315_vm6, %v3304_v27, %v3314_v19  ;;  %v2393_v44 = vpop.permute.xlu0 %2392 }
 0x251   : > { %3372 = vst.msk [vmem:[#allocation3 + $0x58] sm:$0xff] %vm3360_vm3, %v3315_v16  ;;  %v2556_v33 = vpop.permute.xlu1 %2555  ;;  %v3048_v50 = vsel %vm3020_vm12, %v3013_v48, %v2393_v44  ;;  %v6896_v44 = vmul.bf16 %v6867_v42, %v6881_v57 }
 0x252   : > { %v3084_v24 = vsel %vm455_vm0, %v3050_v36, %v2556_v33 }
 0x254   : > { %v2554_v35 = vpop.permute.xlu0 %2553  ;;  %v3387_v54 = vld [vmem:[#allocation3 + $0x50] sm:$0xff] }
 0x255   : > { %v2640_v39 = vpop.permute.xlu1 %2639  ;;  %4556 = vmatprep.mubr.msk.bf16.mxu1 %vm3360_vm3, %v3387_v54  ;;  %v3082_v4 = vsel %vm455_vm0, %v3048_v50, %v2554_v35 }
 0x256   : > { %v3119_v5 = vsel %vm3089_vm13, %v3084_v24, %v2640_v39 }
 0x258   : > { %v2638_v56 = vpop.permute.xlu0 %2637  ;;  %v3388_v20 = vld [vmem:[#allocation3 + $0x58] sm:$0xff] }
 0x259   : > { %v2691_v46 = vpop.permute.xlu1 %2690  ;;  %4557 = vmatmul.mubr.msk.bf16.gmra.mrb[36].mxu1 %vm3360_vm3, %v3388_v20  ;;  %v3117_v30 = vsel %vm3089_vm13, %v3082_v4, %v2638_v56 }
 0x25a   : > { %v3154_v26 = vsel %vm3124_vm14, %v3119_v5, %v2691_v46 }
 0x25c   : > { %v2689_v9 = vpop.permute.xlu0 %2688 }
 0x25d   : > { %v2845_v2 = vpop.permute.xlu1 %2844  ;;  %v3152_v28 = vsel %vm3124_vm14, %v3117_v30, %v2689_v9 }
 0x25e   : > { %v3189_v51 = vsel %vm3159_vm15, %v3154_v26, %v2845_v2 }
 0x260   : > { %v2843_v12 = vpop.permute.xlu0 %2842 }
 0x261   : > { %v2261_v52 = vpop.permute.xlu1 %2260  ;;  %v3187_v40 = vsel %vm3159_vm15, %v3152_v28, %v2843_v12 }
 0x262   : > { %v2981_v33 = vsel %vm311_vm1, %v6896_v44, %v2261_v52 }
 0x264   : > { %v2927_v7 = vpop.permute.xlu0 %2926 }
 0x265   : > { %v2263_v34 = vpop.permute.xlu1 %2262  ;;  %v3222_v3 = vsel %vm3194_vm2, %v3187_v40, %v2927_v7  ;;  %v6561_v40 = vld [vmem:[%s6795_s6] ss:$0 sm:$0xff] }
 0x266   : > { %v3316_v18 = vshrl.u32 %v3222_v3, 16  ;;  %v3319_v10 = vshll.u32 %v3222_v3, 16 }
 0x268   : > { %v3318_v62 = vrot.slane %v3316_v18, 7  ;;  %v2929_v47 = vpop.permute.xlu0 %2928 }
 0x269   : > { %v2348_v37 = vpop.permute.xlu1 %2347  ;;  %v3224_v60 = vsel %vm3194_vm2, %v3189_v51, %v2929_v47 }
 0x26a   : > { %v3321_v1 = vor.u32 %v3319_v10, %v3318_v62  ;;  %v3323_v17 = vshrl.u32 %v3224_v60, 16  ;;  %v3326_v22 = vshll.u32 %v3224_v60, 16 }
 0x26c   : > { %v3322_v32 = vsel %vm315_vm6, %v3311_v15, %v3321_v1  ;;  %v3325_v45 = vrot.slane %v3323_v17, 7  ;;  %v2346_v23 = vpop.permute.xlu0 %2345  ;;  %v6895_v15 = vmul.bf16 %v6869_v11, %v6880_v55 }
 0x26d   : > { %3373 = vst.msk [vmem:[#allocation3 + $0x60] sm:$0xff] %vm3360_vm3, %v3322_v32  ;;  %v2399_v41 = vpop.permute.xlu1 %2398  ;;  %v3017_v54 = vsel %vm2985_vm11, %v2981_v33, %v2346_v23 }
 0x26e   : > { %v3328_v63 = vor.u32 %v3326_v22, %v3325_v45  ;;  %v2984_v21 = vsel %vm311_vm1, %v6895_v15, %v2263_v34 }
 0x26f   : > { %v3019_v31 = vsel %vm2985_vm11, %v2984_v21, %v2348_v37 }
 0x270   : > { %v3329_v8 = vsel %vm315_vm6, %v3318_v62, %v3328_v63  ;;  %v2397_v27 = vpop.permute.xlu0 %2396  ;;  %v3054_v19 = vsel %vm3020_vm12, %v3019_v31, %v2399_v41 }
 0x271   : > { %3374 = vst.msk [vmem:[#allocation3 + $0x68] sm:$0xff] %vm3360_vm3, %v3329_v8  ;;  %v2560_v58 = vpop.permute.xlu1 %2559  ;;  %v3052_v11 = vsel %vm3020_vm12, %v3017_v54, %v2397_v27 }
 0x272   : > { %v3088_v35 = vsel %vm455_vm0, %v3054_v19, %v2560_v58 }
 0x274   : > { %v2558_v14 = vpop.permute.xlu0 %2557  ;;  %v3389_v0 = vld [vmem:[#allocation3 + $0x60] sm:$0xff] }
 0x275   : > { %v2644_v6 = vpop.permute.xlu1 %2643  ;;  %4560 = vmatprep.mubr.msk.bf16.mxu1 %vm3360_vm3, %v3389_v0  ;;  %v3086_v20 = vsel %vm455_vm0, %v3052_v11, %v2558_v14  ;;  %vm4141_vm0 = vcmask 257024  }
 0x276   : > { %v3123_v39 = vsel %vm3089_vm13, %v3088_v35, %v2644_v6 }
 0x278   : > { %v2642_v61 = vpop.permute.xlu0 %2641  ;;  %v3390_v53 = vld [vmem:[#allocation3 + $0x68] sm:$0xff] }
 0x279   : > { %v2695_v38 = vpop.permute.xlu1 %2694  ;;  %4561 = vmatmul.mubr.msk.bf16.gmra.mrb[40].mxu1 %vm3360_vm3, %v3390_v53  ;;  %v3121_v42 = vsel %vm3089_vm13, %v3086_v20, %v2642_v61 }
 0x27a   : > { %v3158_v55 = vsel %vm3124_vm14, %v3123_v39, %v2695_v38 }
 0x27c   : > { %v2693_v25 = vpop.permute.xlu0 %2692 }
 0x27d   : > { %v2849_v16 = vpop.permute.xlu1 %2848  ;;  %v3156_v2 = vsel %vm3124_vm14, %v3121_v42, %v2693_v25 }
 0x27e   : > { %v3193_v46 = vsel %vm3159_vm15, %v3158_v55, %v2849_v16 }
 0x280   : > { %v2847_v56 = vpop.permute.xlu0 %2846 }
 0x281   : > { %v2933_v9 = vpop.permute.xlu1 %2932  ;;  %v3191_v59 = vsel %vm3159_vm15, %v3156_v2, %v2847_v56 }
 0x282   : > { %v3228_v57 = vsel %vm3194_vm2, %v3193_v46, %v2933_v9 }
 0x283   : > { %v3337_v13 = vshrl.u32 %v3228_v57, 16  ;;  %v3340_v4 = vshll.u32 %v3228_v57, 16 }
 0x284   : > { %v2931_v48 = vpop.permute.xlu0 %2930 }
 0x285   : > { %v3339_v50 = vrot.slane %v3337_v13, 7  ;;  %v3226_v12 = vsel %vm3194_vm2, %v3191_v59, %v2931_v48 }
 0x286   : > { %v3330_v52 = vshrl.u32 %v3226_v12, 16  ;;  %v3333_v30 = vshll.u32 %v3226_v12, 16 }
 0x287   : > { %v3342_v29 = vor.u32 %v3340_v4, %v3339_v50 }
 0x288   : > { %v3332_v49 = vrot.slane %v3330_v52, 7 }
 0x28a   : > { %v3335_v43 = vor.u32 %v3333_v30, %v3332_v49  ;;  %v3343_v28 = vsel %vm315_vm6, %v3332_v49, %v3342_v29 }
 0x28b   : > { %3376 = vst.msk [vmem:[#allocation3 + $0x78] sm:$0xff] %vm3360_vm3, %v3343_v28 }
 0x28c   : > { %v3336_v36 = vsel %vm315_vm6, %v3325_v45, %v3335_v43 }
 0x28d   : > { %3375 = vst.msk [vmem:[#allocation3 + $0x70] sm:$0xff] %vm3360_vm3, %v3336_v36 }
 0x292   : > { %v3392_v34 = vld [vmem:[#allocation3 + $0x78] sm:$0xff] }
 0x294   : > { %v3391_v7 = vld [vmem:[#allocation3 + $0x70] sm:$0xff] }
 0x295   : > { %v4538_v24 = vpop.f32.mrb[16].mxu1  ;;  %4564 = vmatprep.mubr.msk.bf16.mxu1 %vm3360_vm3, %v3391_v7 }
 0x296   : > { %v3531_v3 = vadd.f32 %v4538_v24, %v6561_v40  ;;  %v3522_v5 = vpop.f32.mrb[17].mxu1  ;;  %4565 = vmatmul.mubr.msk.bf16.gmra.mrb[44].mxu1 %vm3360_vm3, %v3392_v34 }
 0x297   : > { %v3523_v18 = vadd.f32 %v6561_v40, %v3522_v5  ;;  %v4539_v26 = vpop.f32.mrb[18].mxu1 }
 0x298   : > { %v3534_v51 = vadd.f32 %v4539_v26, %v6561_v40  ;;  %v3525_v62 = vpop.f32.mrb[19].mxu1  ;;  %v3651_v47 = vmax.f32 %v3531_v3, 0.0 }
 0x299   : > { %v3526_v10 = vadd.f32 %v6561_v40, %v3525_v62  ;;  %v3649_v60 = vmax.f32 %v3523_v18, 0.0 }
 0x29a   : > { %v3652_v37 = vmax.f32 %v3534_v51, 0.0 }
 0x29b   : > { %v3650_v1 = vmax.f32 %v3526_v10, 0.0 }
 0x29c   : > { %v3682_v17 = vpack.c.bf16 %v3652_v37, %v3651_v47 }
 0x29d   : > { %v3681_v32 = vpack.c.bf16 %v3650_v1, %v3649_v60 }
 0x29f   : > { %4570 = vmatprep.mubr.msk.bf16.mxu0 %vm311_vm1, %v3681_v32 }
 0x2a0   : > { %4571 = vmatmul.mubr.msk.bf16.vlgmr.msra.gmra.mrb[16].mxu0 %vm311_vm1, %v3682_v17 }
 0x2b4   : > { %v4542_v45 = vpop.f32.mrb[20].mxu1 }
 0x2b5   : > { %v3547_v22 = vadd.f32 %v4542_v45, %v6561_v40  ;;  %v3538_v23 = vpop.f32.mrb[21].mxu1 }
 0x2b6   : > { %v3539_v41 = vadd.f32 %v6561_v40, %v3538_v23  ;;  %v4543_v63 = vpop.f32.mrb[22].mxu1 }
 0x2b7   : > { %v3550_v8 = vadd.f32 %v4543_v63, %v6561_v40  ;;  %v3541_v27 = vpop.f32.mrb[23].mxu1  ;;  %v3655_v14 = vmax.f32 %v3547_v22, 0.0 }
 0x2b8   : > { %v3542_v58 = vadd.f32 %v6561_v40, %v3541_v27  ;;  %v3653_v6 = vmax.f32 %v3539_v41, 0.0 }
 0x2b9   : > { %v3656_v0 = vmax.f32 %v3550_v8, 0.0 }
 0x2ba   : > { %v3654_v61 = vmax.f32 %v3542_v58, 0.0 }
 0x2bb   : > { %v3684_v53 = vpack.c.bf16 %v3656_v0, %v3655_v14 }
 0x2bc   : > { %v3683_v38 = vpack.c.bf16 %v3654_v61, %v3653_v6 }
 0x2be   : > { %4574 = vmatprep.mubr.msk.bf16.mxu0 %vm311_vm1, %v3683_v38 }
 0x2bf   : > { %4575 = vmatmul.mubr.msk.bf16.gmra.mrb[20].mxu0 %vm311_vm1, %v3684_v53 }
 0x2cc   : > { %v4546_v15 = vpop.f32.mrb[24].mxu1 }
 0x2cd   : > { %v3563_v21 = vadd.f32 %v4546_v15, %v6561_v40  ;;  %v3554_v31 = vpop.f32.mrb[25].mxu1 }
 0x2ce   : > { %v3555_v25 = vadd.f32 %v6561_v40, %v3554_v31  ;;  %v4547_v19 = vpop.f32.mrb[26].mxu1 }
 0x2cf   : > { %v3566_v16 = vadd.f32 %v4547_v19, %v6561_v40  ;;  %v3557_v44 = vpop.f32.mrb[27].mxu1  ;;  %v3659_v35 = vmax.f32 %v3563_v21, 0.0 }
 0x2d0   : > { %v3558_v33 = vadd.f32 %v6561_v40, %v3557_v44  ;;  %v3657_v39 = vmax.f32 %v3555_v25, 0.0 }
 0x2d1   : > { %v3660_v54 = vmax.f32 %v3566_v16, 0.0 }
 0x2d2   : > { %v3658_v11 = vmax.f32 %v3558_v33, 0.0 }
 0x2d3   : > { %v3686_v55 = vpack.c.bf16 %v3660_v54, %v3659_v35 }
 0x2d4   : > { %v3685_v56 = vpack.c.bf16 %v3658_v11, %v3657_v39 }
 0x2d6   : > { %4578 = vmatprep.mubr.msk.bf16.mxu0 %vm311_vm1, %v3685_v56 }
 0x2d7   : > { %4579 = vmatmul.mubr.msk.bf16.gmra.mrb[24].mxu0 %vm311_vm1, %v3686_v55 }
 0x2ec   : > { %v4550_v20 = vpop.f32.mrb[28].mxu1 }
 0x2ed   : > { %v3579_v46 = vadd.f32 %v4550_v20, %v6561_v40  ;;  %v3570_v9 = vpop.f32.mrb[29].mxu1 }
 0x2ee   : > { %v3571_v42 = vadd.f32 %v6561_v40, %v3570_v9  ;;  %v4551_v57 = vpop.f32.mrb[30].mxu1 }
 0x2ef   : > { %v3582_v2 = vadd.f32 %v4551_v57, %v6561_v40  ;;  %v3573_v13 = vpop.f32.mrb[31].mxu1  ;;  %v3663_v48 = vmax.f32 %v3579_v46, 0.0 }
 0x2f0   : > { %v3574_v59 = vadd.f32 %v6561_v40, %v3573_v13  ;;  %v3661_v12 = vmax.f32 %v3571_v42, 0.0 }
 0x2f1   : > { %v3664_v50 = vmax.f32 %v3582_v2, 0.0 }
 0x2f2   : > { %v3662_v4 = vmax.f32 %v3574_v59, 0.0  ;;  %v6614_v59 = vld [vmem:[%s6796_s7] ss:$0 sm:$0xff] }
 0x2f3   : > { %v3688_v52 = vpack.c.bf16 %v3664_v50, %v3663_v48  ;;  %v4718_v48 = vld [vmem:[%s4932_s20 + $0x8] sm:$0xff]  }
 0x2f4   : > { %v3687_v29 = vpack.c.bf16 %v3662_v4, %v3661_v12  ;;  %v3919_v50 = vunpack.c.l.bf16 %v4718_v48  ;;  %v4719_v12 = vld [vmem:[%s4932_s20] sm:$0xff]  }
 0x2f5   : > { %v3917_v4 = vunpack.c.l.bf16 %v4719_v12 }
 0x2f6   : > { %4582 = vmatprep.mubr.msk.bf16.mxu0 %vm311_vm1, %v3687_v29 }
 0x2f7   : > { %4583 = vmatmul.mubr.msk.bf16.gmra.mrb[28].mxu0 %vm311_vm1, %v3688_v52 }
 0x30c   : > { %v4554_v49 = vpop.f32.mrb[32].mxu1 }
 0x30d   : > { %v3595_v30 = vadd.f32 %v4554_v49, %v6561_v40  ;;  %v3586_v43 = vpop.f32.mrb[33].mxu1  ;;  %v3920_v49 = vunpack.c.h.bf16 %v4718_v48 }
 0x30e   : > { %v3587_v28 = vadd.f32 %v6561_v40, %v3586_v43  ;;  %v4555_v36 = vpop.f32.mrb[34].mxu1 }
 0x30f   : > { %v3598_v7 = vadd.f32 %v4555_v36, %v6561_v40  ;;  %v3589_v24 = vpop.f32.mrb[35].mxu1  ;;  %v3667_v3 = vmax.f32 %v3595_v30, 0.0  ;;  %v3918_v30 = vunpack.c.h.bf16 %v4719_v12 }
 0x310   : > { %v3590_v34 = vadd.f32 %v6561_v40, %v3589_v24  ;;  %v3665_v18 = vmax.f32 %v3587_v28, 0.0 }
 0x311   : > { %v3668_v5 = vmax.f32 %v3598_v7, 0.0 }
 0x312   : > { %v3666_v26 = vmax.f32 %v3590_v34, 0.0 }
 0x313   : > { %v3690_v51 = vpack.c.bf16 %v3668_v5, %v3667_v3 }
 0x314   : > { %v3689_v62 = vpack.c.bf16 %v3666_v26, %v3665_v18 }
 0x316   : > { %4586 = vmatprep.mubr.msk.bf16.mxu0 %vm311_vm1, %v3689_v62 }
 0x317   : > { %4587 = vmatmul.mubr.msk.bf16.gmra.mrb[32].mxu0 %vm311_vm1, %v3690_v51 }
 0x32c   : > { %v4558_v10 = vpop.f32.mrb[36].mxu1 }
 0x32d   : > { %v3611_v47 = vadd.f32 %v4558_v10, %v6561_v40  ;;  %v3602_v37 = vpop.f32.mrb[37].mxu1 }
 0x32e   : > { %v3603_v60 = vadd.f32 %v6561_v40, %v3602_v37  ;;  %v4559_v1 = vpop.f32.mrb[38].mxu1 }
 0x32f   : > { %v3614_v17 = vadd.f32 %v4559_v1, %v6561_v40  ;;  %v3605_v32 = vpop.f32.mrb[39].mxu1  ;;  %v3671_v22 = vmax.f32 %v3611_v47, 0.0 }
 0x330   : > { %v3606_v45 = vadd.f32 %v6561_v40, %v3605_v32  ;;  %v3669_v41 = vmax.f32 %v3603_v60, 0.0 }
 0x331   : > { %v3672_v23 = vmax.f32 %v3614_v17, 0.0  ;;  %v4720_v17 = vld [vmem:[%s4932_s20 + $0x18] sm:$0xff]  }
 0x332   : > { %v3670_v63 = vmax.f32 %v3606_v45, 0.0  ;;  %v3923_v32 = vunpack.c.l.bf16 %v4720_v17 }
 0x333   : > { %v3692_v8 = vpack.c.bf16 %v3672_v23, %v3671_v22  ;;  %v4721_v22 = vld [vmem:[%s4932_s20 + $0x10] sm:$0xff]  }
 0x334   : > { %v3691_v27 = vpack.c.bf16 %v3670_v63, %v3669_v41  ;;  %v3921_v23 = vunpack.c.l.bf16 %v4721_v22 }
 0x336   : > { %4590 = vmatprep.mubr.msk.bf16.mxu0 %vm311_vm1, %v3691_v27 }
 0x337   : > { %4591 = vmatmul.mubr.msk.bf16.gmra.mrb[36].mxu0 %vm311_vm1, %v3692_v8  ;;  %v3924_v8 = vunpack.c.h.bf16 %v4720_v17 }
 0x34c   : > { %v4562_v58 = vpop.f32.mrb[40].mxu1 }
 0x34d   : > { %v3627_v14 = vadd.f32 %v4562_v58, %v6561_v40  ;;  %v3618_v0 = vpop.f32.mrb[41].mxu1 }
 0x34e   : > { %v3619_v6 = vadd.f32 %v6561_v40, %v3618_v0  ;;  %v4563_v61 = vpop.f32.mrb[42].mxu1 }
 0x34f   : > { %v3630_v53 = vadd.f32 %v4563_v61, %v6561_v40  ;;  %v3621_v38 = vpop.f32.mrb[43].mxu1  ;;  %v3675_v21 = vmax.f32 %v3627_v14, 0.0  ;;  %v3922_v14 = vunpack.c.h.bf16 %v4721_v22 }
 0x350   : > { %v3622_v15 = vadd.f32 %v6561_v40, %v3621_v38  ;;  %v3673_v25 = vmax.f32 %v3619_v6, 0.0 }
 0x351   : > { %v3676_v31 = vmax.f32 %v3630_v53, 0.0 }
 0x352   : > { %v3674_v19 = vmax.f32 %v3622_v15, 0.0 }
 0x353   : > { %v3694_v16 = vpack.c.bf16 %v3676_v31, %v3675_v21 }
 0x354   : > { %v3693_v44 = vpack.c.bf16 %v3674_v19, %v3673_v25 }
 0x356   : > { %4594 = vmatprep.mubr.msk.bf16.mxu0 %vm311_vm1, %v3693_v44 }
 0x357   : > { %4595 = vmatmul.mubr.msk.bf16.gmra.mrb[40].mxu0 %vm311_vm1, %v3694_v16 }
 0x369   : > { %v4566_v33 = vpop.f32.mrb[44].mxu1 }
 0x36a   : > { %v3643_v35 = vadd.f32 %v4566_v33, %v6561_v40  ;;  %v3634_v54 = vpop.f32.mrb[45].mxu1 }
 0x36b   : > { %v3635_v39 = vadd.f32 %v6561_v40, %v3634_v54  ;;  %v4567_v11 = vpop.f32.mrb[46].mxu1 }
 0x36c   : > { %v3646_v55 = vadd.f32 %v4567_v11, %v6561_v40  ;;  %v3637_v56 = vpop.f32.mrb[47].mxu1  ;;  %v3679_v46 = vmax.f32 %v3643_v35, 0.0 }
 0x36d   : > { %v3638_v20 = vadd.f32 %v6561_v40, %v3637_v56  ;;  %v3677_v42 = vmax.f32 %v3635_v39, 0.0  ;;  %v4722_v39 = vld [vmem:[%s4932_s20 + $0x28] sm:$0xff]   ;;  %v4723_v56 = vld [vmem:[%s4932_s20 + $0x20] sm:$0xff]  }
 0x36e   : > { %v3680_v9 = vmax.f32 %v3646_v55, 0.0  ;;  %v3927_v11 = vunpack.c.l.bf16 %v4722_v39 }
 0x36f   : > { %v3678_v57 = vmax.f32 %v3638_v20, 0.0  ;;  %v3925_v20 = vunpack.c.l.bf16 %v4723_v56 }
 0x370   : > { %v3696_v2 = vpack.c.bf16 %v3680_v9, %v3679_v46 }
 0x371   : > { %v3695_v13 = vpack.c.bf16 %v3678_v57, %v3677_v42  ;;  %v3928_v42 = vunpack.c.h.bf16 %v4722_v39 }
 0x373   : > { %v4572_v52 = vpop.f32.mrb[16].mxu0  ;;  %4598 = vmatprep.mubr.msk.bf16.mxu0 %vm311_vm1, %v3695_v13  ;;  %v3926_v13 = vunpack.c.h.bf16 %v4723_v56 }
 0x374   : > { %v3799_v40 = vadd.f32 %v4572_v52, %v6614_v59  ;;  %v3790_v29 = vpop.f32.mrb[17].mxu0  ;;  %4599 = vmatmul.mubr.msk.bf16.gmra.mrb[44].mxu0 %vm311_vm1, %v3696_v2 }
 0x375   : > { %v3791_v43 = vadd.f32 %v6614_v59, %v3790_v29  ;;  %v4573_v28 = vpop.f32.mrb[18].mxu0 }
 0x376   : > { %v3951_v36 = vadd.f32 %v3919_v50, %v3799_v40  ;;  %v3802_v7 = vadd.f32 %v4573_v28, %v6614_v59  ;;  %v3793_v24 = vpop.f32.mrb[19].mxu0 }
 0x377   : > { %v3949_v34 = vadd.f32 %v3917_v4, %v3791_v43  ;;  %v3794_v3 = vadd.f32 %v6614_v59, %v3793_v24 }
 0x378   : > { %v3983_v5 = vmax.f32 %v3951_v36, 0.0  ;;  %v3952_v18 = vadd.f32 %v3920_v49, %v3802_v7 }
 0x379   : > { %v3981_v26 = vmax.f32 %v3949_v34, 0.0  ;;  %v3950_v51 = vadd.f32 %v3918_v30, %v3794_v3  ;;  %v4724_v3 = vld [vmem:[%s4932_s20 + $0x38] sm:$0xff]  }
 0x37a   : > { %v4403_v62 = vpack.c.bf16 %v3983_v5, %v3983_v5  ;;  %v3984_v10 = vmax.f32 %v3952_v18, 0.0  ;;  %v3931_v5 = vunpack.c.l.bf16 %v4724_v3 }
 0x37b   : > { %v4401_v47 = vpack.c.bf16 %v3981_v26, %v3981_v26  ;;  %v3982_v37 = vmax.f32 %v3950_v51, 0.0  ;;  %v4725_v26 = vld [vmem:[%s4932_s20 + $0x30] sm:$0xff]  }
 0x37c   : > { %4144 = vst.msk [vmem:[%s6627_s21 + $0x8] sm:$0xf] %vm4141_vm0, %v4403_v62  ;;  %v4404_v60 = vpack.c.bf16 %v3984_v10, %v3984_v10  ;;  %v3929_v51 = vunpack.c.l.bf16 %v4725_v26 }
 0x37d   : > { %4142 = vst.msk [vmem:[%s6627_s21] sm:$0xf] %vm4141_vm0, %v4401_v47  ;;  %v4402_v1 = vpack.c.bf16 %v3982_v37, %v3982_v37  ;;  %v3932_v47 = vunpack.c.h.bf16 %v4724_v3 }
 0x37e   : > { %4145 = vst.msk [vmem:[%s6627_s21 + $0xc] sm:$0xf] %vm4141_vm0, %v4404_v60 }
 0x37f   : > { %4143 = vst.msk [vmem:[%s6627_s21 + $0x4] sm:$0xf] %vm4141_vm0, %v4402_v1  ;;  %v3930_v1 = vunpack.c.h.bf16 %v4725_v26 }
 0x392   : > { %v4576_v45 = vpop.f32.mrb[20].mxu0 }
 0x393   : > { %v3815_v41 = vadd.f32 %v4576_v45, %v6614_v59  ;;  %v3806_v63 = vpop.f32.mrb[21].mxu0 }
 0x394   : > { %v3807_v27 = vadd.f32 %v6614_v59, %v3806_v63  ;;  %v4577_v58 = vpop.f32.mrb[22].mxu0 }
 0x395   : > { %v3955_v0 = vadd.f32 %v3923_v32, %v3815_v41  ;;  %v3818_v6 = vadd.f32 %v4577_v58, %v6614_v59  ;;  %v3809_v61 = vpop.f32.mrb[23].mxu0 }
 0x396   : > { %v3953_v53 = vadd.f32 %v3921_v23, %v3807_v27  ;;  %v3810_v38 = vadd.f32 %v6614_v59, %v3809_v61 }
 0x397   : > { %v3987_v15 = vmax.f32 %v3955_v0, 0.0  ;;  %v3956_v21 = vadd.f32 %v3924_v8, %v3818_v6 }
 0x398   : > { %v3985_v31 = vmax.f32 %v3953_v53, 0.0  ;;  %v3954_v25 = vadd.f32 %v3922_v14, %v3810_v38  ;;  %v4726_v38 = vld [vmem:[%s4932_s20 + $0x48] sm:$0xff]  }
 0x399   : > { %v4407_v19 = vpack.c.bf16 %v3987_v15, %v3987_v15  ;;  %v3988_v16 = vmax.f32 %v3956_v21, 0.0  ;;  %v3935_v15 = vunpack.c.l.bf16 %v4726_v38  ;;  %v4727_v21 = vld [vmem:[%s4932_s20 + $0x40] sm:$0xff]  }
 0x39a   : > { %v4405_v44 = vpack.c.bf16 %v3985_v31, %v3985_v31  ;;  %v3986_v33 = vmax.f32 %v3954_v25, 0.0  ;;  %v3933_v31 = vunpack.c.l.bf16 %v4727_v21 }
 0x39b   : > { %4148 = vst.msk [vmem:[%s6627_s21 + $0x18] sm:$0xf] %vm4141_vm0, %v4407_v19  ;;  %v4408_v35 = vpack.c.bf16 %v3988_v16, %v3988_v16 }
 0x39c   : > { %4146 = vst.msk [vmem:[%s6627_s21 + $0x10] sm:$0xf] %vm4141_vm0, %v4405_v44  ;;  %v4406_v54 = vpack.c.bf16 %v3986_v33, %v3986_v33  ;;  %v3936_v44 = vunpack.c.h.bf16 %v4726_v38  ;;  %v3934_v33 = vunpack.c.h.bf16 %v4727_v21 }
 0x39d   : > { %4149 = vst.msk [vmem:[%s6627_s21 + $0x1c] sm:$0xf] %vm4141_vm0, %v4408_v35 }
 0x39e   : > { %4147 = vst.msk [vmem:[%s6627_s21 + $0x14] sm:$0xf] %vm4141_vm0, %v4406_v54 }
 0x3aa   : > { %v4580_v55 = vpop.f32.mrb[24].mxu0 }
 0x3ab   : > { %v3831_v46 = vadd.f32 %v4580_v55, %v6614_v59  ;;  %v3822_v9 = vpop.f32.mrb[25].mxu0 }
 0x3ac   : > { %v3823_v57 = vadd.f32 %v6614_v59, %v3822_v9  ;;  %v4581_v2 = vpop.f32.mrb[26].mxu0 }
 0x3ad   : > { %v3959_v48 = vadd.f32 %v3927_v11, %v3831_v46  ;;  %v3834_v50 = vadd.f32 %v4581_v2, %v6614_v59  ;;  %v3825_v12 = vpop.f32.mrb[27].mxu0 }
 0x3ae   : > { %v3957_v4 = vadd.f32 %v3925_v20, %v3823_v57  ;;  %v3826_v52 = vadd.f32 %v6614_v59, %v3825_v12 }
 0x3af   : > { %v3991_v40 = vmax.f32 %v3959_v48, 0.0  ;;  %v3960_v29 = vadd.f32 %v3928_v42, %v3834_v50 }
 0x3b0   : > { %v3989_v49 = vmax.f32 %v3957_v4, 0.0  ;;  %v3958_v30 = vadd.f32 %v3926_v13, %v3826_v52  ;;  %v4728_v52 = vld [vmem:[%s4932_s20 + $0x58] sm:$0xff]  }
 0x3b1   : > { %v4411_v43 = vpack.c.bf16 %v3991_v40, %v3991_v40  ;;  %v3992_v28 = vmax.f32 %v3960_v29, 0.0  ;;  %v3939_v40 = vunpack.c.l.bf16 %v4728_v52 }
 0x3b2   : > { %v4409_v36 = vpack.c.bf16 %v3989_v49, %v3989_v49  ;;  %v3990_v7 = vmax.f32 %v3958_v30, 0.0  ;;  %v4729_v49 = vld [vmem:[%s4932_s20 + $0x50] sm:$0xff]  }
 0x3b3   : > { %4152 = vst.msk [vmem:[%s6627_s21 + $0x28] sm:$0xf] %vm4141_vm0, %v4411_v43  ;;  %v4412_v24 = vpack.c.bf16 %v3992_v28, %v3992_v28  ;;  %v3937_v30 = vunpack.c.l.bf16 %v4729_v49 }
 0x3b4   : > { %4150 = vst.msk [vmem:[%s6627_s21 + $0x20] sm:$0xf] %vm4141_vm0, %v4409_v36  ;;  %v4410_v34 = vpack.c.bf16 %v3990_v7, %v3990_v7  ;;  %v3940_v36 = vunpack.c.h.bf16 %v4728_v52 }
 0x3b5   : > { %4153 = vst.msk [vmem:[%s6627_s21 + $0x2c] sm:$0xf] %vm4141_vm0, %v4412_v24 }
 0x3b6   : > { %4151 = vst.msk [vmem:[%s6627_s21 + $0x24] sm:$0xf] %vm4141_vm0, %v4410_v34  ;;  %v3938_v34 = vunpack.c.h.bf16 %v4729_v49 }
 0x3ca   : > { %v4584_v18 = vpop.f32.mrb[28].mxu0 }
 0x3cb   : > { %v3847_v62 = vadd.f32 %v4584_v18, %v6614_v59  ;;  %v3838_v10 = vpop.f32.mrb[29].mxu0 }
 0x3cc   : > { %v3839_v37 = vadd.f32 %v6614_v59, %v3838_v10  ;;  %v4585_v60 = vpop.f32.mrb[30].mxu0 }
 0x3cd   : > { %v3963_v17 = vadd.f32 %v3931_v5, %v3847_v62  ;;  %v3850_v32 = vadd.f32 %v4585_v60, %v6614_v59  ;;  %v3841_v45 = vpop.f32.mrb[31].mxu0 }
 0x3ce   : > { %v3961_v22 = vadd.f32 %v3929_v51, %v3839_v37  ;;  %v3842_v23 = vadd.f32 %v6614_v59, %v3841_v45 }
 0x3cf   : > { %v3995_v41 = vmax.f32 %v3963_v17, 0.0  ;;  %v3964_v63 = vadd.f32 %v3932_v47, %v3850_v32 }
 0x3d0   : > { %v3993_v8 = vmax.f32 %v3961_v22, 0.0  ;;  %v3962_v27 = vadd.f32 %v3930_v1, %v3842_v23  ;;  %v4730_v23 = vld [vmem:[%s4932_s20 + $0x68] sm:$0xff]  }
 0x3d1   : > { %v4415_v58 = vpack.c.bf16 %v3995_v41, %v3995_v41  ;;  %v3996_v14 = vmax.f32 %v3964_v63, 0.0  ;;  %v3943_v41 = vunpack.c.l.bf16 %v4730_v23 }
 0x3d2   : > { %v4413_v0 = vpack.c.bf16 %v3993_v8, %v3993_v8  ;;  %v3994_v6 = vmax.f32 %v3962_v27, 0.0  ;;  %v4731_v8 = vld [vmem:[%s4932_s20 + $0x60] sm:$0xff]  }
 0x3d3   : > { %4156 = vst.msk [vmem:[%s6627_s21 + $0x38] sm:$0xf] %vm4141_vm0, %v4415_v58  ;;  %v4416_v61 = vpack.c.bf16 %v3996_v14, %v3996_v14  ;;  %v3941_v27 = vunpack.c.l.bf16 %v4731_v8 }
 0x3d4   : > { %4154 = vst.msk [vmem:[%s6627_s21 + $0x30] sm:$0xf] %vm4141_vm0, %v4413_v0  ;;  %v4414_v53 = vpack.c.bf16 %v3994_v6, %v3994_v6  ;;  %v3944_v0 = vunpack.c.h.bf16 %v4730_v23 }
 0x3d5   : > { %4157 = vst.msk [vmem:[%s6627_s21 + $0x3c] sm:$0xf] %vm4141_vm0, %v4416_v61 }
 0x3d6   : > { %4155 = vst.msk [vmem:[%s6627_s21 + $0x34] sm:$0xf] %vm4141_vm0, %v4414_v53  ;;  %v3942_v53 = vunpack.c.h.bf16 %v4731_v8 }
 0x3ea   : > { %v4588_v25 = vpop.f32.mrb[32].mxu0 }
 0x3eb   : > { %v3863_v19 = vadd.f32 %v4588_v25, %v6614_v59  ;;  %v3854_v16 = vpop.f32.mrb[33].mxu0 }
 0x3ec   : > { %v3855_v35 = vadd.f32 %v6614_v59, %v3854_v16  ;;  %v4589_v54 = vpop.f32.mrb[34].mxu0 }
 0x3ed   : > { %v3967_v39 = vadd.f32 %v3935_v15, %v3863_v19  ;;  %v3866_v11 = vadd.f32 %v4589_v54, %v6614_v59  ;;  %v3857_v55 = vpop.f32.mrb[35].mxu0 }
 0x3ee   : > { %v3965_v56 = vadd.f32 %v3933_v31, %v3855_v35  ;;  %v3858_v20 = vadd.f32 %v6614_v59, %v3857_v55 }
 0x3ef   : > { %v3999_v46 = vmax.f32 %v3967_v39, 0.0  ;;  %v3968_v9 = vadd.f32 %v3936_v44, %v3866_v11 }
 0x3f0   : > { %v3997_v42 = vmax.f32 %v3965_v56, 0.0  ;;  %v3966_v57 = vadd.f32 %v3934_v33, %v3858_v20  ;;  %v4732_v20 = vld [vmem:[%s4932_s20 + $0x78] sm:$0xff]  }
 0x3f1   : > { %v4419_v2 = vpack.c.bf16 %v3999_v46, %v3999_v46  ;;  %v4000_v13 = vmax.f32 %v3968_v9, 0.0  ;;  %v3947_v46 = vunpack.c.l.bf16 %v4732_v20 }
 0x3f2   : > { %v4417_v48 = vpack.c.bf16 %v3997_v42, %v3997_v42  ;;  %v3998_v50 = vmax.f32 %v3966_v57, 0.0  ;;  %v4733_v42 = vld [vmem:[%s4932_s20 + $0x70] sm:$0xff]   ;;  %s4433_s20 = sshll.u32 %s4877_s9, 11  ;;  %s6746_s9 = scalar_lea.sflag [#allocation5], %s296_s26 }
 0x3f3   : > { %4160 = vst.msk [vmem:[%s6627_s21 + $0x48] sm:$0xf] %vm4141_vm0, %v4419_v2  ;;  %v4420_v12 = vpack.c.bf16 %v4000_v13, %v4000_v13  ;;  %v3945_v57 = vunpack.c.l.bf16 %v4733_v42  ;;  %s6734_s17 = scalar_lea.hbm %s6797_s8, %s4433_s20 }
 0x3f4   : > { %4158 = vst.msk [vmem:[%s6627_s21 + $0x40] sm:$0xf] %vm4141_vm0, %v4417_v48  ;;  %v4418_v4 = vpack.c.bf16 %v3998_v50, %v3998_v50  ;;  %v3948_v48 = vunpack.c.h.bf16 %v4732_v20 }
 0x3f5   : > { %4161 = vst.msk [vmem:[%s6627_s21 + $0x4c] sm:$0xf] %vm4141_vm0, %v4420_v12 }
 0x3f6   : > { %4159 = vst.msk [vmem:[%s6627_s21 + $0x44] sm:$0xf] %vm4141_vm0, %v4418_v4  ;;  %v3946_v4 = vunpack.c.h.bf16 %v4733_v42 }
 0x40a   : > { %v4592_v29 = vpop.f32.mrb[36].mxu0 }
 0x40b   : > { %v3879_v43 = vadd.f32 %v4592_v29, %v6614_v59  ;;  %v3870_v28 = vpop.f32.mrb[37].mxu0 }
 0x40c   : > { %v3871_v7 = vadd.f32 %v6614_v59, %v3870_v28  ;;  %v4593_v24 = vpop.f32.mrb[38].mxu0 }
 0x40d   : > { %v3971_v3 = vadd.f32 %v3939_v40, %v3879_v43  ;;  %v3882_v5 = vadd.f32 %v4593_v24, %v6614_v59  ;;  %v3873_v18 = vpop.f32.mrb[39].mxu0 }
 0x40e   : > { %v3969_v26 = vadd.f32 %v3937_v30, %v3871_v7  ;;  %v3874_v51 = vadd.f32 %v6614_v59, %v3873_v18 }
 0x40f   : > { %v4003_v62 = vmax.f32 %v3971_v3, 0.0  ;;  %v3972_v10 = vadd.f32 %v3940_v36, %v3882_v5 }
 0x410   : > { %v4001_v47 = vmax.f32 %v3969_v26, 0.0  ;;  %v3970_v37 = vadd.f32 %v3938_v34, %v3874_v51 }
 0x411   : > { %v4423_v60 = vpack.c.bf16 %v4003_v62, %v4003_v62  ;;  %v4004_v1 = vmax.f32 %v3972_v10, 0.0 }
 0x412   : > { %v4421_v17 = vpack.c.bf16 %v4001_v47, %v4001_v47  ;;  %v4002_v32 = vmax.f32 %v3970_v37, 0.0 }
 0x413   : > { %4164 = vst.msk [vmem:[%s6627_s21 + $0x58] sm:$0xf] %vm4141_vm0, %v4423_v60  ;;  %v4424_v45 = vpack.c.bf16 %v4004_v1, %v4004_v1 }
 0x414   : > { %4162 = vst.msk [vmem:[%s6627_s21 + $0x50] sm:$0xf] %vm4141_vm0, %v4421_v17  ;;  %v4422_v22 = vpack.c.bf16 %v4002_v32, %v4002_v32 }
 0x415   : > { %4165 = vst.msk [vmem:[%s6627_s21 + $0x5c] sm:$0xf] %vm4141_vm0, %v4424_v45 }
 0x416   : > { %4163 = vst.msk [vmem:[%s6627_s21 + $0x54] sm:$0xf] %vm4141_vm0, %v4422_v22 }
 0x42a   : > { %v4596_v63 = vpop.f32.mrb[40].mxu0 }
 0x42b   : > { %v3895_v58 = vadd.f32 %v4596_v63, %v6614_v59  ;;  %v3886_v14 = vpop.f32.mrb[41].mxu0 }
 0x42c   : > { %v3887_v6 = vadd.f32 %v6614_v59, %v3886_v14  ;;  %v4597_v61 = vpop.f32.mrb[42].mxu0 }
 0x42d   : > { %v3975_v38 = vadd.f32 %v3943_v41, %v3895_v58  ;;  %v3898_v15 = vadd.f32 %v4597_v61, %v6614_v59  ;;  %v3889_v21 = vpop.f32.mrb[43].mxu0 }
 0x42e   : > { %v3973_v31 = vadd.f32 %v3941_v27, %v3887_v6  ;;  %v3890_v25 = vadd.f32 %v6614_v59, %v3889_v21 }
 0x42f   : > { %v4007_v19 = vmax.f32 %v3975_v38, 0.0  ;;  %v3976_v16 = vadd.f32 %v3944_v0, %v3898_v15 }
 0x430   : > { %v4005_v44 = vmax.f32 %v3973_v31, 0.0  ;;  %v3974_v33 = vadd.f32 %v3942_v53, %v3890_v25 }
 0x431   : > { %v4427_v35 = vpack.c.bf16 %v4007_v19, %v4007_v19  ;;  %v4008_v54 = vmax.f32 %v3976_v16, 0.0 }
 0x432   : > { %v4425_v39 = vpack.c.bf16 %v4005_v44, %v4005_v44  ;;  %v4006_v11 = vmax.f32 %v3974_v33, 0.0 }
 0x433   : > { %4168 = vst.msk [vmem:[%s6627_s21 + $0x68] sm:$0xf] %vm4141_vm0, %v4427_v35  ;;  %v4428_v55 = vpack.c.bf16 %v4008_v54, %v4008_v54 }
 0x434   : > { %4166 = vst.msk [vmem:[%s6627_s21 + $0x60] sm:$0xf] %vm4141_vm0, %v4425_v39  ;;  %v4426_v56 = vpack.c.bf16 %v4006_v11, %v4006_v11 }
 0x435   : > { %4169 = vst.msk [vmem:[%s6627_s21 + $0x6c] sm:$0xf] %vm4141_vm0, %v4428_v55 }
 0x436   : > { %4167 = vst.msk [vmem:[%s6627_s21 + $0x64] sm:$0xf] %vm4141_vm0, %v4426_v56 }
 0x447   : > { %v4600_v9 = vpop.f32.mrb[44].mxu0 }
 0x448   : > { %v3911_v2 = vadd.f32 %v4600_v9, %v6614_v59  ;;  %v3902_v13 = vpop.f32.mrb[45].mxu0 }
 0x449   : > { %v3903_v50 = vadd.f32 %v6614_v59, %v3902_v13  ;;  %v4601_v12 = vpop.f32.mrb[46].mxu0 }
 0x44a   : > { %v3979_v52 = vadd.f32 %v3947_v46, %v3911_v2  ;;  %v3914_v40 = vadd.f32 %v4601_v12, %v6614_v59  ;;  %v3905_v29 = vpop.f32.mrb[47].mxu0 }
 0x44b   : > { %v3977_v49 = vadd.f32 %v3945_v57, %v3903_v50  ;;  %v3906_v30 = vadd.f32 %v6614_v59, %v3905_v29 }
 0x44c   : > { %v4011_v43 = vmax.f32 %v3979_v52, 0.0  ;;  %v3980_v28 = vadd.f32 %v3948_v48, %v3914_v40 }
 0x44d   : > { %v4009_v36 = vmax.f32 %v3977_v49, 0.0  ;;  %v3978_v7 = vadd.f32 %v3946_v4, %v3906_v30 }
 0x44e   : > { %v4431_v24 = vpack.c.bf16 %v4011_v43, %v4011_v43  ;;  %v4012_v34 = vmax.f32 %v3980_v28, 0.0 }
 0x44f   : > { %v4429_v3 = vpack.c.bf16 %v4009_v36, %v4009_v36  ;;  %v4010_v5 = vmax.f32 %v3978_v7, 0.0 }
 0x450   : > { %4172 = vst.msk [vmem:[%s6627_s21 + $0x78] sm:$0xf] %vm4141_vm0, %v4431_v24  ;;  %v4432_v18 = vpack.c.bf16 %v4012_v34, %v4012_v34 }
 0x451   : > { %4170 = vst.msk [vmem:[%s6627_s21 + $0x70] sm:$0xf] %vm4141_vm0, %v4429_v3  ;;  %v4430_v59 = vpack.c.bf16 %v4010_v5, %v4010_v5 }
 0x452   : > { %4173 = vst.msk [vmem:[%s6627_s21 + $0x7c] sm:$0xf] %vm4141_vm0, %v4432_v18 }
 0x453   : > { %4171 = vst.msk [vmem:[%s6627_s21 + $0x74] sm:$0xf] %vm4141_vm0, %v4430_v59 }
 0x454   : > { %4747 = shalt.err (!%p4744_p3)
}
 0x455   : > { %s4748_s26 = scalar_lea.hbm %s6734_s17, 2048  ;;  %s4752_s20 = scalar_lea.hbm %s6797_s8, 4096 }
 0x456   : > { %p4749_p4 = scmp.ne.s32.totalorder %s6734_s17, %s4748_s26  ;;  %p4753_p9 = scmp.lt.u32.totalorder %s6734_s17, %s6797_s8 }
 0x457   : > { %p4754_p10 = scmp.lt.u32.totalorder %s4752_s20, %s4748_s26  ;;  %p4756_p12 = scmp.lt.u32.totalorder %s4748_s26, %s6734_s17 }
 0x458   : > { %p4750_p7 = pnand %p4749_p4, %p4894_p5 }
 0x459   : > { %p4755_p11 = por %p4754_p10, %p4753_p9 }
 0x45a   : > { %p4751_p8 = pneg %p4750_p7 }
 0x45b   : > { %p4757_p13 = por %p4756_p12, %p4755_p11 }
 0x45d   : > { %p4758_p0 = pnand %p4757_p13, %p4751_p8 }
 0x45f   : > { %4761 = shalt.err (!%p4758_p0)
}
 0x460   : > { %s4810_s18 = smov 4  }
 0x461   : > { %4608 = dma.vmem_to_hbm [thread:$0]  (%p4894_p5), %s6738_s12, 2048, %s6734_s17, %s6746_s9, %s4807_s25, %s4807_s25, %s4810_s18  }
 0x462 PF: > { %p4614_p1 = scmp.ge.s32.totalorder %s4796_s30, 2  ;;  %s4203_s22 = sand.u32 1, %s4784_s27  }
 0x463   : > { %s4204_s23 = scalar_lea.sflag [#allocation5], %s4203_s22 }
 0x464   : > { %p4611_p2 = pnand %p4614_p1, %p4898_p6 }
 0x466   : > { %4779 = dma.done.wait (!%p4611_p2), %s4204_s23, 2048  }
 0x467   : > { %4781 = vsyncadd (!%p4611_p2), %s4204_s23, 4294965248  ;;  %p18_p3 = scmp.ge.s32.totalorder %s4881_s11, 4   ;;  %s6897_s27 = smov %s4788_s28 }
 0x468   : > { %s6898_s28 = smov %s4792_s29  ;;  %s6899_s29 = smov %s4892_s14 }
 0x469   : > { %s6900_s30 = smov %s4881_s11  ;;  %20 = sbr.rel (!%p18_p3) target bundleno = 3 (0x3), region = 87 }
 0x470   :  { %4209 = vsyncpa [#allocation5], 1 }
 0x471   :  { %4211 = vsyncpa [#allocation5 + $0x1], 1 }

</bundles_post_ra>
